<compile_context>
chip_gen: v6e
topology: v6e:2x2x1
jax: 0.10.0
libtpu: 0.0.40
codegen_flags: <defaults>
</compile_context>

<pallas_src>
import numpy as np
import jax
import jax.numpy as jnp
from jax.experimental import pallas as pl
from jax.experimental.pallas import tpu as pltpu

# ----------------------------- config (small synthetic, lane-aligned) ----------
NUM_GENES = 256            # stand-in for 19264 genes (multiple of 128)
HIDDEN = 128               # model_config['encoder']['hidden_dim'] -> lane-dense
N_HEADS = 1                # single 128-wide head (lane-dense attention)
HEAD_DIM = HIDDEN // N_HEADS
FFN_DIM = 256
PAD_TOKEN_ID = NUM_GENES   # pos-emb table has NUM_GENES+1 rows; last row = pad row
SEQ_LEN = 256              # fixed lane-aligned bucket (<= NUM_GENES) -> no host sync,
                           # no per-length recompiles, statically checkable VMEM
BATCH = 2
TEMPERATURE = 0.5


# ----------------------------- Pallas kernel -----------------------------------
def encoder_kernel(x_ref, pos_ref, pad_ref,
                   wtok_ref, btok_ref, wqkv_ref, bqkv_ref, wo_ref, bo_ref,
                   ln1g_ref, ln1b_ref, w1_ref, b1_ref, w2_ref, b2_ref,
                   ln2g_ref, ln2b_ref,
                   out_ref, pooled_ref):
    """One batch element per grid step: token emb + pos emb + encoder + pooling."""
    _, L, D = out_ref.shape

    # ---- token embedding (Linear(1->D) on the scalar value) + position emb ----
    xrow = x_ref[...].reshape(1, L)                        # (1, L) f32, values in lanes
    # value-per-row broadcast: sublane broadcast + full-tile XLU transpose
    xcol = jnp.transpose(jnp.broadcast_to(xrow, (D, L)))   # (L, D) f32
    pos = pos_ref[...].reshape(L, D).astype(jnp.float32)   # bf16 table -> f32 math
    h = xcol * wtok_ref[...] + btok_ref[...] + pos         # (L, D) f32

    # ---- fused QKV: one (L,D)x(D,3D) bf16 MXU pass, f32 accumulation ----------
    h_bf = h.astype(jnp.bfloat16)                          # cast h once, not 3x
    qkv = jnp.dot(h_bf, wqkv_ref[...],
                  preferred_element_type=jnp.float32) + bqkv_ref[...]   # (L, 3D)
    q = qkv[:, 0:D]            # 1/sqrt(HEAD_DIM) already folded into wq/bq on host
    k = qkv[:, D:2 * D]
    v = qkv[:, 2 * D:3 * D]

    # ---- attention scores + key-padding-masked softmax -------------------------
    s = jax.lax.dot_general(q.astype(jnp.bfloat16), k.astype(jnp.bfloat16),
                            dimension_numbers=(((1,), (1,)), ((), ())),
                            preferred_element_type=jnp.float32)          # (L, L)
    key_pad = pad_ref[...].reshape(1, L) > 0.5             # True where padded
    s = jnp.where(key_pad, jnp.float32(-1e30), s)          # mask BEFORE the max
    m = jnp.max(s, axis=-1, keepdims=True)
    p = jnp.exp(s - m)
    p = p * pl.reciprocal(jnp.sum(p, axis=-1, keepdims=True), approx=True)

    attn = jnp.dot(p.astype(jnp.bfloat16), v.astype(jnp.bfloat16),
                   preferred_element_type=jnp.float32)                   # (L, D)
    attn = jnp.dot(attn.astype(jnp.bfloat16), wo_ref[...],
                   preferred_element_type=jnp.float32) + bo_ref[...]

    def layer_norm(z, g_ref, b_ref):
        mu = jnp.mean(z, axis=-1, keepdims=True)
        var = jnp.mean((z - mu) ** 2, axis=-1, keepdims=True)
        return (z - mu) * jax.lax.rsqrt(var + 1e-5) * g_ref[...] + b_ref[...]

    # ---- post-LN transformer block (residual + LN, ReLU FFN, residual + LN) ----
    h1 = layer_norm(h + attn, ln1g_ref, ln1b_ref)
    f = jnp.dot(h1.astype(jnp.bfloat16), w1_ref[...],
                preferred_element_type=jnp.float32) + b1_ref[...]
    f = jnp.maximum(f, 0.0)
    f = jnp.dot(f.astype(jnp.bfloat16), w2_ref[...],
                preferred_element_type=jnp.float32) + b2_ref[...]
    out = layer_norm(h1 + f, ln2g_ref, ln2b_ref)           # (L, D) f32

    # ---- bf16 writeback (halves the dominant HBM store) ------------------------
    out_bf = out.astype(jnp.bfloat16)
    out_ref[...] = out_bf.reshape(1, L, D)

    # ---- fused masked-mean pooling as a (1,L)x(L,D) MXU contraction ------------
    valid = 1.0 - pad_ref[...].reshape(1, L)               # (1, L), 1.0 on real tokens
    cnt = jnp.maximum(jnp.sum(valid, axis=-1, keepdims=True), 1.0)   # NaN guard
    pooled = jnp.dot(valid.astype(jnp.bfloat16), out_bf,
                     preferred_element_type=jnp.float32)   # (1, D)
    pooled_ref[...] = (pooled * pl.reciprocal(cnt, approx=True)).reshape(1, 1, D)


# ----------------------------- wrapper ------------------------------------------
def _vmem_limit_bytes(L, D, F):
    """Documented VMEM budget computed from the actual block / intermediate sizes."""
    io = 2 * (L * D * 2        # pos block (bf16), double-buffered
              + L * D * 2      # out block (bf16)
              + 2 * L * 4 * 2  # vals + pad blocks (f32)
              + D * 4)         # pooled block
    wts = (3 * D * D + D * D + D * F + F * D) * 2 + 24 * max(D, F) * 4
    tmp = 3 * L * L * 4 + 12 * L * max(D, F) * 4           # scores/softmax + activations
    return int(min(max(io + wts + tmp, 8 << 20), 48 << 20))


def encoder_forward(vals, pos_g, pad_m, params):
    """vals: (B, L) f32, pos_g: (B, L, D) bf16, pad_m: (B, L) bool -> (logits, pooled)."""
    B, L = vals.shape
    D, F = HIDDEN, FFN_DIM
    x3 = vals.reshape(B, 1, L).astype(jnp.float32)          # lane-dense value stream
    pad3 = pad_m.astype(jnp.float32).reshape(B, 1, L)
    pos3 = pos_g.astype(jnp.bfloat16)                        # (B, L, D) bf16

    w_names = ("wtok", "btok", "wqkv", "bqkv", "wo", "bo",
               "ln1g", "ln1b", "w1", "b1", "w2", "b2", "ln2g", "ln2b")
    w_list = [params[n] for n in w_names]
    w_specs = [pl.BlockSpec(w.shape, lambda b: (0, 0)) for w in w_list]  # weights resident

    grid_spec = pltpu.PrefetchScalarGridSpec(
        num_scalar_prefetch=0,
        grid=(B,),                                           # one batch element / step
        in_specs=[pl.BlockSpec((1, 1, L), lambda b: (b, 0, 0)),   # vals
                  pl.BlockSpec((1, L, D), lambda b: (b, 0, 0)),   # pos (bf16)
                  pl.BlockSpec((1, 1, L), lambda b: (b, 0, 0))]   # pad mask
                 + w_specs,
        out_specs=(pl.BlockSpec((1, L, D), lambda b: (b, 0, 0)),  # encoder logits (bf16)
                   pl.BlockSpec((1, 1, D), lambda b: (b, 0, 0))))  # fused mean pool

    logits, pooled3 = pl.pallas_call(
        encoder_kernel,
        out_shape=(jax.ShapeDtypeStruct((B, L, D), jnp.bfloat16),
                   jax.ShapeDtypeStruct((B, 1, D), jnp.float32)),
        grid_spec=grid_spec,
        compiler_params=pltpu.CompilerParams(
            dimension_semantics=("parallel",),               # megacore on v7x
            vmem_limit_bytes=_vmem_limit_bytes(L, D, F)),
    )(x3, pos3, pad3, *w_list)
    return logits, pooled3.reshape(B, D)


# ----------------------------- host / XLA glue -----------------------------------
def gather_data_jax(x, mask, pad_token_id, l_pad):
    """Device-side replica of scFoundation gatherData: per row, keep expressed
    genes (ascending gene index) first, pad with pad_token_id; padded to l_pad."""
    B, G = x.shape
    gene_ids = jax.lax.broadcasted_iota(jnp.int32, (B, G), 1)
    keys = jnp.where(mask, gene_ids, gene_ids + G)           # expressed genes first
    order = jnp.argsort(keys, axis=1)[:, :l_pad]             # (B, l_pad)
    counts = jnp.sum(mask, axis=1, keepdims=True)
    rank = jax.lax.broadcasted_iota(jnp.int32, (B, l_pad), 1)
    valid = rank < counts
    vals = jnp.take_along_axis(x, order, axis=1)
    vals = jnp.where(valid, vals, float(pad_token_id))
    gids = jnp.where(valid, order, pad_token_id)
    return vals, gids, jnp.logical_not(valid)


def contrastive_loss(embeddings, labels, temperature=TEMPERATURE):
    """Plain-XLA replica of compute_contrastive_loss (semantically identical to
    the reference, including exp(logits/T) only in the denominator and the
    self-pair term in the denominator; like torch, NaN if a row has no positive)."""
    labels = labels.reshape(-1, 1)
    mask = (labels == labels.T).astype(jnp.float32)
    e = embeddings / jnp.maximum(
        jnp.linalg.norm(embeddings, axis=1, keepdims=True), 1e-12)
    sim = e @ e.T
    logits = sim - jnp.max(sim, axis=1, keepdims=True)
    mask = mask * (1.0 - jnp.eye(mask.shape[0], dtype=jnp.float32))
    exp_logits = jnp.exp(logits / temperature)
    log_prob = logits - jnp.log(jnp.sum(exp_logits, axis=1, keepdims=True))
    mean_log_prob_pos = jnp.sum(mask * log_prob, axis=1) / jnp.sum(mask, axis=1)
    return -jnp.mean(mean_log_prob_pos)


def init_params(key):
    ks = iter(jax.random.split(key, 12))
    D, F = HIDDEN, FFN_DIM

    def dense_w(shape, fan_in):
        return jax.random.normal(next(ks), shape, jnp.float32) / np.sqrt(fan_in)

    q_scale = 1.0 / np.sqrt(HEAD_DIM)   # fold attention scale into wq on the host
    wq = dense_w((D, D), D) * q_scale
    wk = dense_w((D, D), D)
    wv = dense_w((D, D), D)
    return dict(
        pos_table=(0.02 * jax.random.normal(next(ks), (NUM_GENES + 1, D),
                                            jnp.float32)).astype(jnp.bfloat16),
        wtok=dense_w((1, D), 1), btok=jnp.zeros((1, D), jnp.float32),
        wqkv=jnp.concatenate([wq, wk, wv], axis=1).astype(jnp.bfloat16),  # (D, 3D)
        bqkv=jnp.zeros((1, 3 * D), jnp.float32),
        wo=dense_w((D, D), D).astype(jnp.bfloat16), bo=jnp.zeros((1, D), jnp.float32),
        ln1g=jnp.ones((1, D), jnp.float32), ln1b=jnp.zeros((1, D), jnp.float32),
        w1=dense_w((D, F), D).astype(jnp.bfloat16), b1=jnp.zeros((1, F), jnp.float32),
        w2=dense_w((F, D), F).astype(jnp.bfloat16), b2=jnp.zeros((1, D), jnp.float32),
        ln2g=jnp.ones((1, D), jnp.float32), ln2b=jnp.zeros((1, D), jnp.float32),
    )


def forward(x, params):
    """Mirrors ContrastiveLearningModel.forward on sample_list['x'].  Returns the
    (padded) encoder logits plus the fused masked-mean pooled embeddings."""
    x = jnp.asarray(x, jnp.float32)
    B, G = x.shape
    L = SEQ_LEN                                   # fixed lane-aligned bucket, no host sync
    assert L % 128 == 0 and L <= G

    mask = x > 0
    vals, gids, pad = gather_data_jax(x, mask, PAD_TOKEN_ID, L)
    pos_g = jnp.take(params["pos_table"], gids, axis=0)      # (B, L, D) bf16
    logits, pooled = encoder_forward(vals, pos_g, pad, params)
    return logits, pooled                          # rows beyond a sample's length are pad rows


if __name__ == "__main__":
    key = jax.random.PRNGKey(0)
    k_param, k_x = jax.random.split(key)
    params = init_params(k_param)

    # synthetic sparse-ish expression matrix (about half the genes "expressed")
    x_raw = jax.random.uniform(k_x, (BATCH, NUM_GENES), jnp.float32) * 2.0 - 1.0
    x = jnp.where(x_raw > 0, x_raw, 0.0)

    logits, pooled = forward(x, params)
    logits = jax.block_until_ready(logits)
    pooled = jax.block_until_ready(pooled)

    labels = jnp.array([1, 1], dtype=jnp.int32)   # same class -> valid positive pairs
    loss = jax.block_until_ready(contrastive_loss(pooled, labels))

    assert logits.shape == (BATCH, SEQ_LEN, HIDDEN)
    assert pooled.shape == (BATCH, HIDDEN)
    assert bool(jnp.isfinite(logits.astype(jnp.float32)).all())
    assert bool(jnp.isfinite(pooled).all())
    assert bool(jnp.isfinite(loss))
    print("KERNEL_OK")
</pallas_src>

<mosaic_0001>
module attributes {stable_mosaic.version = 11 : i64} {
  func.func @encoder_kernel(%arg0: i32, %arg1: memref<1x1x256xf32, #tpu.memory_space<vmem>>, %arg2: memref<1x256x128xbf16, #tpu.memory_space<vmem>>, %arg3: memref<1x1x256xf32, #tpu.memory_space<vmem>>, %arg4: memref<1x128xf32, #tpu.memory_space<vmem>>, %arg5: memref<1x128xf32, #tpu.memory_space<vmem>>, %arg6: memref<128x384xbf16, #tpu.memory_space<vmem>>, %arg7: memref<1x384xf32, #tpu.memory_space<vmem>>, %arg8: memref<128x128xbf16, #tpu.memory_space<vmem>>, %arg9: memref<1x128xf32, #tpu.memory_space<vmem>>, %arg10: memref<1x128xf32, #tpu.memory_space<vmem>>, %arg11: memref<1x128xf32, #tpu.memory_space<vmem>>, %arg12: memref<128x256xbf16, #tpu.memory_space<vmem>>, %arg13: memref<1x256xf32, #tpu.memory_space<vmem>>, %arg14: memref<256x128xbf16, #tpu.memory_space<vmem>>, %arg15: memref<1x128xf32, #tpu.memory_space<vmem>>, %arg16: memref<1x128xf32, #tpu.memory_space<vmem>>, %arg17: memref<1x128xf32, #tpu.memory_space<vmem>>, %arg18: memref<1x256x128xbf16, #tpu.memory_space<vmem>>, %arg19: memref<1x1x128xf32, #tpu.memory_space<vmem>>) attributes {dimension_semantics = [#tpu.dimension_semantics<parallel>], iteration_bounds = array<i64: 2>, scalar_prefetch = 0 : i64, scratch_operands = 0 : i64, tpu.core_type = #tpu.core_type<tc>, window_params = [{transform_indices = @transform_0, window_bounds = array<i64: 1, 1, 256>}, {transform_indices = @transform_1, window_bounds = array<i64: 1, 256, 128>}, {transform_indices = @transform_2, window_bounds = array<i64: 1, 1, 256>}, {pipeline_mode = #tpu.pipeline_mode<synchronous>, transform_indices = @transform_3, window_bounds = array<i64: 1, 128>}, {pipeline_mode = #tpu.pipeline_mode<synchronous>, transform_indices = @transform_4, window_bounds = array<i64: 1, 128>}, {pipeline_mode = #tpu.pipeline_mode<synchronous>, transform_indices = @transform_5, window_bounds = array<i64: 128, 384>}, {pipeline_mode = #tpu.pipeline_mode<synchronous>, transform_indices = @transform_6, window_bounds = array<i64: 1, 384>}, {pipeline_mode = #tpu.pipeline_mode<synchronous>, transform_indices = @transform_7, window_bounds = array<i64: 128, 128>}, {pipeline_mode = #tpu.pipeline_mode<synchronous>, transform_indices = @transform_8, window_bounds = array<i64: 1, 128>}, {pipeline_mode = #tpu.pipeline_mode<synchronous>, transform_indices = @transform_9, window_bounds = array<i64: 1, 128>}, {pipeline_mode = #tpu.pipeline_mode<synchronous>, transform_indices = @transform_10, window_bounds = array<i64: 1, 128>}, {pipeline_mode = #tpu.pipeline_mode<synchronous>, transform_indices = @transform_11, window_bounds = array<i64: 128, 256>}, {pipeline_mode = #tpu.pipeline_mode<synchronous>, transform_indices = @transform_12, window_bounds = array<i64: 1, 256>}, {pipeline_mode = #tpu.pipeline_mode<synchronous>, transform_indices = @transform_13, window_bounds = array<i64: 256, 128>}, {pipeline_mode = #tpu.pipeline_mode<synchronous>, transform_indices = @transform_14, window_bounds = array<i64: 1, 128>}, {pipeline_mode = #tpu.pipeline_mode<synchronous>, transform_indices = @transform_15, window_bounds = array<i64: 1, 128>}, {pipeline_mode = #tpu.pipeline_mode<synchronous>, transform_indices = @transform_16, window_bounds = array<i64: 1, 128>}, {transform_indices = @transform_17, window_bounds = array<i64: 1, 256, 128>}, {transform_indices = @transform_18, window_bounds = array<i64: 1, 1, 128>}]} {
    %c0 = arith.constant 0 : index
    %c0_0 = arith.constant 0 : index
    %c0_1 = arith.constant 0 : index
    %0 = vector.load %arg1[%c0, %c0_0, %c0_1] : memref<1x1x256xf32, #tpu.memory_space<vmem>>, vector<1x1x256xf32>
    %1 = vector.shape_cast %0 : vector<1x1x256xf32> to vector<1x256xf32>
    %2 = vector.shape_cast %1 : vector<1x256xf32> to vector<1x256xf32>
    %3 = vector.broadcast %2 : vector<1x256xf32> to vector<128x256xf32>
    %4 = tpu.transpose %3, [1, 0] : vector<128x256xf32> -> vector<256x128xf32>
    %c0_2 = arith.constant 0 : index
    %c0_3 = arith.constant 0 : index
    %c0_4 = arith.constant 0 : index
    %5 = vector.load %arg2[%c0_2, %c0_3, %c0_4] : memref<1x256x128xbf16, #tpu.memory_space<vmem>>, vector<1x256x128xbf16>
    %6 = vector.shape_cast %5 : vector<1x256x128xbf16> to vector<256x128xbf16>
    %7 = arith.extf %6 : vector<256x128xbf16> to vector<256x128xf32>
    %c0_5 = arith.constant 0 : index
    %c0_6 = arith.constant 0 : index
    %8 = vector.load %arg4[%c0_5, %c0_6] : memref<1x128xf32, #tpu.memory_space<vmem>>, vector<1x128xf32>
    %9 = vector.broadcast %8 : vector<1x128xf32> to vector<256x128xf32>
    %10 = arith.mulf %4, %9 : vector<256x128xf32>
    %c0_7 = arith.constant 0 : index
    %c0_8 = arith.constant 0 : index
    %11 = vector.load %arg5[%c0_7, %c0_8] : memref<1x128xf32, #tpu.memory_space<vmem>>, vector<1x128xf32>
    %12 = vector.broadcast %11 : vector<1x128xf32> to vector<256x128xf32>
    %13 = arith.addf %10, %12 : vector<256x128xf32>
    %14 = arith.addf %13, %7 : vector<256x128xf32>
    %15 = arith.truncf %14 : vector<256x128xf32> to vector<256x128xbf16>
    %c0_9 = arith.constant 0 : index
    %c0_10 = arith.constant 0 : index
    %16 = vector.load %arg6[%c0_9, %c0_10] : memref<128x384xbf16, #tpu.memory_space<vmem>>, vector<128x384xbf16>
    %cst = arith.constant dense<0.000000e+00> : vector<256x384xf32>
    %17 = tpu.matmul %15, %16, %cst {dimension_numbers = #tpu.dot_dimension_numbers<[1], [0], [0], [1], [0, 0, 1, 1], [], []>} : vector<256x128xbf16>, vector<128x384xbf16>, vector<256x384xf32> -> vector<256x384xf32>
    %c0_11 = arith.constant 0 : index
    %c0_12 = arith.constant 0 : index
    %18 = vector.load %arg7[%c0_11, %c0_12] : memref<1x384xf32, #tpu.memory_space<vmem>>, vector<1x384xf32>
    %19 = vector.broadcast %18 : vector<1x384xf32> to vector<256x384xf32>
    %20 = arith.addf %17, %19 : vector<256x384xf32>
    %21 = vector.extract_strided_slice %20 {offsets = [0, 0], sizes = [256, 128], strides = [1, 1]} : vector<256x384xf32> to vector<256x128xf32>
    %22 = vector.extract_strided_slice %20 {offsets = [0, 128], sizes = [256, 128], strides = [1, 1]} : vector<256x384xf32> to vector<256x128xf32>
    %23 = vector.extract_strided_slice %20 {offsets = [0, 256], sizes = [256, 128], strides = [1, 1]} : vector<256x384xf32> to vector<256x128xf32>
    %24 = arith.truncf %21 : vector<256x128xf32> to vector<256x128xbf16>
    %25 = arith.truncf %22 : vector<256x128xf32> to vector<256x128xbf16>
    %cst_13 = arith.constant dense<0.000000e+00> : vector<256x256xf32>
    %26 = tpu.matmul %24, %25, %cst_13 {dimension_numbers = #tpu.dot_dimension_numbers<[1], [1], [0], [0], [0, 0, 1, 0], [], []>} : vector<256x128xbf16>, vector<256x128xbf16>, vector<256x256xf32> -> vector<256x256xf32>
    %c0_14 = arith.constant 0 : index
    %c0_15 = arith.constant 0 : index
    %c0_16 = arith.constant 0 : index
    %27 = vector.load %arg3[%c0_14, %c0_15, %c0_16] : memref<1x1x256xf32, #tpu.memory_space<vmem>>, vector<1x1x256xf32>
    %28 = vector.shape_cast %27 : vector<1x1x256xf32> to vector<1x256xf32>
    %cst_17 = arith.constant 5.000000e-01 : f32
    %29 = vector.broadcast %cst_17 : f32 to vector<1x256xf32>
    %30 = arith.cmpf ogt, %28, %29 : vector<1x256xf32>
    %cst_18 = arith.constant -1.000000e+30 : f32
    %31 = vector.shape_cast %30 : vector<1x256xi1> to vector<1x256xi1>
    %32 = vector.broadcast %31 : vector<1x256xi1> to vector<256x256xi1>
    %33 = vector.broadcast %cst_18 : f32 to vector<256x256xf32>
    %34 = arith.select %32, %33, %26 : vector<256x256xi1>, vector<256x256xf32>
    %cst_19 = arith.constant dense<0xFF800000> : vector<256xf32>
    %35 = vector.multi_reduction <maximumf>, %34, %cst_19 [1] : vector<256x256xf32> to vector<256xf32>
    %36 = vector.shape_cast %35 : vector<256xf32> to vector<256x1xf32>
    %37 = vector.broadcast %36 : vector<256x1xf32> to vector<256x256xf32>
    %38 = arith.subf %34, %37 : vector<256x256xf32>
    %39 = math.exp %38 : vector<256x256xf32>
    %cst_20 = arith.constant dense<0.000000e+00> : vector<256xf32>
    %40 = vector.multi_reduction <add>, %39, %cst_20 [1] : vector<256x256xf32> to vector<256xf32>
    %41 = vector.shape_cast %40 : vector<256xf32> to vector<256x1xf32>
    %42 = tpu.reciprocal %41 {approx = true} : vector<256x1xf32> -> vector<256x1xf32>
    %43 = vector.broadcast %42 : vector<256x1xf32> to vector<256x256xf32>
    %44 = arith.mulf %39, %43 : vector<256x256xf32>
    %45 = arith.truncf %44 : vector<256x256xf32> to vector<256x256xbf16>
    %46 = arith.truncf %23 : vector<256x128xf32> to vector<256x128xbf16>
    %cst_21 = arith.constant dense<0.000000e+00> : vector<256x128xf32>
    %47 = tpu.matmul %45, %46, %cst_21 {dimension_numbers = #tpu.dot_dimension_numbers<[1], [0], [0], [1], [0, 0, 1, 1], [], []>} : vector<256x256xbf16>, vector<256x128xbf16>, vector<256x128xf32> -> vector<256x128xf32>
    %48 = arith.truncf %47 : vector<256x128xf32> to vector<256x128xbf16>
    %c0_22 = arith.constant 0 : index
    %c0_23 = arith.constant 0 : index
    %49 = vector.load %arg8[%c0_22, %c0_23] : memref<128x128xbf16, #tpu.memory_space<vmem>>, vector<128x128xbf16>
    %cst_24 = arith.constant dense<0.000000e+00> : vector<256x128xf32>
    %50 = tpu.matmul %48, %49, %cst_24 {dimension_numbers = #tpu.dot_dimension_numbers<[1], [0], [0], [1], [0, 0, 1, 1], [], []>} : vector<256x128xbf16>, vector<128x128xbf16>, vector<256x128xf32> -> vector<256x128xf32>
    %c0_25 = arith.constant 0 : index
    %c0_26 = arith.constant 0 : index
    %51 = vector.load %arg9[%c0_25, %c0_26] : memref<1x128xf32, #tpu.memory_space<vmem>>, vector<1x128xf32>
    %52 = vector.broadcast %51 : vector<1x128xf32> to vector<256x128xf32>
    %53 = arith.addf %50, %52 : vector<256x128xf32>
    %54 = arith.addf %14, %53 : vector<256x128xf32>
    %cst_27 = arith.constant dense<0.000000e+00> : vector<256xf32>
    %55 = vector.multi_reduction <add>, %54, %cst_27 [1] : vector<256x128xf32> to vector<256xf32>
    %56 = vector.shape_cast %55 : vector<256xf32> to vector<256x1xf32>
    %cst_28 = arith.constant 1.280000e+02 : f32
    %57 = vector.broadcast %cst_28 : f32 to vector<256x1xf32>
    %58 = arith.divf %56, %57 : vector<256x1xf32>
    %59 = vector.broadcast %58 : vector<256x1xf32> to vector<256x128xf32>
    %60 = arith.subf %54, %59 : vector<256x128xf32>
    %61 = arith.mulf %60, %60 : vector<256x128xf32>
    %cst_29 = arith.constant dense<0.000000e+00> : vector<256xf32>
    %62 = vector.multi_reduction <add>, %61, %cst_29 [1] : vector<256x128xf32> to vector<256xf32>
    %63 = vector.shape_cast %62 : vector<256xf32> to vector<256x1xf32>
    %cst_30 = arith.constant 1.280000e+02 : f32
    %64 = vector.broadcast %cst_30 : f32 to vector<256x1xf32>
    %65 = arith.divf %63, %64 : vector<256x1xf32>
    %66 = vector.broadcast %58 : vector<256x1xf32> to vector<256x128xf32>
    %67 = arith.subf %54, %66 : vector<256x128xf32>
    %cst_31 = arith.constant 9.99999974E-6 : f32
    %68 = vector.broadcast %cst_31 : f32 to vector<256x1xf32>
    %69 = arith.addf %65, %68 : vector<256x1xf32>
    %70 = math.rsqrt %69 : vector<256x1xf32>
    %71 = vector.broadcast %70 : vector<256x1xf32> to vector<256x128xf32>
    %72 = arith.mulf %67, %71 : vector<256x128xf32>
    %c0_32 = arith.constant 0 : index
    %c0_33 = arith.constant 0 : index
    %73 = vector.load %arg10[%c0_32, %c0_33] : memref<1x128xf32, #tpu.memory_space<vmem>>, vector<1x128xf32>
    %74 = vector.broadcast %73 : vector<1x128xf32> to vector<256x128xf32>
    %75 = arith.mulf %72, %74 : vector<256x128xf32>
    %c0_34 = arith.constant 0 : index
    %c0_35 = arith.constant 0 : index
    %76 = vector.load %arg11[%c0_34, %c0_35] : memref<1x128xf32, #tpu.memory_space<vmem>>, vector<1x128xf32>
    %77 = vector.broadcast %76 : vector<1x128xf32> to vector<256x128xf32>
    %78 = arith.addf %75, %77 : vector<256x128xf32>
    %79 = arith.truncf %78 : vector<256x128xf32> to vector<256x128xbf16>
    %c0_36 = arith.constant 0 : index
    %c0_37 = arith.constant 0 : index
    %80 = vector.load %arg12[%c0_36, %c0_37] : memref<128x256xbf16, #tpu.memory_space<vmem>>, vector<128x256xbf16>
    %cst_38 = arith.constant dense<0.000000e+00> : vector<256x256xf32>
    %81 = tpu.matmul %79, %80, %cst_38 {dimension_numbers = #tpu.dot_dimension_numbers<[1], [0], [0], [1], [0, 0, 1, 1], [], []>} : vector<256x128xbf16>, vector<128x256xbf16>, vector<256x256xf32> -> vector<256x256xf32>
    %c0_39 = arith.constant 0 : index
    %c0_40 = arith.constant 0 : index
    %82 = vector.load %arg13[%c0_39, %c0_40] : memref<1x256xf32, #tpu.memory_space<vmem>>, vector<1x256xf32>
    %83 = vector.broadcast %82 : vector<1x256xf32> to vector<256x256xf32>
    %84 = arith.addf %81, %83 : vector<256x256xf32>
    %cst_41 = arith.constant 0.000000e+00 : f32
    %85 = vector.broadcast %cst_41 : f32 to vector<256x256xf32>
    %86 = arith.maximumf %84, %85 : vector<256x256xf32>
    %87 = arith.truncf %86 : vector<256x256xf32> to vector<256x256xbf16>
    %c0_42 = arith.constant 0 : index
    %c0_43 = arith.constant 0 : index
    %88 = vector.load %arg14[%c0_42, %c0_43] : memref<256x128xbf16, #tpu.memory_space<vmem>>, vector<256x128xbf16>
    %cst_44 = arith.constant dense<0.000000e+00> : vector<256x128xf32>
    %89 = tpu.matmul %87, %88, %cst_44 {dimension_numbers = #tpu.dot_dimension_numbers<[1], [0], [0], [1], [0, 0, 1, 1], [], []>} : vector<256x256xbf16>, vector<256x128xbf16>, vector<256x128xf32> -> vector<256x128xf32>
    %c0_45 = arith.constant 0 : index
    %c0_46 = arith.constant 0 : index
    %90 = vector.load %arg15[%c0_45, %c0_46] : memref<1x128xf32, #tpu.memory_space<vmem>>, vector<1x128xf32>
    %91 = vector.broadcast %90 : vector<1x128xf32> to vector<256x128xf32>
    %92 = arith.addf %89, %91 : vector<256x128xf32>
    %93 = arith.addf %78, %92 : vector<256x128xf32>
    %cst_47 = arith.constant dense<0.000000e+00> : vector<256xf32>
    %94 = vector.multi_reduction <add>, %93, %cst_47 [1] : vector<256x128xf32> to vector<256xf32>
    %95 = vector.shape_cast %94 : vector<256xf32> to vector<256x1xf32>
    %cst_48 = arith.constant 1.280000e+02 : f32
    %96 = vector.broadcast %cst_48 : f32 to vector<256x1xf32>
    %97 = arith.divf %95, %96 : vector<256x1xf32>
    %98 = vector.broadcast %97 : vector<256x1xf32> to vector<256x128xf32>
    %99 = arith.subf %93, %98 : vector<256x128xf32>
    %100 = arith.mulf %99, %99 : vector<256x128xf32>
    %cst_49 = arith.constant dense<0.000000e+00> : vector<256xf32>
    %101 = vector.multi_reduction <add>, %100, %cst_49 [1] : vector<256x128xf32> to vector<256xf32>
    %102 = vector.shape_cast %101 : vector<256xf32> to vector<256x1xf32>
    %cst_50 = arith.constant 1.280000e+02 : f32
    %103 = vector.broadcast %cst_50 : f32 to vector<256x1xf32>
    %104 = arith.divf %102, %103 : vector<256x1xf32>
    %105 = vector.broadcast %97 : vector<256x1xf32> to vector<256x128xf32>
    %106 = arith.subf %93, %105 : vector<256x128xf32>
    %cst_51 = arith.constant 9.99999974E-6 : f32
    %107 = vector.broadcast %cst_51 : f32 to vector<256x1xf32>
    %108 = arith.addf %104, %107 : vector<256x1xf32>
    %109 = math.rsqrt %108 : vector<256x1xf32>
    %110 = vector.broadcast %109 : vector<256x1xf32> to vector<256x128xf32>
    %111 = arith.mulf %106, %110 : vector<256x128xf32>
    %c0_52 = arith.constant 0 : index
    %c0_53 = arith.constant 0 : index
    %112 = vector.load %arg16[%c0_52, %c0_53] : memref<1x128xf32, #tpu.memory_space<vmem>>, vector<1x128xf32>
    %113 = vector.broadcast %112 : vector<1x128xf32> to vector<256x128xf32>
    %114 = arith.mulf %111, %113 : vector<256x128xf32>
    %c0_54 = arith.constant 0 : index
    %c0_55 = arith.constant 0 : index
    %115 = vector.load %arg17[%c0_54, %c0_55] : memref<1x128xf32, #tpu.memory_space<vmem>>, vector<1x128xf32>
    %116 = vector.broadcast %115 : vector<1x128xf32> to vector<256x128xf32>
    %117 = arith.addf %114, %116 : vector<256x128xf32>
    %118 = arith.truncf %117 : vector<256x128xf32> to vector<256x128xbf16>
    %119 = vector.shape_cast %118 : vector<256x128xbf16> to vector<1x256x128xbf16>
    %c0_56 = arith.constant 0 : index
    %c0_57 = arith.constant 0 : index
    %c0_58 = arith.constant 0 : index
    %120 = vector.load %arg18[%c0_56, %c0_57, %c0_58] : memref<1x256x128xbf16, #tpu.memory_space<vmem>>, vector<1x256x128xbf16>
    tpu.vector_store %arg18[%c0_56, %c0_57, %c0_58], %119 {strides = array<i32>} : memref<1x256x128xbf16, #tpu.memory_space<vmem>>, vector<1x256x128xbf16>,
    %c0_59 = arith.constant 0 : index
    %c0_60 = arith.constant 0 : index
    %c0_61 = arith.constant 0 : index
    %121 = vector.load %arg3[%c0_59, %c0_60, %c0_61] : memref<1x1x256xf32, #tpu.memory_space<vmem>>, vector<1x1x256xf32>
    %122 = vector.shape_cast %121 : vector<1x1x256xf32> to vector<1x256xf32>
    %cst_62 = arith.constant 1.000000e+00 : f32
    %123 = vector.broadcast %cst_62 : f32 to vector<1x256xf32>
    %124 = arith.subf %123, %122 : vector<1x256xf32>
    %cst_63 = arith.constant dense<0.000000e+00> : vector<1xf32>
    %125 = vector.multi_reduction <add>, %124, %cst_63 [1] : vector<1x256xf32> to vector<1xf32>
    %126 = vector.shape_cast %125 : vector<1xf32> to vector<1x1xf32>
    %cst_64 = arith.constant 1.000000e+00 : f32
    %127 = vector.broadcast %cst_64 : f32 to vector<1x1xf32>
    %128 = arith.maximumf %126, %127 : vector<1x1xf32>
    %129 = arith.truncf %124 : vector<1x256xf32> to vector<1x256xbf16>
    %cst_65 = arith.constant dense<0.000000e+00> : vector<1x128xf32>
    %130 = tpu.matmul %129, %118, %cst_65 {dimension_numbers = #tpu.dot_dimension_numbers<[1], [0], [0], [1], [0, 0, 1, 1], [], []>} : vector<1x256xbf16>, vector<256x128xbf16>, vector<1x128xf32> -> vector<1x128xf32>
    %131 = tpu.reciprocal %128 {approx = true} : vector<1x1xf32> -> vector<1x1xf32>
    %132 = vector.broadcast %131 : vector<1x1xf32> to vector<1x128xf32>
    %133 = arith.mulf %130, %132 : vector<1x128xf32>
    %134 = vector.shape_cast %133 : vector<1x128xf32> to vector<1x1x128xf32>
    %c0_66 = arith.constant 0 : index
    %c0_67 = arith.constant 0 : index
    %c0_68 = arith.constant 0 : index
    %135 = vector.load %arg19[%c0_66, %c0_67, %c0_68] : memref<1x1x128xf32, #tpu.memory_space<vmem>>, vector<1x1x128xf32>
    tpu.vector_store %arg19[%c0_66, %c0_67, %c0_68], %134 {strides = array<i32>} : memref<1x1x128xf32, #tpu.memory_space<vmem>>, vector<1x1x128xf32>,
    return
  }
  func.func @transform_0(%arg0: i32) -> (i32, i32, i32) {
    %c0_i32 = arith.constant 0 : i32
    %c0_i32_0 = arith.constant 0 : i32
    %c0_i32_1 = arith.constant 0 : i32
    return %arg0, %c0_i32, %c0_i32_0 : i32, i32, i32
  }
  func.func @transform_1(%arg0: i32) -> (i32, i32, i32) {
    %c0_i32 = arith.constant 0 : i32
    %c0_i32_0 = arith.constant 0 : i32
    %c0_i32_1 = arith.constant 0 : i32
    return %arg0, %c0_i32, %c0_i32_0 : i32, i32, i32
  }
  func.func @transform_2(%arg0: i32) -> (i32, i32, i32) {
    %c0_i32 = arith.constant 0 : i32
    %c0_i32_0 = arith.constant 0 : i32
    %c0_i32_1 = arith.constant 0 : i32
    return %arg0, %c0_i32, %c0_i32_0 : i32, i32, i32
  }
  func.func @transform_3(%arg0: i32) -> (i32, i32) {
    %c0_i32 = arith.constant 0 : i32
    %c0_i32_0 = arith.constant 0 : i32
    %c0_i32_1 = arith.constant 0 : i32
    return %c0_i32, %c0_i32_0 : i32, i32
  }
  func.func @transform_4(%arg0: i32) -> (i32, i32) {
    %c0_i32 = arith.constant 0 : i32
    %c0_i32_0 = arith.constant 0 : i32
    %c0_i32_1 = arith.constant 0 : i32
    return %c0_i32, %c0_i32_0 : i32, i32
  }
  func.func @transform_5(%arg0: i32) -> (i32, i32) {
    %c0_i32 = arith.constant 0 : i32
    %c0_i32_0 = arith.constant 0 : i32
    %c0_i32_1 = arith.constant 0 : i32
    return %c0_i32, %c0_i32_0 : i32, i32
  }
  func.func @transform_6(%arg0: i32) -> (i32, i32) {
    %c0_i32 = arith.constant 0 : i32
    %c0_i32_0 = arith.constant 0 : i32
    %c0_i32_1 = arith.constant 0 : i32
    return %c0_i32, %c0_i32_0 : i32, i32
  }
  func.func @transform_7(%arg0: i32) -> (i32, i32) {
    %c0_i32 = arith.constant 0 : i32
    %c0_i32_0 = arith.constant 0 : i32
    %c0_i32_1 = arith.constant 0 : i32
    return %c0_i32, %c0_i32_0 : i32, i32
  }
  func.func @transform_8(%arg0: i32) -> (i32, i32) {
    %c0_i32 = arith.constant 0 : i32
    %c0_i32_0 = arith.constant 0 : i32
    %c0_i32_1 = arith.constant 0 : i32
    return %c0_i32, %c0_i32_0 : i32, i32
  }
  func.func @transform_9(%arg0: i32) -> (i32, i32) {
    %c0_i32 = arith.constant 0 : i32
    %c0_i32_0 = arith.constant 0 : i32
    %c0_i32_1 = arith.constant 0 : i32
    return %c0_i32, %c0_i32_0 : i32, i32
  }
  func.func @transform_10(%arg0: i32) -> (i32, i32) {
    %c0_i32 = arith.constant 0 : i32
    %c0_i32_0 = arith.constant 0 : i32
    %c0_i32_1 = arith.constant 0 : i32
    return %c0_i32, %c0_i32_0 : i32, i32
  }
  func.func @transform_11(%arg0: i32) -> (i32, i32) {
    %c0_i32 = arith.constant 0 : i32
    %c0_i32_0 = arith.constant 0 : i32
    %c0_i32_1 = arith.constant 0 : i32
    return %c0_i32, %c0_i32_0 : i32, i32
  }
  func.func @transform_12(%arg0: i32) -> (i32, i32) {
    %c0_i32 = arith.constant 0 : i32
    %c0_i32_0 = arith.constant 0 : i32
    %c0_i32_1 = arith.constant 0 : i32
    return %c0_i32, %c0_i32_0 : i32, i32
  }
  func.func @transform_13(%arg0: i32) -> (i32, i32) {
    %c0_i32 = arith.constant 0 : i32
    %c0_i32_0 = arith.constant 0 : i32
    %c0_i32_1 = arith.constant 0 : i32
    return %c0_i32, %c0_i32_0 : i32, i32
  }
  func.func @transform_14(%arg0: i32) -> (i32, i32) {
    %c0_i32 = arith.constant 0 : i32
    %c0_i32_0 = arith.constant 0 : i32
    %c0_i32_1 = arith.constant 0 : i32
    return %c0_i32, %c0_i32_0 : i32, i32
  }
  func.func @transform_15(%arg0: i32) -> (i32, i32) {
    %c0_i32 = arith.constant 0 : i32
    %c0_i32_0 = arith.constant 0 : i32
    %c0_i32_1 = arith.constant 0 : i32
    return %c0_i32, %c0_i32_0 : i32, i32
  }
  func.func @transform_16(%arg0: i32) -> (i32, i32) {
    %c0_i32 = arith.constant 0 : i32
    %c0_i32_0 = arith.constant 0 : i32
    %c0_i32_1 = arith.constant 0 : i32
    return %c0_i32, %c0_i32_0 : i32, i32
  }
  func.func @transform_17(%arg0: i32) -> (i32, i32, i32) {
    %c0_i32 = arith.constant 0 : i32
    %c0_i32_0 = arith.constant 0 : i32
    %c0_i32_1 = arith.constant 0 : i32
    return %arg0, %c0_i32, %c0_i32_0 : i32, i32, i32
  }
  func.func @transform_18(%arg0: i32) -> (i32, i32, i32) {
    %c0_i32 = arith.constant 0 : i32
    %c0_i32_0 = arith.constant 0 : i32
    %c0_i32_1 = arith.constant 0 : i32
    return %arg0, %c0_i32, %c0_i32_0 : i32, i32, i32
  }
}

</mosaic_0001>

<bundles_post_ra>
// kernel: tpu_custom_call.1
= control target key start
LH: loop header
LB: loop body
LE: loop exit
PB: predicated region body
PF: predicated region fallthrough
CT: control target
= control target key end

     0   :  { %s9399_s0 = inlined_call_operand.hbm [shape: f32[2,1,256], index: 0, kind: input, shape index: {}]   ;;  %s9400_s1 = inlined_call_operand.hbm [shape: bf16[2,256,128], index: 1, kind: input, shape index: {}]   ;;  %s9401_s2 = inlined_call_operand.hbm [shape: f32[2,1,256], index: 2, kind: input, shape index: {}]   ;;  %s9402_s3 = inlined_call_operand.hbm [shape: f32[1,128], index: 3, kind: input, shape index: {}]   ;;  %s9403_s4 = inlined_call_operand.vmem [shape: f32[1,128], index: 4, kind: input, shape index: {}]   ;;  %s9404_s5 = inlined_call_operand.hbm [shape: bf16[128,384], index: 5, kind: input, shape index: {}]   ;;  %s9405_s6 = inlined_call_operand.vmem [shape: f32[1,384], index: 6, kind: input, shape index: {}]   ;;  %s9406_s7 = inlined_call_operand.hbm [shape: bf16[128,128], index: 7, kind: input, shape index: {}]   ;;  %s9407_s8 = inlined_call_operand.vmem [shape: f32[1,128], index: 8, kind: input, shape index: {}]   ;;  %s9408_s9 = inlined_call_operand.vmem [shape: f32[1,128], index: 9, kind: input, shape index: {}]   ;;  %s9409_s10 = inlined_call_operand.vmem [shape: f32[1,128], index: 10, kind: input, shape index: {}]   ;;  %s9410_s11 = inlined_call_operand.hbm [shape: bf16[128,256], index: 11, kind: input, shape index: {}]   ;;  %s9411_s12 = inlined_call_operand.vmem [shape: f32[1,256], index: 12, kind: input, shape index: {}]   ;;  %s9412_s13 = inlined_call_operand.hbm [shape: bf16[256,128], index: 13, kind: input, shape index: {}]   ;;  %s9413_s14 = inlined_call_operand.vmem [shape: f32[1,128], index: 14, kind: input, shape index: {}]   ;;  %s9414_s15 = inlined_call_operand.vmem [shape: f32[1,128], index: 15, kind: input, shape index: {}]   ;;  %s9415_s16 = inlined_call_operand.vmem [shape: f32[1,128], index: 16, kind: input, shape index: {}]   ;;  %s9416_s17 = inlined_call_operand.hbm [shape: bf16[2,256,128], index: 17, kind: output, shape index: {0}]   ;;  %s9417_s18 = inlined_call_operand.hbm [shape: f32[2,1,128], index: 18, kind: output, shape index: {1}]  }
   0x1   :  { %9523 = sst [smem:[#allocation85_spill]] %s9399_s0 }
   0x2   :  { %9524 = sst [smem:[#allocation86_spill]] %s9400_s1 }
   0x3   :  { %9525 = sst [smem:[#allocation87_spill]] %s9401_s2 }
   0x4   :  { %9526 = sst [smem:[#allocation88_spill]] %s9402_s3 }
   0x5   :  { %9527 = sst [smem:[#allocation89_spill]] %s9404_s5 }
   0x6   :  { %9528 = sst [smem:[#allocation90_spill]] %s9406_s7 }
   0x7   :  { %9529 = sst [smem:[#allocation91_spill]] %s9410_s11 }
   0x8   :  { %9530 = sst [smem:[#allocation92_spill]] %s9411_s12 }
   0x9   :  { %9531 = sst [smem:[#allocation93_spill]] %s9413_s14 }
   0xa   :  { %9532 = sst [smem:[#allocation94_spill]] %s9414_s15 }
   0xb   :  { %9533 = sst [smem:[#allocation95_spill]] %s9415_s16 }
   0xc   :  { %9534 = sst [smem:[#allocation96_spill]] %s9416_s17 }
   0xd   :  { %9535 = sst [smem:[#allocation97_spill]] %s9417_s18 }
   0xe   :  { %24 = vsyncpa [#allocation3], 0 }
   0xf   :  { %26 = vsyncpa [#allocation3 + $0x1], 0 }
  0x10   :  { %27 = vsyncpa [#allocation6], 0 }
  0x11   :  { %29 = vsyncpa [#allocation6 + $0x1], 0 }
  0x12   :  { %30 = vsyncpa [#allocation9], 0 }
  0x13   :  { %31 = vsyncpa [#allocation12], 0 }
  0x14   :  { %32 = vsyncpa [#allocation15], 0 }
  0x15   :  { %33 = vsyncpa [#allocation4], 0 }
  0x16   :  { %35 = vsyncpa [#allocation4 + $0x1], 0 }
  0x17   :  { %36 = vsyncpa [#allocation18], 0 }
  0x18   :  { %38 = vsyncpa [#allocation18 + $0x1], 0  ;;  %s6615_s27 = smov 0   ;;  %s6617_s28 = smov 0  }
  0x19   :  { %s6619_s29 = smov 0   ;;  %s6621_s30 = smov 0  }
  0x1a LB: > { %9536 = sst [smem:[#allocation26_spill]] %s6487_s27  ;;  %s6501_s0 = smov [#allocation8]   ;;  %s6499_s30 = sphi %s6621_s30, %s9757_s30   ;;  %s6495_s29 = sphi %s6619_s29, %s9759_s29   ;;  %s6491_s28 = sphi %s6617_s28, %s9761_s28   ;;  %s6487_s27 = sphi %s6615_s27, %s9760_s27  }
  0x1b   : > { %9537 = sst [smem:[#allocation27_spill]] %s6495_s29  ;;  %s486_s19 = sshll.u32 %s6501_s0, 4  ;;  %s487_s19 = int_to_ptr.vmem [resolvable:$true] %s486_s19 }
  0x1c   : > { %s6636_s1 = sadd.s32 4294967295, %s6499_s30   ;;  %p4868_p0 = scmp.ge.s32.totalorder %s6499_s30, 1 }
  0x1d   : > { %p9421_p1 = scmp.eq.s32.totalorder %s6636_s1, 0  ;;  %p473_p2 = scmp.lt.s32.totalorder %s6499_s30, 3 }
  0x1e   : > { %s6502_s21 = smov [#allocation11]   ;;  %s6186_s24 = scalar_lea.vmem %s487_s19, 16 }
  0x1f   : > { %p6641_p3 = pnand %p4868_p0, %p473_p2  ;;  %s515_s22 = sshll.u32 %s6502_s21, 4  ;;  %s516_s22 = int_to_ptr.vmem [resolvable:$true] %s515_s22 }
  0x20   : > { %p6187_p8 = scmp.ne.s32.totalorder %s487_s19, %s6186_s24  ;;  %s6193_s25 = scalar_lea.vmem %s487_s19, 32 }
  0x21   : > { %s9538_s20 = scalar_select %p6641_p3, 1, 0 }
  0x22   : > { %p5682_p5 = pneg %p6641_p3  ;;  %p6194_p11 = scmp.lt.s32.totalorder %s487_s19, %s487_s19 }
  0x23   : > { %p6195_p12 = scmp.lt.s32.totalorder %s6193_s25, %s6186_s24 }
  0x24   : > { %p6650_p6 = pnand %p5682_p5, %p9421_p1 }
  0x25   : > { %p6196_p13 = por %p6195_p12, %p6194_p11 }
  0x26   : > { %s9539_s2 = scalar_select %p6650_p6, 1, 0 }
  0x27   : > { %p6656_p7 = pneg %p6650_p6 }
  0x29   : > { %s9540_s23 = scalar_select %p6656_p7, 1, 0 }
  0x2a   : > { %p6189_p9 = pnand %p6187_p8, %p6656_p7 }
  0x2c   : > { %p6190_p10 = pneg %p6189_p9 }
  0x2e   : > { %p6197_p0 = pnand %p6196_p13, %p6190_p10 }
  0x30   : > { %6200 = shalt.err (!%p6197_p0)
}
  0x31   : > { %s9541_s3 = sld [smem:[#allocation88_spill]]  ;;  %s6212_s21 = scalar_lea.vmem %s516_s22, 1024 }
  0x32   : > { %p6213_p2 = scmp.ne.s32.totalorder %s516_s22, %s6212_s21  ;;  %p6220_p8 = scmp.lt.s32.totalorder %s516_s22, %s516_s22 }
  0x33   : > { %p6221_p9 = scmp.lt.s32.totalorder %s6212_s21, %s6212_s21 }
  0x34   : > { %p6215_p5 = pnand %p6213_p2, %p6656_p7 }
  0x35   : > { %p6222_p1 = por %p6221_p9, %p6220_p8 }
  0x36   : > { %p6216_p4 = pneg %p6215_p5 }
  0x37   : > { %5685 = dma.hbm_to_vmem [thread:$0]  (!%p6650_p6), %s9541_s3, 16, %s487_s19, [#allocation9]  }
  0x38   : > { %p6223_p3 = pnand %p6222_p1, %p6216_p4 }
  0x3a   : > { %6226 = shalt.err (!%p6223_p3)
}
  0x3b   : > { %s9425_s24 = smov 64   ;;  %s9427_s19 = smov 4  }
  0x3c   : > { %s9542_s7 = sld [smem:[#allocation90_spill]]  ;;  %s4867_s0 = sadd.s32 4294967294, %s6499_s30  }
  0x3d   : > { %s6679_s21 = sadd.s32 1, %s6499_s30   ;;  %s51_s18 = sadd.s32 1, %s6495_s29 }
  0x3e   : > { %9543 = sst [smem:[#allocation28_spill]] %s6679_s21  ;;  %s48_s3 = ssub.s32 %s6499_s30, %s6679_s21 }
  0x3f   : > { %p49_p1 = scmp.eq.s32.totalorder %s48_s3, 0  ;;  %p58_p3 = scmp.ne.s32.totalorder %s6495_s29, %s6491_s28 }
  0x40   : > { %p59_p4 = scmp.eq.s32.totalorder %s6499_s30, 0  ;;  %p64_p10 = scmp.ne.s32.totalorder %s6491_s28, %s6487_s27 }
  0x41   : > { %s6690_s17 = scalar_select %p49_p1, %s6495_s29, %s51_s18  }
  0x42   : > { %5691 = dma.hbm_to_vmem [thread:$0]  (!%p6650_p6), %s9542_s7, 1024, %s516_s22, [#allocation12], %s9425_s24, %s9425_s24, %s9427_s19  }
  0x43   : > { %9544 = sst [smem:[#allocation29_spill]] %s6690_s17  ;;  %p60_p11 = por %p59_p4, %p58_p3 }
  0x44   : > { %p9545_p12 = scmp.eq.s32.totalorder %s6636_s1, 0  ;;  %p434_p0 = scmp.eq.s32.totalorder %s6636_s1, 1 }
  0x45   : > { %p440_p2 = scmp.eq.s32.totalorder %s4867_s0, 1  ;;  %p5720_p5 = scmp.lt.s32.totalorder %s6499_s30, 2 }
  0x46   : > { %p6694_p13 = por %p9545_p12, %p64_p10  ;;  %s6701_s22 = sand.u32 1, %s6495_s29  }
  0x47   : > { %p6703_p8 = por %p434_p0, %p58_p3  ;;  %p6707_p9 = por %p440_p2, %p64_p10 }
  0x48   : > { %s9546_s25 = scalar_select %p6694_p13, 1, 0 }
  0x49   : > { %s9547_s3 = scalar_select %p6703_p8, 1, 0 }
  0x4a   : > { %s9549_s26 = scalar_select %p6707_p9, 1, 0 }
  0x4b   : > { %9548 = sst [smem:[#allocation30_spill]] %s9547_s3  ;;  %p6711_p1 = pnand %p5720_p5, %p60_p11 }
  0x4c   : > { %9550 = sst [smem:[#allocation31_spill]] %s9549_s26  ;;  %s595_s24 = sand.u32 1, %s6499_s30  }
  0x4d   : > { %s4878_s19 = sshll.u32 %s6701_s22, 7  ;;  %s5005_s0 = sshll.u32 %s6499_s30, 11 }
  0x4e   : > { %s599_s7 = scalar_lea.vmem [#allocation5], %s4878_s19  ;;  %s9552_s27 = sld [smem:[#allocation86_spill]] }
  0x4f   : > { %s606_s17 = sshll.u32 %s599_s7, 4  ;;  %s6725_s26 = scalar_lea.sflag [#allocation6], %s595_s24  ;;  %s6723_s17 = int_to_ptr.vmem [resolvable:$true] %s606_s17 }
  0x50   : > { %p6731_p4 = pneg %p6711_p1 }
  0x54   : > { %s9553_s16 = smov %s9552_s27  ;;  %s6721_s15 = scalar_lea.hbm %s9552_s27, %s5005_s0 }
  0x55   : > { %s6227_s3 = scalar_lea.hbm %s6721_s15, 2048  ;;  %s6232_s29 = scalar_lea.hbm %s9553_s16, 4096 }
  0x56   : > { %p6228_p3 = scmp.ne.s32.totalorder %s6721_s15, %s6227_s3  ;;  %p6233_p12 = scmp.lt.s32.totalorder %s6721_s15, %s9553_s16 }
  0x57   : > { %p6234_p0 = scmp.lt.s32.totalorder %s6232_s29, %s6227_s3 }
  0x58   : > { %p6230_p10 = pnand %p6731_p4, %p6228_p3 }
  0x59   : > { %p6235_p2 = por %p6234_p0, %p6233_p12 }
  0x5a   : > { %p6231_p11 = pneg %p6230_p10 }
  0x5c   : > { %p6236_p5 = pnand %p6235_p2, %p6231_p11 }
  0x5e   : > { %6239 = shalt.err (!%p6236_p5)
}
  0x5f   : > { %s6240_s24 = scalar_lea.vmem %s6723_s17, 2048  ;;  %s6505_s0 = smov [#allocation5]  }
  0x60   : > { %p6241_p9 = scmp.ne.s32.totalorder %s6723_s17, %s6240_s24  ;;  %s6245_s7 = sshll.u32 %s6505_s0, 4  ;;  %s6246_s7 = int_to_ptr.vmem [resolvable:$false] %s6245_s7 }
  0x61   : > { %s6247_s27 = scalar_lea.vmem %s6246_s7, 4096  ;;  %p6248_p8 = scmp.lt.s32.totalorder %s6723_s17, %s6246_s7 }
  0x62   : > { %p6243_p3 = pnand %p6241_p9, %p6731_p4  ;;  %p6249_p13 = scmp.lt.s32.totalorder %s6247_s27, %s6240_s24 }
  0x64   : > { %p6244_p10 = pneg %p6243_p3  ;;  %p6250_p6 = por %p6249_p13, %p6248_p8 }
  0x66   : > { %p6251_p7 = pnand %p6250_p6, %p6244_p10 }
  0x68   : > { %6254 = shalt.err (!%p6251_p7)
}
  0x69   : > { %s9555_s3 = smov 4   ;;  %s9556_s29 = smov 64  }
  0x6a   : > { %5704 = dma.hbm_to_vmem [thread:$0]  (!%p6711_p1), %s6721_s15, 2048, %s6723_s17, %s6725_s26, %s9556_s29, %s9556_s29, %s9555_s3  }
  0x6b   : > { %s6506_s19 = smov [#allocation10]   ;;  %p9557_p11 = scmp.ne.s32.totalorder %s9540_s23, 0 }
  0x6c   : > { %s499_s21 = sshll.u32 %s6506_s19, 4  ;;  %s500_s21 = int_to_ptr.vmem [resolvable:$true] %s499_s21 }
  0x6d   : > { %s6266_s0 = scalar_lea.vmem %s500_s21, 3072  ;;  %p6274_p6 = scmp.lt.s32.totalorder %s500_s21, %s500_s21 }
  0x6e   : > { %p6267_p9 = scmp.ne.s32.totalorder %s500_s21, %s6266_s0  ;;  %p6275_p7 = scmp.lt.s32.totalorder %s6266_s0, %s6266_s0 }
  0x70   : > { %p6269_p12 = pnand %p6267_p9, %p9557_p11  ;;  %p6276_p8 = por %p6275_p7, %p6274_p6 }
  0x72   : > { %p6270_p13 = pneg %p6269_p12 }
  0x74   : > { %p6277_p0 = pnand %p6276_p8, %p6270_p13 }
  0x76   : > { %6280 = shalt.err (!%p6277_p0)
}
  0x77   : > { %s6507_s24 = smov 192   ;;  %s6508_s7 = smov 12  }
  0x78   : > { %p9558_p2 = scmp.ne.s32.totalorder %s9539_s2, 0  ;;  %s9559_s5 = sld [smem:[#allocation89_spill]] }
  0x79   : > { %s6509_s17 = smov [#allocation13]  }
  0x7a   : > { %s537_s19 = sshll.u32 %s6509_s17, 4  ;;  %s538_s19 = int_to_ptr.vmem [resolvable:$true] %s537_s19 }
  0x7b   : > { %s6292_s16 = scalar_lea.vmem %s538_s19, 2048  ;;  %p6300_p9 = scmp.lt.s32.totalorder %s538_s19, %s538_s19 }
  0x7c   : > { %p6293_p5 = scmp.ne.s32.totalorder %s538_s19, %s6292_s16  ;;  %p6301_p12 = scmp.lt.s32.totalorder %s6292_s16, %s6292_s16 }
  0x7e   : > { %5688 = dma.hbm_to_vmem [thread:$0]  (!%p9558_p2), %s9559_s5, 3072, %s500_s21, [#allocation9], %s6507_s24, %s6507_s24, %s6508_s7  }
  0x7f   : > { %p6295_p3 = pnand %p6293_p5, %p9557_p11  ;;  %p6302_p13 = por %p6301_p12, %p6300_p9 }
  0x81   : > { %p6296_p10 = pneg %p6295_p3 }
  0x83   : > { %p6303_p6 = pnand %p6302_p13, %p6296_p10 }
  0x85   : > { %6306 = shalt.err (!%p6303_p6)
}
  0x86   : > { %s6510_s0 = smov 128   ;;  %s6511_s12 = smov 8  }
  0x87   : > { %s9560_s11 = sld [smem:[#allocation91_spill]]  ;;  %s6512_s7 = smov [#allocation14]  }
  0x88   : > { %s553_s27 = sshll.u32 %s6512_s7, 4  ;;  %s9443_s15 = sshll.u32 %s6701_s22, 1  ;;  %s554_s27 = int_to_ptr.vmem [resolvable:$true] %s553_s27 }
  0x89   : > { %s6318_s17 = scalar_lea.vmem %s554_s27, 2048  ;;  %p6326_p5 = scmp.lt.s32.totalorder %s554_s27, %s554_s27 }
  0x8a   : > { %p6319_p7 = scmp.ne.s32.totalorder %s554_s27, %s6318_s17  ;;  %p6327_p3 = scmp.lt.s32.totalorder %s6318_s17, %s6318_s17 }
  0x8c   : > { %p6321_p8 = pnand %p6319_p7, %p9557_p11  ;;  %p6328_p10 = por %p6327_p3, %p6326_p5 }
  0x8d   : > { %5694 = dma.hbm_to_vmem [thread:$0]  (!%p9558_p2), %s9560_s11, 2048, %s538_s19, [#allocation12], %s6510_s0, %s6510_s0, %s6511_s12  }
  0x8e   : > { %p6322_p0 = pneg %p6321_p8 }
  0x90   : > { %p6329_p9 = pnand %p6328_p10, %p6322_p0 }
  0x92   : > { %6332 = shalt.err (!%p6329_p9)
}
  0x93   : > { %5697 = dma.hbm_to_vmem [thread:$0]  (!%p9558_p2), %s9412_s13, 2048, %s554_s27, [#allocation15], %s9556_s29, %s9556_s29, %s9555_s3  }
  0x94   : > { %s5004_s23 = sshll.u32 %s6499_s30, 5  ;;  %s580_s19 = scalar_lea.vmem [#allocation2], %s9443_s15 }
  0x95   : > { %s588_s0 = sshll.u32 %s580_s19, 4  ;;  %s9561_s2 = sld [smem:[#allocation85_spill]]  ;;  %s589_s0 = int_to_ptr.vmem [resolvable:$true] %s588_s0 }
  0x96   : > { %s577_s17 = scalar_lea.sflag [#allocation3], %s6701_s22 }
  0x9b   : > { %s586_s7 = scalar_lea.hbm %s9561_s2, %s5004_s23  ;;  %s6338_s3 = scalar_lea.hbm %s9561_s2, 64 }
  0x9c   : > { %s6333_s5 = scalar_lea.hbm %s586_s7, 32  ;;  %p6339_p2 = scmp.lt.s32.totalorder %s586_s7, %s9561_s2 }
  0x9d   : > { %p6334_p11 = scmp.ne.s32.totalorder %s586_s7, %s6333_s5  ;;  %p6340_p6 = scmp.lt.s32.totalorder %s6338_s3, %s6333_s5 }
  0x9f   : > { %p6336_p12 = pnand %p6334_p11, %p6731_p4  ;;  %p6341_p7 = por %p6340_p6, %p6339_p2 }
  0xa1   : > { %p6337_p13 = pneg %p6336_p12 }
  0xa3   : > { %p6342_p8 = pnand %p6341_p7, %p6337_p13 }
  0xa5   : > { %6345 = shalt.err (!%p6342_p8)
}
  0xa6   : > { %s6346_s19 = scalar_lea.vmem %s589_s0, 32  ;;  %s6513_s21 = smov [#allocation2]  }
  0xa7   : > { %p6347_p0 = scmp.ne.s32.totalorder %s589_s0, %s6346_s19  ;;  %s6351_s24 = sshll.u32 %s6513_s21, 4  ;;  %s6352_s24 = int_to_ptr.vmem [resolvable:$false] %s6351_s24 }
  0xa8   : > { %s6353_s15 = scalar_lea.vmem %s6352_s24, 64  ;;  %p6354_p10 = scmp.lt.s32.totalorder %s589_s0, %s6352_s24 }
  0xa9   : > { %p6349_p5 = pnand %p6347_p0, %p6731_p4  ;;  %p6355_p9 = scmp.lt.s32.totalorder %s6353_s15, %s6346_s19 }
  0xab   : > { %p6350_p3 = pneg %p6349_p5  ;;  %p6356_p11 = por %p6355_p9, %p6354_p10 }
  0xad   : > { %p6357_p12 = pnand %p6356_p11, %p6350_p3 }
  0xaf   : > { %6360 = shalt.err (!%p6357_p12)
}
  0xb0   : > { %5701 = dma.hbm_to_vmem [thread:$0]  (!%p6711_p1), %s586_s7, 32, %s589_s0, %s577_s17  }
  0xb1   : > { %s9562_s16 = sld [smem:[#allocation87_spill]]  ;;  %s9563_s29 = sshll.u32 %s6701_s22, 1 }
  0xb2   : > { %s620_s27 = scalar_lea.vmem [#allocation7], %s9563_s29 }
  0xb3   : > { %s628_s21 = sshll.u32 %s620_s27, 4  ;;  %s629_s21 = int_to_ptr.vmem [resolvable:$true] %s628_s21 }
  0xb7   : > { %s626_s3 = scalar_lea.hbm %s9562_s16, %s5004_s23  ;;  %s6366_s2 = scalar_lea.hbm %s9562_s16, 64 }
  0xb8   : > { %s6361_s24 = scalar_lea.hbm %s626_s3, 32  ;;  %p6367_p7 = scmp.lt.s32.totalorder %s626_s3, %s9562_s16 }
  0xb9   : > { %p6362_p13 = scmp.ne.s32.totalorder %s626_s3, %s6361_s24  ;;  %p6368_p8 = scmp.lt.s32.totalorder %s6366_s2, %s6361_s24 }
  0xbb   : > { %p6364_p2 = pnand %p6362_p13, %p6731_p4  ;;  %p6369_p0 = por %p6368_p8, %p6367_p7 }
  0xbd   : > { %p6365_p6 = pneg %p6364_p2 }
  0xbf   : > { %p6370_p5 = pnand %p6369_p0, %p6365_p6 }
  0xc1   : > { %6373 = shalt.err (!%p6370_p5)
}
  0xc2   : > { %s6374_s22 = scalar_lea.vmem %s629_s21, 32  ;;  %s6514_s23 = smov [#allocation7]  }
  0xc3   : > { %p6375_p3 = scmp.ne.s32.totalorder %s629_s21, %s6374_s22  ;;  %s6379_s7 = sshll.u32 %s6514_s23, 4  ;;  %s6380_s7 = int_to_ptr.vmem [resolvable:$false] %s6379_s7 }
  0xc4   : > { %s6381_s17 = scalar_lea.vmem %s6380_s7, 64  ;;  %p6382_p11 = scmp.lt.s32.totalorder %s629_s21, %s6380_s7 }
  0xc5   : > { %p6377_p10 = pnand %p6375_p3, %p6731_p4  ;;  %p6383_p12 = scmp.lt.s32.totalorder %s6381_s17, %s6374_s22 }
  0xc7   : > { %p6378_p9 = pneg %p6377_p10  ;;  %p6384_p13 = por %p6383_p12, %p6382_p11 }
  0xc9   : > { %p6385_p2 = pnand %p6384_p13, %p6378_p9 }
  0xcb   : > { %6388 = shalt.err (!%p6385_p2)
}
  0xcc   : > { %5707 = dma.hbm_to_vmem [thread:$0]  (!%p6711_p1), %s626_s3, 32, %s629_s21, %s6725_s26  }
  0xcd   : > { %p9564_p6 = scmp.ne.s32.totalorder %s9538_s20, 0 }
  0xcf   : > { %637 = sbr.rel (%p9564_p6) target bundleno = 3158 (0xc56), region = 88 }
  0xd4   : > { %s6826_s11 = sand.u32 1, %s6491_s28   ;;  %p9565_p4 = scmp.ne.s32.totalorder %s9546_s25, 0 }
  0xd5   : > { %s4885_s14 = sshll.u32 %s6826_s11, 1  ;;  %s640_s2 = scalar_lea.sflag [#allocation3], %s6826_s11 }
  0xd6   : > { %s643_s5 = scalar_lea.vmem [#allocation2], %s4885_s14 }
  0xd7   : > { %6458 = dma.done.wait (%p9565_p4), %s640_s2, 32  }
  0xd8   : > { %6460 = vsyncadd (%p9565_p4), %s640_s2, 4294967264  ;;  %s648_s20 = sand.u32 1, %s6636_s1   ;;  %s4886_s26 = sshll.u32 %s6826_s11, 7 }
  0xd9   : > { %s649_s18 = scalar_lea.sflag [#allocation6], %s648_s20  ;;  %s6838_s12 = scalar_lea.vmem [#allocation5], %s4886_s26 }
  0xda   : > { %6462 = dma.done.wait (%p9565_p4), %s649_s18, 2080  }
  0xdb   : > { %6464 = vsyncadd (%p9565_p4), %s649_s18, 4294965216  ;;  %s6844_s3 = scalar_lea.vmem [#allocation7], %s4885_s14  ;;  %p9566_p1 = scmp.eq.s32.totalorder %s6636_s1, 0 }
  0xdd   : > { %6466 = dma.done.wait (%p9566_p1), [#allocation9], 3088   ;;  %p9567_p7 = pmov %p9566_p1 }
  0xde   : > { %p9568_p8 = pmov %p9566_p1 }
  0xdf   : > { %6468 = vsyncadd (%p9567_p7), [#allocation9], 4294964208 }
  0xe0   : > { %6470 = dma.done.wait (%p9568_p8), [#allocation12], 3072   ;;  %p9569_p0 = pmov %p9566_p1 }
  0xe2   : > { %6472 = vsyncadd (%p9569_p0), [#allocation12], 4294964224  ;;  %p9570_p5 = pmov %p9569_p0 }
  0xe3   : > { %p9571_p3 = pmov %p9569_p0 }
  0xe4   : > { %6474 = dma.done.wait (%p9570_p5), [#allocation15], 2048  }
  0xe5   : > { %6476 = vsyncadd (%p9571_p3), [#allocation15], 4294965248  ;;  %v751_v0 = vlaneseq  ;;  %v9445_v1 = vmov 0   ;;  %v749_v6 = vld [vmem:[%s643_s5] sm:$0x3]  ;;  %v5041_v39 = vld [vmem:[%s6838_s12] sm:$0xff]  }
  0xe6   : > { %1224 = vmatprep.mubr.bf16.mxu0 %v9445_v1  ;;  %v6866_v7 = vld [vmem:[%s9405_s6] sm:$0x7]  ;;  %v5778_v14 = vld [vmem:[#allocation10 + $0x90] ss:$12 sps:$4 sm:$0xff]   ;;  %v5789_v20 = vld [vmem:[#allocation10 + $0x80] ss:$12 sps:$4 sm:$0xff]   ;;  %v5042_v42 = vunpack.c.l.bf16 %v5041_v39  ;;  %v5043_v44 = vunpack.c.h.bf16 %v5041_v39 }
  0xe7   : > { %v752_v2 = vshrl.u32 %v751_v0, 7  ;;  %v5773_v11 = vld [vmem:[#allocation10 + $0xac] ss:$12 sps:$4 sm:$0xff]   ;;  %v5775_v12 = vld [vmem:[#allocation10 + $0xa8] ss:$12 sps:$4 sm:$0xff]   ;;  %s9733_s14 = sld [smem:[#allocation92_spill]] }
  0xe8   : > { %v5776_v13 = vld [vmem:[#allocation10 + $0x94] ss:$12 sps:$4 sm:$0xff]   ;;  %1192 = vmatprep.subr.bf16.mxu0 %v5773_v11  ;;  %v5779_v15 = vld [vmem:[#allocation10 + $0x7c] ss:$12 sps:$4 sm:$0xff]   ;;  %v5782_v17 = vld [vmem:[#allocation10 + $0x78] ss:$12 sps:$4 sm:$0xff]  }
  0xe9   : > { %v6859_v3 = vsub.s32 0, %v752_v2  ;;  %v1059_v4 = vsub.s32 2, %v752_v2  ;;  %v6861_v5 = vsub.s32 1, %v752_v2  ;;  %1193 = vmatpush1.bf16.msra.mxu0 %v5775_v12  ;;  %v5781_v16 = vld [vmem:[#allocation10 + $0xb0] ss:$12 sps:$4 sm:$0xff]   ;;  %v5184_v53 = vld [vmem:[%s6838_s12 + $0x8] sm:$0xff]  }
  0xea   : > { %1194 = vmatprep.subr.bf16.mxu0 %v5776_v13  ;;  %5556 = vmatprep.subr.bf16.mxu1 %v5781_v16  ;;  %v5785_v18 = vld [vmem:[#allocation10 + $0x98] ss:$12 sps:$4 sm:$0xff]   ;;  %v5786_v21 = vld [vmem:[#allocation10 + $0x60] ss:$12 sps:$4 sm:$0xff]   ;;  %v5793_v23 = vld [vmem:[#allocation10 + $0x68] ss:$12 sps:$4 sm:$0xff]   ;;  %v5046_v58 = vunpack.c.l.bf16 %v5184_v53  ;;  %v5047_v60 = vunpack.c.h.bf16 %v5184_v53 }
  0xeb   : > { %9572 = vst [vmem:[#allocation32_spill] sm:$0xff] %v6859_v3  ;;  %9573 = vst [vmem:[#allocation33_spill] sm:$0xff] %v6861_v5  ;;  %v6869_v8 = vrot.slane %v749_v6, %v6859_v3  ;;  %v6872_v9 = vrot.slane %v6866_v7, %v1059_v4  ;;  %v6875_v10 = vrot.slane %v749_v6, %v6861_v5  ;;  %5557 = vmatpush3.bf16.msra.mxu1 %v5781_v16  ;;  %v5783_v19 = vld [vmem:[#allocation10 + $0x64] ss:$12 sps:$4 sm:$0xff]   ;;  %v5787_v22 = vld [vmem:[#allocation10 + $0x4c] ss:$12 sps:$4 sm:$0xff]  }
  0xec   : > { %5558 = vmatprep.subr.bf16.mxu1 %v5785_v18  ;;  %v5790_v24 = vld [vmem:[#allocation10 + $0x48] ss:$12 sps:$4 sm:$0xff]   ;;  %v5797_v26 = vld [vmem:[#allocation10 + $0x50] ss:$12 sps:$4 sm:$0xff]   ;;  %v5801_v29 = vld [vmem:[#allocation10 + $0x38] ss:$12 sps:$4 sm:$0xff]  }
  0xed   : > { %761 = vxpose.xlu0.b32.start [1/16] %v6869_v8, 128  ;;  %793 = vxpose.xlu1.b32.start [1/16] %v6875_v10, 128  ;;  %v5791_v25 = vld [vmem:[#allocation10 + $0x34] ss:$12 sps:$4 sm:$0xff]   ;;  %v5794_v27 = vld [vmem:[#allocation10 + $0x30] ss:$12 sps:$4 sm:$0xff]   ;;  %v5798_v30 = vld [vmem:[#allocation10 + $0x18] ss:$12 sps:$4 sm:$0xff]  }
  0xee   : > { %1195 = vmatpush1.bf16.msra.mxu0 %v5778_v14  ;;  %v5795_v28 = vld [vmem:[#allocation10 + $0x1c] ss:$12 sps:$4 sm:$0xff]   ;;  %v5799_v31 = vld [vmem:[#allocation10 + $0x4] ss:$12 sps:$4 sm:$0xff]   ;;  %v5803_v32 = vld [vmem:[#allocation10 + $0x20] ss:$12 sps:$4 sm:$0xff]  }
  0xef   : > { %1196 = vmatprep.subr.bf16.mxu0 %v5779_v15  ;;  %5559 = vmatpush3.bf16.msra.mxu1 %v5785_v18  ;;  %v5802_v33 = vld [vmem:[#allocation10] ss:$12 sps:$4 sm:$0xff]   ;;  %v5804_v34 = vld [vmem:[#allocation10 + $0x8] ss:$12 sps:$4 sm:$0xff]   ;;  %v6909_v35 = vld [vmem:[#allocation8] ss:$0 sm:$0xff] }
  0xf0   : > { %5560 = vmatprep.subr.bf16.mxu1 %v5789_v20  ;;  %v6918_v40 = vld [vmem:[%s9403_s4] ss:$0 sm:$0xff]  ;;  %v5185_v12 = vld [vmem:[%s6838_s12 + $0x10] sm:$0xff]   ;;  %s9736_s20 = sld [smem:[#allocation93_spill]]  ;;  %s9197_s24 = scalar_lea.vmem [#allocation16], %s4886_s26  ;;  %vm4592_vm3 = vcmask 1040384  }
  0xf1   : > { %762 = vxpose.xlu0.b32.cont [2/16] %v6869_v8, 128  ;;  %794 = vxpose.xlu1.b32.cont [2/16] %v6875_v10, 128  ;;  %s9745_s25 = sld [smem:[#allocation94_spill]]  ;;  %s4662_s23 = sshll.u32 %s9197_s24, 4  ;;  %s9332_s23 = int_to_ptr.vmem [resolvable:$true] %s4662_s23 }
  0xf2   : > { %1197 = vmatpush1.bf16.msra.mxu0 %v5782_v17  ;;  %v5050_v17 = vunpack.c.l.bf16 %v5185_v12  ;;  %s9746_s21 = sld [smem:[#allocation95_spill]]  ;;  %s4645_s7 = scalar_lea.sflag [#allocation4], %s6826_s11 }
  0xf3   : > { %1198 = vmatprep.subr.bf16.mxu0 %v5783_v19  ;;  %5561 = vmatpush3.bf16.msra.mxu1 %v5789_v20  ;;  %v5051_v19 = vunpack.c.h.bf16 %v5185_v12  ;;  %s9749_s26 = sld [smem:[#allocation30_spill]]  ;;  %s6389_s17 = scalar_lea.vmem %s9332_s23, 2048 }
  0xf4   : > { %5562 = vmatprep.subr.bf16.mxu1 %v5793_v23  ;;  %s9750_s0 = sld [smem:[#allocation96_spill]]  ;;  %p6390_p10 = scmp.ne.s32.totalorder %s9332_s23, %s6389_s17 }
  0xf5   : > { %763 = vxpose.xlu0.b32.cont [3/16] %v6869_v8, 128  ;;  %795 = vxpose.xlu1.b32.cont [3/16] %v6875_v10, 128 }
  0xf6   : > { %1199 = vmatpush1.bf16.msra.mxu0 %v5786_v21 }
  0xf7   : > { %1200 = vmatprep.subr.bf16.mxu0 %v5787_v22  ;;  %5563 = vmatpush3.bf16.msra.mxu1 %v5793_v23 }
  0xf8   : > { %5564 = vmatprep.subr.bf16.mxu1 %v5797_v26 }
  0xf9   : > { %764 = vxpose.xlu0.b32.cont [4/16] %v6869_v8, 128  ;;  %796 = vxpose.xlu1.b32.cont [4/16] %v6875_v10, 128  ;;  %p9751_p9 = scmp.ne.s32.totalorder %s9749_s26, 0 }
  0xfa   : > { %1201 = vmatpush1.bf16.msra.mxu0 %v5790_v24 }
  0xfb   : > { %1202 = vmatprep.subr.bf16.mxu0 %v5791_v25  ;;  %5565 = vmatpush3.bf16.msra.mxu1 %v5797_v26  ;;  %p6391_p11 = pnand %p6390_p10, %p9751_p9 }
  0xfc   : > { %5566 = vmatprep.subr.bf16.mxu1 %v5801_v29 }
  0xfd   : > { %765 = vxpose.xlu0.b32.cont [5/16] %v6869_v8, 128  ;;  %797 = vxpose.xlu1.b32.cont [5/16] %v6875_v10, 128  ;;  %p6392_p12 = pneg %p6391_p11 }
  0xfe   : > { %1203 = vmatpush1.bf16.msra.mxu0 %v5794_v27 }
  0xff   : > { %1204 = vmatprep.subr.bf16.mxu0 %v5795_v28  ;;  %5567 = vmatpush3.bf16.msra.mxu1 %v5801_v29 }
 0x100   : > { %5568 = vmatprep.subr.bf16.mxu1 %v5803_v32 }
 0x101   : > { %766 = vxpose.xlu0.b32.cont [6/16] %v6869_v8, 128  ;;  %798 = vxpose.xlu1.b32.cont [6/16] %v6875_v10, 128 }
 0x102   : > { %1205 = vmatpush1.bf16.msra.mxu0 %v5798_v30  ;;  %v5186_v30 = vld [vmem:[%s6838_s12 + $0x18] sm:$0xff]  }
 0x103   : > { %1206 = vmatprep.subr.bf16.mxu0 %v5799_v31  ;;  %5569 = vmatpush3.bf16.msra.mxu1 %v5803_v32  ;;  %v5055_v39 = vunpack.c.h.bf16 %v5186_v30 }
 0x104   : > { %5570 = vmatprep.subr.bf16.mxu1 %v5804_v34 }
 0x105   : > { %767 = vxpose.xlu0.b32.cont [7/16] %v6869_v8, 128  ;;  %799 = vxpose.xlu1.b32.cont [7/16] %v6875_v10, 128 }
 0x106   : > { %1207 = vmatpush1.bf16.msra.mxu0 %v5802_v33 }
 0x107   : > { %5571 = vmatpush3.bf16.msra.mxu1 %v5804_v34 }
 0x109   : > { %768 = vxpose.xlu0.b32.cont [8/16] %v6869_v8, 128  ;;  %800 = vxpose.xlu1.b32.cont [8/16] %v6875_v10, 128 }
 0x10d   : > { %769 = vxpose.xlu0.b32.cont [9/16] %v6869_v8, 128  ;;  %801 = vxpose.xlu1.b32.cont [9/16] %v6875_v10, 128 }
 0x111   : > { %770 = vxpose.xlu0.b32.cont [10/16] %v6869_v8, 128  ;;  %802 = vxpose.xlu1.b32.cont [10/16] %v6875_v10, 128 }
 0x115   : > { %771 = vxpose.xlu0.b32.cont [11/16] %v6869_v8, 128  ;;  %803 = vxpose.xlu1.b32.cont [11/16] %v6875_v10, 128 }
 0x119   : > { %772 = vxpose.xlu0.b32.cont [12/16] %v6869_v8, 128  ;;  %804 = vxpose.xlu1.b32.cont [12/16] %v6875_v10, 128 }
 0x11d   : > { %773 = vxpose.xlu0.b32.cont [13/16] %v6869_v8, 128  ;;  %805 = vxpose.xlu1.b32.cont [13/16] %v6875_v10, 128 }
 0x121   : > { %774 = vxpose.xlu0.b32.cont [14/16] %v6869_v8, 128  ;;  %806 = vxpose.xlu1.b32.cont [14/16] %v6875_v10, 128 }
 0x125   : > { %775 = vxpose.xlu0.b32.cont [15/16] %v6869_v8, 128  ;;  %807 = vxpose.xlu1.b32.cont [15/16] %v6875_v10, 128 }
 0x129   : > { %776 = vxpose.xlu0.b32.end [16/16] %v6869_v8, 128  ;;  %808 = vxpose.xlu1.b32.end [16/16] %v6875_v10, 128 }
 0x169   : > { %v777_v36 = vpop.trf.xlu0  ;;  %v6912_v38 = vpop.trf.xlu1 }
 0x16a   : > { %v896_v37 = vmul.f32 %v6909_v35, %v777_v36  ;;  %v5054_v36 = vunpack.c.l.bf16 %v5186_v30 }
 0x16c   : > { %v935_v43 = vadd.f32 %v6918_v40, %v896_v37 }
 0x16d   : > { %v778_v41 = vpop.trf.xlu0  ;;  %v6922_v46 = vpop.trf.xlu1 }
 0x16e   : > { %v897_v45 = vmul.f32 %v6909_v35, %v778_v41  ;;  %v6925_v49 = vadd.f32 %v5042_v42, %v935_v43 }
 0x170   : > { %v936_v47 = vadd.f32 %v6918_v40, %v897_v45  ;;  %9574 = vst [vmem:[#allocation34_spill] sm:$0xff] %v6925_v49 }
 0x171   : > { %v779_v48 = vpop.trf.xlu0  ;;  %v811_v52 = vpop.trf.xlu1 }
 0x172   : > { %v6927_v50 = vadd.f32 %v5043_v44, %v936_v47  ;;  %v898_v51 = vmul.f32 %v6909_v35, %v779_v48  ;;  %v914_v54 = vmul.f32 %v6909_v35, %v811_v52 }
 0x174   : > { %9575 = vst [vmem:[#allocation35_spill] sm:$0xff] %v6927_v50  ;;  %v999_v55 = vpack.c.bf16 %v6927_v50, %v6925_v49  ;;  %v6935_v57 = vadd.f32 %v6918_v40, %v914_v54  ;;  %v937_v59 = vadd.f32 %v6918_v40, %v898_v51  ;;  %v5187_v54 = vld [vmem:[%s6838_s12 + $0x20] sm:$0xff]  }
 0x175   : > { %v780_v56 = vpop.trf.xlu0  ;;  %v812_v62 = vpop.trf.xlu1 }
 0x176   : > { %v899_v61 = vmul.f32 %v6909_v35, %v780_v56  ;;  %1225 = vmatmul.mubr.bf16.vlgmr.msra.gmra.mxu0 %v999_v55  ;;  %5572 = vmatprep.mubr.bf16.mxu1 %v999_v55  ;;  %v915_v63 = vmul.f32 %v6909_v35, %v812_v62  ;;  %v6945_v6 = vadd.f32 %v5046_v58, %v937_v59  ;;  %v5059_v62 = vunpack.c.h.bf16 %v5187_v54 }
 0x177   : > { %1234 = vmatprep.mubr.bf16.mxu0 %v9445_v1 }
 0x178   : > { %v938_v0 = vadd.f32 %v6918_v40, %v899_v61  ;;  %v6943_v4 = vadd.f32 %v6918_v40, %v915_v63  ;;  %9576 = vst [vmem:[#allocation36_spill] sm:$0xff] %v6945_v6 }
 0x179   : > { %v781_v2 = vpop.trf.xlu0  ;;  %v813_v11 = vpop.trf.xlu1 }
 0x17a   : > { %v6947_v8 = vadd.f32 %v5047_v60, %v938_v0  ;;  %v900_v10 = vmul.f32 %v6909_v35, %v781_v2  ;;  %v916_v13 = vmul.f32 %v6909_v35, %v813_v11  ;;  %v5058_v60 = vunpack.c.l.bf16 %v5187_v54 }
 0x17c   : > { %9577 = vst [vmem:[#allocation37_spill] sm:$0xff] %v6947_v8  ;;  %v1000_v14 = vpack.c.bf16 %v6947_v8, %v6945_v6  ;;  %v6955_v16 = vadd.f32 %v6918_v40, %v916_v13  ;;  %v939_v18 = vadd.f32 %v6918_v40, %v900_v10 }
 0x17d   : > { %v782_v15 = vpop.trf.xlu0  ;;  %v814_v21 = vpop.trf.xlu1 }
 0x17e   : > { %v901_v20 = vmul.f32 %v6909_v35, %v782_v15  ;;  %1235 = vmatmul.mubr.bf16.gmra.mxu0 %v1000_v14  ;;  %5573 = vmatmul.mubr.bf16.vlgmr.msra.gmra.mxu1 %v1000_v14  ;;  %v917_v22 = vmul.f32 %v6909_v35, %v814_v21  ;;  %v6965_v26 = vadd.f32 %v5050_v17, %v939_v18  ;;  %v5188_v18 = vld [vmem:[%s6838_s12 + $0x28] sm:$0xff]  }
 0x17f   : > { %1244 = vmatprep.mubr.bf16.mxu0 %v9445_v1 }
 0x180   : > { %v940_v23 = vadd.f32 %v6918_v40, %v901_v20  ;;  %v6963_v25 = vadd.f32 %v6918_v40, %v917_v22  ;;  %9578 = vst [vmem:[#allocation38_spill] sm:$0xff] %v6965_v26 }
 0x181   : > { %v783_v24 = vpop.trf.xlu0  ;;  %v815_v29 = vpop.trf.xlu1 }
 0x182   : > { %v6967_v27 = vadd.f32 %v5051_v19, %v940_v23  ;;  %v902_v28 = vmul.f32 %v6909_v35, %v783_v24  ;;  %v918_v31 = vmul.f32 %v6909_v35, %v815_v29  ;;  %v5062_v23 = vunpack.c.l.bf16 %v5188_v18 }
 0x184   : > { %9579 = vst [vmem:[#allocation39_spill] sm:$0xff] %v6967_v27  ;;  %v1001_v32 = vpack.c.bf16 %v6967_v27, %v6965_v26  ;;  %v6975_v34 = vadd.f32 %v6918_v40, %v918_v31  ;;  %v941_v37 = vadd.f32 %v6918_v40, %v902_v28  ;;  %v5063_v28 = vunpack.c.h.bf16 %v5188_v18 }
 0x185   : > { %v784_v33 = vpop.trf.xlu0  ;;  %v816_v42 = vpop.trf.xlu1 }
 0x186   : > { %v903_v41 = vmul.f32 %v6909_v35, %v784_v33  ;;  %1245 = vmatmul.mubr.bf16.gmra.mxu0 %v1001_v32  ;;  %5576 = vmatprep.mubr.bf16.mxu1 %v1001_v32  ;;  %v919_v43 = vmul.f32 %v6909_v35, %v816_v42  ;;  %v6985_v48 = vadd.f32 %v5054_v36, %v941_v37 }
 0x187   : > { %1254 = vmatprep.mubr.bf16.mxu0 %v9445_v1 }
 0x188   : > { %v942_v44 = vadd.f32 %v6918_v40, %v903_v41  ;;  %v6983_v47 = vadd.f32 %v6918_v40, %v919_v43  ;;  %9580 = vst [vmem:[#allocation40_spill] sm:$0xff] %v6985_v48  ;;  %v5189_v43 = vld [vmem:[%s6838_s12 + $0x30] sm:$0xff]  }
 0x189   : > { %v785_v45 = vpop.trf.xlu0  ;;  %v817_v53 = vpop.trf.xlu1  ;;  %v5066_v54 = vunpack.c.l.bf16 %v5189_v43 }
 0x18a   : > { %v6987_v51 = vadd.f32 %v5055_v39, %v942_v44  ;;  %v904_v52 = vmul.f32 %v6909_v35, %v785_v45  ;;  %v920_v55 = vmul.f32 %v6909_v35, %v817_v53 }
 0x18c   : > { %9581 = vst [vmem:[#allocation41_spill] sm:$0xff] %v6987_v51  ;;  %v1002_v56 = vpack.c.bf16 %v6987_v51, %v6985_v48  ;;  %v6995_v59 = vadd.f32 %v6918_v40, %v920_v55  ;;  %v943_v61 = vadd.f32 %v6918_v40, %v904_v52 }
 0x18d   : > { %v786_v58 = vpop.trf.xlu0  ;;  %v818_v0 = vpop.trf.xlu1 }
 0x18e   : > { %v905_v63 = vmul.f32 %v6909_v35, %v786_v58  ;;  %1255 = vmatmul.mubr.bf16.gmra.mxu0 %v1002_v56  ;;  %5577 = vmatmul.mubr.bf16.gmra.mxu1 %v1002_v56  ;;  %v921_v2 = vmul.f32 %v6909_v35, %v818_v0  ;;  %v7005_v13 = vadd.f32 %v5058_v60, %v943_v61  ;;  %v5067_v56 = vunpack.c.h.bf16 %v5189_v43  ;;  %v5191_v61 = vld [vmem:[%s6838_s12 + $0x40] sm:$0xff]  }
 0x18f   : > { %1264 = vmatprep.mubr.bf16.mxu0 %v9445_v1 }
 0x190   : > { %v944_v10 = vadd.f32 %v6918_v40, %v905_v63  ;;  %v7003_v12 = vadd.f32 %v6918_v40, %v921_v2  ;;  %9582 = vst [vmem:[#allocation42_spill] sm:$0xff] %v7005_v13  ;;  %v913_v63 = vmul.f32 %v6909_v35, %v6922_v46 }
 0x191   : > { %v787_v11 = vpop.trf.xlu0  ;;  %v819_v17 = vpop.trf.xlu1 }
 0x192   : > { %v7007_v14 = vadd.f32 %v5059_v62, %v944_v10  ;;  %v906_v15 = vmul.f32 %v6909_v35, %v787_v11  ;;  %v922_v19 = vmul.f32 %v6909_v35, %v819_v17  ;;  %v912_v62 = vmul.f32 %v6909_v35, %v6912_v38 }
 0x194   : > { %9583 = vst [vmem:[#allocation43_spill] sm:$0xff] %v7007_v14  ;;  %v1003_v20 = vpack.c.bf16 %v7007_v14, %v7005_v13  ;;  %v7015_v22 = vadd.f32 %v6918_v40, %v922_v19  ;;  %v945_v24 = vadd.f32 %v6918_v40, %v906_v15  ;;  %v5074_v15 = vunpack.c.l.bf16 %v5191_v61 }
 0x195   : > { %v788_v21 = vpop.trf.xlu0  ;;  %v820_v30 = vpop.trf.xlu1  ;;  %v951_v46 = vadd.f32 %v6918_v40, %v912_v62 }
 0x196   : > { %v907_v29 = vmul.f32 %v6909_v35, %v788_v21  ;;  %1265 = vmatmul.mubr.bf16.gmra.mxu0 %v1003_v20  ;;  %5580 = vmatprep.mubr.bf16.mxu1 %v1003_v20  ;;  %v923_v31 = vmul.f32 %v6909_v35, %v820_v30  ;;  %v7025_v37 = vadd.f32 %v5062_v23, %v945_v24  ;;  %v5075_v20 = vunpack.c.h.bf16 %v5191_v61  ;;  %v5190_v23 = vld [vmem:[%s6838_s12 + $0x38] sm:$0xff]  }
 0x197   : > { %1274 = vmatprep.mubr.bf16.mxu0 %v9445_v1  ;;  %v952_v21 = vadd.f32 %v6918_v40, %v913_v63  ;;  %v7066_v43 = vadd.f32 %v5074_v15, %v951_v46  ;;  %v5195_v46 = vld [vmem:[%s6838_s12 + $0x60] sm:$0xff]  }
 0x198   : > { %v946_v32 = vadd.f32 %v6918_v40, %v907_v29  ;;  %v7023_v36 = vadd.f32 %v6918_v40, %v923_v31  ;;  %9584 = vst [vmem:[#allocation44_spill] sm:$0xff] %v7025_v37  ;;  %v5070_v31 = vunpack.c.l.bf16 %v5190_v23 }
 0x199   : > { %v789_v33 = vpop.trf.xlu0  ;;  %v821_v42 = vpop.trf.xlu1  ;;  %9588 = vst [vmem:[#allocation48_spill] sm:$0xff] %v7066_v43 }
 0x19a   : > { %v7027_v39 = vadd.f32 %v5063_v28, %v946_v32  ;;  %v908_v41 = vmul.f32 %v6909_v35, %v789_v33  ;;  %v924_v44 = vmul.f32 %v6909_v35, %v821_v42  ;;  %v5071_v33 = vunpack.c.h.bf16 %v5190_v23 }
 0x19b   : > { %v5091_v23 = vunpack.c.h.bf16 %v5195_v46 }
 0x19c   : > { %9585 = vst [vmem:[#allocation45_spill] sm:$0xff] %v7027_v39  ;;  %v1004_v45 = vpack.c.bf16 %v7027_v39, %v7025_v37  ;;  %v7035_v53 = vadd.f32 %v6918_v40, %v924_v44  ;;  %v947_v55 = vadd.f32 %v6918_v40, %v908_v41  ;;  %v7068_v44 = vadd.f32 %v5075_v20, %v952_v21 }
 0x19d   : > { %v790_v52 = vpop.trf.xlu0  ;;  %v822_v60 = vpop.trf.xlu1  ;;  %v5090_v21 = vunpack.c.l.bf16 %v5195_v46 }
 0x19e   : > { %v909_v58 = vmul.f32 %v6909_v35, %v790_v52  ;;  %1275 = vmatmul.mubr.bf16.gmra.mxu0 %v1004_v45  ;;  %5581 = vmatmul.mubr.bf16.gmra.mxu1 %v1004_v45  ;;  %v925_v0 = vmul.f32 %v6909_v35, %v822_v60  ;;  %v7050_v17 = vadd.f32 %v5066_v54, %v947_v55  ;;  %v5192_v45 = vld [vmem:[%s6838_s12 + $0x48] sm:$0xff]   ;;  %v5193_v54 = vld [vmem:[%s6838_s12 + $0x50] sm:$0xff]  }
 0x19f   : > { %1284 = vmatprep.mubr.bf16.mxu0 %v9445_v1  ;;  %9589 = vst [vmem:[#allocation49_spill] sm:$0xff] %v7068_v44  ;;  %v5079_v60 = vunpack.c.h.bf16 %v5192_v45  ;;  %v5082_v63 = vunpack.c.l.bf16 %v5193_v54 }
 0x1a0   : > { %v948_v2 = vadd.f32 %v6918_v40, %v909_v58  ;;  %v7048_v11 = vadd.f32 %v6918_v40, %v925_v0  ;;  %9586 = vst [vmem:[#allocation46_spill] sm:$0xff] %v7050_v17  ;;  %v5078_v58 = vunpack.c.l.bf16 %v5192_v45  ;;  %v5083_v0 = vunpack.c.h.bf16 %v5193_v54 }
 0x1a1   : > { %v791_v10 = vpop.trf.xlu0  ;;  %v823_v19 = vpop.trf.xlu1  ;;  %v7091_v15 = vadd.f32 %v5082_v63, %v6955_v16 }
 0x1a2   : > { %v7052_v18 = vadd.f32 %v5067_v56, %v948_v2  ;;  %v910_v38 = vmul.f32 %v6909_v35, %v791_v10  ;;  %v926_v24 = vmul.f32 %v6909_v35, %v823_v19  ;;  %v1007_v2 = vpack.c.bf16 %v7068_v44, %v7066_v43  ;;  %v5194_v19 = vld [vmem:[%s6838_s12 + $0x58] sm:$0xff]  }
 0x1a3   : > { %v7085_v10 = vadd.f32 %v5078_v58, %v6935_v57  ;;  %9594 = vst [vmem:[#allocation54_spill] sm:$0xff] %v7091_v15  ;;  %v5086_v57 = vunpack.c.l.bf16 %v5194_v19  ;;  %v5087_v20 = vunpack.c.h.bf16 %v5194_v19 }
 0x1a4   : > { %9587 = vst [vmem:[#allocation47_spill] sm:$0xff] %v7052_v18  ;;  %v1005_v28 = vpack.c.bf16 %v7052_v18, %v7050_v17  ;;  %v7062_v30 = vadd.f32 %v6918_v40, %v926_v24  ;;  %v949_v32 = vadd.f32 %v6918_v40, %v910_v38  ;;  %v7094_v38 = vadd.f32 %v5083_v0, %v6963_v25 }
 0x1a5   : > { %v792_v29 = vpop.trf.xlu0  ;;  %v824_v42 = vpop.trf.xlu1  ;;  %9592 = vst [vmem:[#allocation52_spill] sm:$0xff] %v7085_v10  ;;  %v7104_v25 = vadd.f32 %v5086_v57, %v6975_v34  ;;  %v7107_v24 = vadd.f32 %v5087_v20, %v6983_v47  ;;  %v7158_v0 = vrot.slane %v6866_v7, %v6859_v3 }
 0x1a6   : > { %v911_v41 = vmul.f32 %v6909_v35, %v792_v29  ;;  %1285 = vmatmul.mubr.bf16.gmra.mxu0 %v1005_v28  ;;  %5584 = vmatprep.mubr.bf16.mxu1 %v1005_v28  ;;  %v927_v52 = vmul.f32 %v6909_v35, %v824_v42  ;;  %v7076_v61 = vadd.f32 %v5070_v31, %v949_v32  ;;  %v5196_v31 = vld [vmem:[%s6838_s12 + $0x68] sm:$0xff]   ;;  %v5197_v32 = vld [vmem:[%s6838_s12 + $0x70] sm:$0xff]  }
 0x1a7   : > { %1294 = vmatprep.mubr.bf16.mxu0 %v9445_v1  ;;  %9595 = vst [vmem:[#allocation55_spill] sm:$0xff] %v7094_v38  ;;  %v1009_v16 = vpack.c.bf16 %v7094_v38, %v7091_v15  ;;  %9596 = vst [vmem:[#allocation56_spill] sm:$0xff] %v7104_v25  ;;  %v7110_v28 = vadd.f32 %v5090_v21, %v6995_v59  ;;  %v7113_v29 = vadd.f32 %v5091_v23, %v7003_v12 }
 0x1a8   : > { %v950_v55 = vadd.f32 %v6918_v40, %v911_v41  ;;  %v966_v56 = vadd.f32 %v6918_v40, %v927_v52  ;;  %9590 = vst [vmem:[#allocation50_spill] sm:$0xff] %v7076_v61  ;;  %v7088_v40 = vadd.f32 %v5079_v60, %v6943_v4  ;;  %9597 = vst [vmem:[#allocation57_spill] sm:$0xff] %v7107_v24  ;;  %v5095_v34 = vunpack.c.h.bf16 %v5196_v31 }
 0x1a9   : > { %9598 = vst [vmem:[#allocation58_spill] sm:$0xff] %v7110_v28  ;;  %9599 = vst [vmem:[#allocation59_spill] sm:$0xff] %v7113_v29  ;;  %v1010_v47 = vpack.c.bf16 %v7107_v24, %v7104_v25  ;;  %v5098_v41 = vunpack.c.l.bf16 %v5197_v32  ;;  %v5099_v42 = vunpack.c.h.bf16 %v5197_v32  ;;  %v1011_v59 = vpack.c.bf16 %v7113_v29, %v7110_v28 }
 0x1aa   : > { %v7078_v62 = vadd.f32 %v5071_v33, %v950_v55  ;;  %9593 = vst [vmem:[#allocation53_spill] sm:$0xff] %v7088_v40  ;;  %v1008_v4 = vpack.c.bf16 %v7088_v40, %v7085_v10  ;;  %v5094_v33 = vunpack.c.l.bf16 %v5196_v31  ;;  %v7126_v12 = vadd.f32 %v5095_v34, %v7023_v36  ;;  %v5198_v55 = vld [vmem:[%s6838_s12 + $0x78] sm:$0xff]  }
 0x1ab   : > { %v7129_v52 = vadd.f32 %v5098_v41, %v7035_v53  ;;  %v7132_v54 = vadd.f32 %v5099_v42, %v7048_v11  ;;  %v5102_v58 = vunpack.c.l.bf16 %v5198_v55  ;;  %v5103_v60 = vunpack.c.h.bf16 %v5198_v55 }
 0x1ac   : > { %9591 = vst [vmem:[#allocation51_spill] sm:$0xff] %v7078_v62  ;;  %v1006_v35 = vpack.c.bf16 %v7078_v62, %v7076_v61  ;;  %v7123_v45 = vadd.f32 %v5094_v33, %v7015_v22  ;;  %9601 = vst [vmem:[#allocation61_spill] sm:$0xff] %v7126_v12 }
 0x1ad   : > { %9602 = vst [vmem:[#allocation62_spill] sm:$0xff] %v7129_v52  ;;  %9603 = vst [vmem:[#allocation63_spill] sm:$0xff] %v7132_v54  ;;  %v1013_v36 = vpack.c.bf16 %v7132_v54, %v7129_v52  ;;  %v7141_v63 = vadd.f32 %v5102_v58, %v7062_v30  ;;  %v7143_v53 = vadd.f32 %v5103_v60, %v966_v56 }
 0x1ae   : > { %1295 = vmatmul.mubr.bf16.gmra.mxu0 %v1006_v35  ;;  %5585 = vmatmul.mubr.bf16.gmra.mxu1 %v1006_v35  ;;  %9600 = vst [vmem:[#allocation60_spill] sm:$0xff] %v7123_v45  ;;  %v1012_v22 = vpack.c.bf16 %v7126_v12, %v7123_v45  ;;  %v7154_v30 = vrot.slane %v6866_v7, %v6861_v5 }
 0x1af   : > { %5588 = vmatprep.mubr.bf16.mxu1 %v1007_v2  ;;  %1304 = vmatprep.mubr.bf16.mxu0 %v9445_v1  ;;  %9604 = vst [vmem:[#allocation64_spill] sm:$0xff] %v7141_v63  ;;  %9605 = vst [vmem:[#allocation65_spill] sm:$0xff] %v7143_v53  ;;  %v1014_v11 = vpack.c.bf16 %v7143_v53, %v7141_v63 }
 0x1b6   : > { %1305 = vmatmul.mubr.bf16.gmra.mxu0 %v1007_v2  ;;  %5589 = vmatmul.mubr.bf16.gmra.mxu1 %v1008_v4 }
 0x1b7   : > { %1314 = vmatprep.mubr.bf16.mxu0 %v9445_v1  ;;  %5592 = vmatprep.mubr.bf16.mxu1 %v1009_v16 }
 0x1be   : > { %1315 = vmatmul.mubr.bf16.gmra.mxu0 %v1008_v4  ;;  %5593 = vmatmul.mubr.bf16.gmra.mxu1 %v1010_v47 }
 0x1bf   : > { %1324 = vmatprep.mubr.bf16.mxu0 %v9445_v1  ;;  %5596 = vmatprep.mubr.bf16.mxu1 %v1011_v59 }
 0x1c6   : > { %1325 = vmatmul.mubr.bf16.gmra.mxu0 %v1009_v16  ;;  %5597 = vmatmul.mubr.bf16.gmra.mxu1 %v1012_v22 }
 0x1c7   : > { %1334 = vmatprep.mubr.bf16.mxu0 %v9445_v1  ;;  %5600 = vmatprep.mubr.bf16.mxu1 %v1013_v36 }
 0x1ce   : > { %1335 = vmatmul.mubr.bf16.gmra.mxu0 %v1010_v47  ;;  %5601 = vmatmul.mubr.bf16.gmra.mxu1 %v1014_v11 }
 0x1cf   : > { %1344 = vmatprep.mubr.bf16.mxu0 %v9445_v1 }
 0x1d6   : > { %1345 = vmatmul.mubr.bf16.gmra.mxu0 %v1011_v59 }
 0x1d7   : > { %1354 = vmatprep.mubr.bf16.mxu0 %v9445_v1 }
 0x1de   : > { %1355 = vmatmul.mubr.bf16.gmra.mxu0 %v1012_v22 }
 0x1df   : > { %1364 = vmatprep.mubr.bf16.mxu0 %v9445_v1 }
 0x1e6   : > { %1365 = vmatmul.mubr.bf16.gmra.mxu0 %v1013_v36 }
 0x1e7   : > { %1374 = vmatprep.mubr.bf16.mxu0 %v9445_v1 }
 0x1ee   : > { %1375 = vmatmul.mubr.bf16.gmra.mxu0 %v1014_v11 }
 0x236   : > { %v1226_v56 = vpop.f32.mrf.mxu0 }
 0x237   : > { %v1227_v46 = vadd.f32 %v1226_v56, %v7158_v0 }
 0x238   : > { %v1228_v2 = vpop.f32.mrf.mxu0 }
 0x239   : > { %v7161_v35 = vadd.f32 %v1228_v2, %v7154_v30 }
 0x23a   : > { %v1230_v19 = vpop.f32.mrf.mxu0 }
 0x23b   : > { %9606 = vst [vmem:[#allocation66_spill] sm:$0xff] %v7161_v35  ;;  %v1231_v57 = vadd.f32 %v1230_v19, %v7158_v0 }
 0x23c   : > { %v1232_v20 = vpop.f32.mrf.mxu0 }
 0x23d   : > { %v7165_v4 = vpack.c.bf16 %v1231_v57, %v1227_v46  ;;  %v7168_v21 = vadd.f32 %v1232_v20, %v7154_v30 }
 0x23e   : > { %v1236_v23 = vpop.f32.mrf.mxu0  ;;  %v5574_v16 = vpop.f32.mrf.mxu1 }
 0x23f   : > { %9607 = vst [vmem:[#allocation67_spill] sm:$0xff] %v7165_v4  ;;  %9608 = vst [vmem:[#allocation68_spill] sm:$0xff] %v7168_v21  ;;  %v7173_v31 = vadd.f32 %v5574_v16, %v6872_v9  ;;  %5254 = vmatprep.mubr.bf16.mxu1 %v7165_v4  ;;  %v1237_v59 = vadd.f32 %v1236_v23, %v7158_v0 }
 0x240   : > { %v1238_v32 = vpop.f32.mrf.mxu0  ;;  %v1419_v33 = vpop.f32.mrf.mxu1 }
 0x241   : > { %v7177_v34 = vadd.f32 %v1238_v32, %v7154_v30  ;;  %v7180_v47 = vadd.f32 %v1419_v33, %v6872_v9 }
 0x242   : > { %v1240_v41 = vpop.f32.mrf.mxu0  ;;  %v5575_v42 = vpop.f32.mrf.mxu1 }
 0x243   : > { %9609 = vst [vmem:[#allocation69_spill] sm:$0xff] %v7177_v34  ;;  %v1241_v55 = vadd.f32 %v1240_v41, %v7158_v0  ;;  %v7185_v58 = vadd.f32 %v5575_v42, %v6872_v9 }
 0x244   : > { %v1242_v60 = vpop.f32.mrf.mxu0  ;;  %v1422_v22 = vpop.f32.mrf.mxu1 }
 0x245   : > { %v7187_v36 = vpack.c.bf16 %v1241_v55, %v1237_v59  ;;  %v7192_v56 = vadd.f32 %v1242_v60, %v7154_v30  ;;  %v7195_v2 = vadd.f32 %v1422_v22, %v6872_v9 }
 0x246   : > { %v1246_v19 = vpop.f32.mrf.mxu0 }
 0x247   : > { %9610 = vst [vmem:[#allocation70_spill] sm:$0xff] %v7187_v36  ;;  %9611 = vst [vmem:[#allocation71_spill] sm:$0xff] %v7192_v56  ;;  %v1247_v32 = vadd.f32 %v1246_v19, %v7158_v0 }
 0x248   : > { %v1248_v20 = vpop.f32.mrf.mxu0 }
 0x249   : > { %v7202_v23 = vadd.f32 %v1248_v20, %v7154_v30 }
 0x24a   : > { %v1250_v16 = vpop.f32.mrf.mxu0 }
 0x24b   : > { %v1251_v33 = vadd.f32 %v1250_v16, %v7158_v0 }
 0x24c   : > { %v1252_v41 = vpop.f32.mrf.mxu0 }
 0x24d   : > { %v7206_v42 = vpack.c.bf16 %v1251_v33, %v1247_v32  ;;  %v7209_v59 = vadd.f32 %v1252_v41, %v7154_v30 }
 0x24e   : > { %v1256_v55 = vpop.f32.mrf.mxu0  ;;  %v5578_v60 = vpop.f32.mrf.mxu1 }
 0x24f   : > { %9612 = vst [vmem:[#allocation72_spill] sm:$0xff] %v7206_v42  ;;  %v7214_v1 = vadd.f32 %v5578_v60, %v6872_v9  ;;  %v1257_v41 = vadd.f32 %v1256_v55, %v7158_v0 }
 0x250   : > { %v1258_v20 = vpop.f32.mrf.mxu0  ;;  %v1435_v7 = vpop.f32.mrf.mxu1 }
 0x251   : > { %v7217_v19 = vadd.f32 %v1258_v20, %v7154_v30  ;;  %v7220_v16 = vadd.f32 %v1435_v7, %v6872_v9 }
 0x252   : > { %v1260_v32 = vpop.f32.mrf.mxu0  ;;  %v5579_v33 = vpop.f32.mrf.mxu1 }
 0x253   : > { %v1261_v46 = vadd.f32 %v1260_v32, %v7158_v0  ;;  %v7225_v57 = vadd.f32 %v5579_v33, %v6872_v9 }
 0x254   : > { %v1262_v22 = vpop.f32.mrf.mxu0  ;;  %v1438_v60 = vpop.f32.mrf.mxu1 }
 0x255   : > { %v7227_v11 = vpack.c.bf16 %v1261_v46, %v1257_v41  ;;  %v7232_v53 = vadd.f32 %v1262_v22, %v7154_v30  ;;  %v7235_v7 = vadd.f32 %v1438_v60, %v6872_v9 }
 0x256   : > { %v1266_v63 = vpop.f32.mrf.mxu0 }
 0x257   : > { %9613 = vst [vmem:[#allocation73_spill] sm:$0xff] %v7227_v11  ;;  %v1267_v20 = vadd.f32 %v1266_v63, %v7158_v0 }
 0x258   : > { %v1268_v33 = vpop.f32.mrf.mxu0 }
 0x259   : > { %v7242_v46 = vadd.f32 %v1268_v33, %v7154_v30 }
 0x25a   : > { %v1270_v41 = vpop.f32.mrf.mxu0 }
 0x25b   : > { %v1271_v22 = vadd.f32 %v1270_v41, %v7158_v0 }
 0x25c   : > { %v1272_v54 = vpop.f32.mrf.mxu0 }
 0x25d   : > { %v7246_v52 = vpack.c.bf16 %v1271_v22, %v1267_v20  ;;  %v7249_v60 = vadd.f32 %v1272_v54, %v7154_v30 }
 0x25e   : > { %v1276_v12 = vpop.f32.mrf.mxu0  ;;  %v7253_v32 = vpop.f32.mrf.mxu1 }
 0x25f   : > { %9614 = vst [vmem:[#allocation74_spill] sm:$0xff] %v7246_v52  ;;  %v1277_v63 = vadd.f32 %v1276_v12, %v7158_v0 }
 0x260   : > { %v1278_v45 = vpop.f32.mrf.mxu0  ;;  %v7260_v20 = vpop.f32.mrf.mxu1 }
 0x261   : > { %v7256_v33 = vadd.f32 %v1278_v45, %v7154_v30 }
 0x262   : > { %v1280_v29 = vpop.f32.mrf.mxu0  ;;  %v7269_v25 = vpop.f32.mrf.mxu1 }
 0x263   : > { %v1281_v41 = vadd.f32 %v1280_v29, %v7158_v0 }
 0x264   : > { %v1282_v22 = vpop.f32.mrf.mxu0 }
 0x265   : > { %v7262_v54 = vpack.c.bf16 %v1281_v41, %v1277_v63  ;;  %v7265_v28 = vadd.f32 %v1282_v22, %v7154_v30  ;;  %v7276_v63 = vpop.f32.mrf.mxu1 }
 0x266   : > { %v1286_v55 = vpop.f32.mrf.mxu0 }
 0x267   : > { %9615 = vst [vmem:[#allocation75_spill] sm:$0xff] %v7262_v54  ;;  %v1287_v29 = vadd.f32 %v1286_v55, %v7158_v0 }
 0x268   : > { %v1288_v45 = vpop.f32.mrf.mxu0 }
 0x269   : > { %v7272_v38 = vadd.f32 %v1288_v45, %v7154_v30 }
 0x26a   : > { %v1290_v12 = vpop.f32.mrf.mxu0 }
 0x26b   : > { %v1291_v15 = vadd.f32 %v1290_v12, %v7158_v0 }
 0x26c   : > { %v1292_v41 = vpop.f32.mrf.mxu0 }
 0x26d   : > { %v7278_v22 = vpack.c.bf16 %v1291_v15, %v1287_v29  ;;  %v7281_v40 = vadd.f32 %v1292_v41, %v7154_v30 }
 0x26e   : > { %v1296_v24 = vpop.f32.mrf.mxu0  ;;  %v7283_v44 = vpop.f32.mrf.mxu1 }
 0x26f   : > { %9616 = vst [vmem:[#allocation76_spill] sm:$0xff] %v7278_v22  ;;  %v1297_v15 = vadd.f32 %v1296_v24, %v7158_v0  ;;  %v1476_v36 = vadd.f32 %v7283_v44, %v6872_v9 }
 0x270   : > { %v1298_v10 = vpop.f32.mrf.mxu0  ;;  %v7287_v43 = vpop.f32.mrf.mxu1 }
 0x271   : > { %v7290_v55 = vadd.f32 %v1298_v10, %v7154_v30 }
 0x272   : > { %v1300_v12 = vpop.f32.mrf.mxu0  ;;  %v5587_v62 = vpop.f32.mrf.mxu1 }
 0x273   : > { %v1301_v29 = vadd.f32 %v1300_v12, %v7158_v0 }
 0x274   : > { %v1302_v41 = vpop.f32.mrf.mxu0  ;;  %v7294_v18 = vpop.f32.mrf.mxu1 }
 0x275   : > { %v7296_v61 = vpack.c.bf16 %v1301_v29, %v1297_v15  ;;  %v7299_v17 = vadd.f32 %v1302_v41, %v7154_v30 }
 0x276   : > { %v1306_v45 = vpop.f32.mrf.mxu0  ;;  %v7301_v39 = vpop.f32.mrf.mxu1 }
 0x277   : > { %9617 = vst [vmem:[#allocation77_spill] sm:$0xff] %v7296_v61  ;;  %v1307_v15 = vadd.f32 %v1306_v45, %v7158_v0 }
 0x278   : > { %v1308_v14 = vpop.f32.mrf.mxu0  ;;  %v7305_v37 = vpop.f32.mrf.mxu1 }
 0x279   : > { %v7308_v24 = vadd.f32 %v1308_v14, %v7154_v30 }
 0x27a   : > { %v1310_v12 = vpop.f32.mrf.mxu0  ;;  %v7310_v13 = vpop.f32.mrf.mxu1 }
 0x27b   : > { %9618 = vst [vmem:[#allocation78_spill] sm:$0xff] %v7308_v24  ;;  %v1311_v29 = vadd.f32 %v1310_v12, %v7158_v0 }
 0x27c   : > { %v1312_v41 = vpop.f32.mrf.mxu0  ;;  %v7314_v51 = vpop.f32.mrf.mxu1 }
 0x27d   : > { %v7316_v27 = vpack.c.bf16 %v1311_v29, %v1307_v15  ;;  %v7319_v10 = vadd.f32 %v1312_v41, %v7154_v30 }
 0x27e   : > { %v1316_v48 = vpop.f32.mrf.mxu0  ;;  %v7321_v26 = vpop.f32.mrf.mxu1 }
 0x27f   : > { %9619 = vst [vmem:[#allocation79_spill] sm:$0xff] %v7316_v27  ;;  %9620 = vst [vmem:[#allocation80_spill] sm:$0xff] %v7319_v10  ;;  %v1317_v15 = vadd.f32 %v1316_v48, %v7158_v0 }
 0x280   : > { %v1318_v8 = vpop.f32.mrf.mxu0  ;;  %v7325_v6 = vpop.f32.mrf.mxu1 }
 0x281   : > { %v7328_v45 = vadd.f32 %v1318_v8, %v7154_v30 }
 0x282   : > { %v1320_v12 = vpop.f32.mrf.mxu0  ;;  %v7330_v50 = vpop.f32.mrf.mxu1 }
 0x283   : > { %9621 = vst [vmem:[#allocation81_spill] sm:$0xff] %v7328_v45  ;;  %v1321_v29 = vadd.f32 %v1320_v12, %v7158_v0 }
 0x284   : > { %v1322_v41 = vpop.f32.mrf.mxu0  ;;  %v7334_v49 = vpop.f32.mrf.mxu1 }
 0x285   : > { %v7336_v5 = vpack.c.bf16 %v1321_v29, %v1317_v15  ;;  %v7339_v14 = vadd.f32 %v1322_v41, %v7154_v30 }
 0x286   : > { %v1326_v3 = vpop.f32.mrf.mxu0  ;;  %v5598_v27 = vpop.f32.mrf.mxu1 }
 0x287   : > { %9622 = vst [vmem:[#allocation82_spill] sm:$0xff] %v7336_v5  ;;  %9623 = vst [vmem:[#allocation83_spill] sm:$0xff] %v7339_v14  ;;  %v1327_v52 = vadd.f32 %v1326_v3, %v7158_v0  ;;  %v1479_v3 = vadd.f32 %v5587_v62, %v6872_v9  ;;  %v1524_v24 = vadd.f32 %v5598_v27, %v6872_v9 }
 0x288   : > { %v1328_v61 = vpop.f32.mrf.mxu0  ;;  %v1515_v22 = vpop.f32.mrf.mxu1  ;;  %v1468_v27 = vadd.f32 %v7287_v43, %v6872_v9  ;;  %v1460_v43 = vadd.f32 %v7253_v32, %v6872_v9  ;;  %v1452_v32 = vadd.f32 %v7260_v20, %v6872_v9 }
 0x289   : > { %v7344_v54 = vadd.f32 %v1328_v61, %v7154_v30 }
 0x28a   : > { %v1330_v48 = vpop.f32.mrf.mxu0  ;;  %v5599_v12 = vpop.f32.mrf.mxu1 }
 0x28b   : > { %v1331_v15 = vadd.f32 %v1330_v48, %v7158_v0  ;;  %v1527_v62 = vadd.f32 %v5599_v12, %v6872_v9 }
 0x28c   : > { %v1332_v29 = vpop.f32.mrf.mxu0  ;;  %v1518_v5 = vpop.f32.mrf.mxu1 }
 0x28d   : > { %v7348_v41 = vpack.c.bf16 %v1331_v15, %v1327_v52  ;;  %v7351_v11 = vadd.f32 %v1332_v29, %v7154_v30  ;;  %v2373_v14 = vpack.c.bf16 %v1527_v62, %v1524_v24 }
 0x28e   : > { %v1336_v42 = vpop.f32.mrf.mxu0  ;;  %v5602_v8 = vpop.f32.mrf.mxu1 }
 0x28f   : > { %9624 = vst [vmem:[#allocation84_spill] sm:$0xff] %v7348_v41  ;;  %v1540_v35 = vadd.f32 %v5602_v8, %v6872_v9  ;;  %v1337_v52 = vadd.f32 %v1336_v42, %v7158_v0 }
 0x290   : > { %v7355_v61 = vpop.f32.mrf.mxu0  ;;  %v1531_v4 = vpop.f32.mrf.mxu1 }
 0x291   : > { %v1532_v15 = vadd.f32 %v1531_v4, %v6872_v9  ;;  %v2367_v4 = vpack.c.bf16 %v1479_v3, %v1476_v36  ;;  %v1516_v36 = vadd.f32 %v1515_v22, %v6872_v9 }
 0x292   : > { %v1340_v48 = vpop.f32.mrf.mxu0  ;;  %v5603_v21 = vpop.f32.mrf.mxu1 }
 0x293   : > { %v1341_v29 = vadd.f32 %v1340_v48, %v7158_v0  ;;  %v1543_v41 = vadd.f32 %v5603_v21, %v6872_v9  ;;  %v1471_v48 = vadd.f32 %v7294_v18, %v6872_v9  ;;  %v1519_v18 = vadd.f32 %v1518_v5, %v6872_v9 }
 0x294   : > { %v7366_v10 = vpop.f32.mrf.mxu0  ;;  %v1534_v8 = vpop.f32.mrf.mxu1  ;;  %v1508_v5 = vadd.f32 %v7321_v26, %v6872_v9 }
 0x295   : > { %v7369_v34 = vpack.c.bf16 %v1341_v29, %v1337_v52  ;;  %v2375_v56 = vpack.c.bf16 %v1543_v41, %v1540_v35  ;;  %v1535_v42 = vadd.f32 %v1534_v8, %v6872_v9  ;;  %v1463_v35 = vadd.f32 %v7269_v25, %v6872_v9 }
 0x296   : > { %v1346_v21 = vpop.f32.mrf.mxu0  ;;  %v2366_v12 = vpack.c.bf16 %v1471_v48, %v1468_v27  ;;  %v2372_v29 = vpack.c.bf16 %v1519_v18, %v1516_v36  ;;  %v1492_v27 = vadd.f32 %v7301_v39, %v6872_v9  ;;  %v1487_v18 = vadd.f32 %v7314_v51, %v6872_v9 }
 0x297   : > { %v2374_v45 = vpack.c.bf16 %v1535_v42, %v1532_v15  ;;  %5286 = vmatprep.subr.bf16.mxu0 %v2375_v56  ;;  %v1347_v3 = vadd.f32 %v1346_v21, %v7158_v0  ;;  %v2365_v25 = vpack.c.bf16 %v1463_v35, %v1460_v43  ;;  %v1511_v15 = vadd.f32 %v7330_v50, %v6872_v9 }
 0x298   : > { %v7376_v44 = vpop.f32.mrf.mxu0  ;;  %5287 = vmatpush3.bf16.msra.mxu0 %v2367_v4  ;;  %v1503_v4 = vadd.f32 %v7334_v49, %v6872_v9  ;;  %v9625_v49 = vpack.c.bf16 %v7225_v57, %v7214_v1  ;;  %v1484_v43 = vadd.f32 %v7305_v37, %v6872_v9  ;;  %v9627_v51 = vpack.c.bf16 %v7185_v58, %v7173_v31 }
 0x299   : > { %5288 = vmatprep.subr.bf16.mxu0 %v2374_v45  ;;  %v1455_v45 = vadd.f32 %v7276_v63, %v6872_v9  ;;  %v2371_v63 = vpack.c.bf16 %v1511_v15, %v1508_v5 }
 0x29a   : > { %v1350_v41 = vpop.f32.mrf.mxu0 }
 0x29b   : > { %v1351_v56 = vadd.f32 %v1350_v41, %v7158_v0  ;;  %v2364_v62 = vpack.c.bf16 %v1455_v45, %v1452_v32 }
 0x29c   : > { %v7386_v52 = vpop.f32.mrf.mxu0  ;;  %5289 = vmatpush3.bf16.msra.mxu0 %v2366_v12 }
 0x29d   : > { %v7388_v24 = vpack.c.bf16 %v1351_v56, %v1347_v3  ;;  %5290 = vmatprep.subr.bf16.mxu0 %v2373_v14  ;;  %v1500_v14 = vadd.f32 %v7325_v6, %v6872_v9  ;;  %v1495_v6 = vadd.f32 %v7310_v13, %v6872_v9  ;;  %v9626_v13 = vpack.c.bf16 %v7235_v7, %v7220_v16 }
 0x29e   : > { %v1356_v22 = vpop.f32.mrf.mxu0  ;;  %v9628_v9 = vpack.c.bf16 %v7195_v2, %v7180_v47 }
 0x29f   : > { %v1357_v26 = vadd.f32 %v1356_v22, %v7158_v0  ;;  %v2370_v35 = vpack.c.bf16 %v1503_v4, %v1500_v14  ;;  %v2369_v36 = vpack.c.bf16 %v1495_v6, %v1492_v27  ;;  %v1349_v4 = vadd.f32 %v7376_v44, %v7154_v30  ;;  %v9651_v27 = vld [vmem:[#allocation73_spill] sm:$0xff]  ;;  %v9652_v6 = vld [vmem:[#allocation74_spill] sm:$0xff] }
 0x2a0   : > { %v1358_v8 = vpop.f32.mrf.mxu0  ;;  %5291 = vmatpush3.bf16.msra.mxu0 %v2365_v25  ;;  %v2368_v25 = vpack.c.bf16 %v1487_v18, %v1484_v43  ;;  %v9633_v44 = vpack.c.bf16 %v7232_v53, %v7217_v19  ;;  %v9645_v19 = vld [vmem:[#allocation68_spill] sm:$0xff]  ;;  %v9661_v43 = vld [vmem:[#allocation33_spill] sm:$0xff] }
 0x2a1   : > { %5292 = vmatprep.subr.bf16.mxu0 %v2372_v29  ;;  %v1359_v2 = vadd.f32 %v1358_v8, %v7154_v30  ;;  %v9632_v8 = vpack.c.bf16 %v7249_v60, %v7242_v46  ;;  %v9640_v46 = vld [vmem:[#allocation69_spill] sm:$0xff]  ;;  %v9658_v18 = vld [vmem:[#allocation84_spill] sm:$0xff] }
 0x2a2   : > { %v1360_v42 = vpop.f32.mrf.mxu0 }
 0x2a3   : > { %v1361_v50 = vadd.f32 %v1360_v42, %v7158_v0  ;;  %v9630_v42 = vpack.c.bf16 %v7281_v40, %v7272_v38  ;;  %v1339_v40 = vadd.f32 %v7355_v61, %v7154_v30 }
 0x2a4   : > { %v1362_v48 = vpop.f32.mrf.mxu0  ;;  %5293 = vmatpush3.bf16.msra.mxu0 %v2364_v62 }
 0x2a5   : > { %v7404_v21 = vpack.c.bf16 %v1361_v50, %v1357_v26  ;;  %5294 = vmatprep.subr.bf16.mxu0 %v2371_v63  ;;  %v1363_v47 = vadd.f32 %v1362_v48, %v7154_v30  ;;  %v1353_v63 = vadd.f32 %v7386_v52, %v7154_v30  ;;  %v9639_v52 = vld [vmem:[#allocation71_spill] sm:$0xff]  ;;  %v9642_v50 = vld [vmem:[#allocation80_spill] sm:$0xff]  ;;  %v9643_v48 = vld [vmem:[#allocation78_spill] sm:$0xff] }
 0x2a6   : > { %v1366_v20 = vpop.f32.mrf.mxu0  ;;  %v9641_v60 = vpack.c.bf16 %v9639_v52, %v9640_v46  ;;  %v9644_v53 = vpack.c.bf16 %v9642_v50, %v9643_v48 }
 0x2a7   : > { %v1367_v3 = vadd.f32 %v1366_v20, %v7158_v0  ;;  %v1575_v14 = vpack.c.bf16 %v1363_v47, %v1359_v2  ;;  %v1574_v26 = vpack.c.bf16 %v1353_v63, %v1349_v4  ;;  %v9646_v20 = vld [vmem:[#allocation66_spill] sm:$0xff] }
 0x2a8   : > { %v1368_v12 = vpop.f32.mrf.mxu0  ;;  %5295 = vmatpush3.bf16.msra.mxu0 %v9625_v49  ;;  %v9655_v49 = vld [vmem:[#allocation77_spill] sm:$0xff] }
 0x2a9   : > { %5296 = vmatprep.subr.bf16.mxu0 %v2370_v35  ;;  %v1369_v31 = vadd.f32 %v1368_v12, %v7154_v30  ;;  %v9653_v35 = vld [vmem:[#allocation75_spill] sm:$0xff]  ;;  %v9654_v12 = vld [vmem:[#allocation76_spill] sm:$0xff] }
 0x2aa   : > { %v1370_v41 = vpop.f32.mrf.mxu0 }
 0x2ab   : > { %v1371_v56 = vadd.f32 %v1370_v41, %v7158_v0  ;;  %v9656_v41 = vld [vmem:[#allocation79_spill] sm:$0xff] }
 0x2ac   : > { %v1372_v39 = vpop.f32.mrf.mxu0  ;;  %5297 = vmatpush3.bf16.msra.mxu0 %v9626_v13  ;;  %v9660_v13 = vld [vmem:[#allocation32_spill] sm:$0xff] }
 0x2ad   : > { %v7422_v1 = vpack.c.bf16 %v1371_v56, %v1367_v3  ;;  %5298 = vmatprep.subr.bf16.mxu0 %v2369_v36  ;;  %v1373_v37 = vadd.f32 %v1372_v39, %v7154_v30  ;;  %v9657_v36 = vld [vmem:[#allocation82_spill] sm:$0xff]  ;;  %v1771_v3 = vld [vmem:[%s6844_s3] sm:$0x3]  ;;  %v9659_v56 = vmov 0  }
 0x2ae   : > { %v1376_v57 = vpop.f32.mrf.mxu0  ;;  %vm1772_vm0 = vcmp.gt.f32.partialorder %v1771_v3, 0.5 }
 0x2af   : > { %v1377_v5 = vadd.f32 %v1376_v57, %v7158_v0  ;;  %v1576_v62 = vpack.c.bf16 %v1373_v37, %v1369_v31  ;;  %v1773_v39 = vsel %vm1772_vm0, 1, %v9659_v56 }
 0x2b0   : > { %v1378_v45 = vpop.f32.mrf.mxu0  ;;  %5299 = vmatpush3.bf16.msra.mxu0 %v9627_v51  ;;  %v1781_v57 = vrot.slane %v1773_v39, %v9661_v43 }
 0x2b1   : > { %5300 = vmatprep.subr.bf16.mxu0 %v2368_v25  ;;  %v1379_v15 = vadd.f32 %v1378_v45, %v7154_v30 }
 0x2b2   : > { %v1380_v22 = vpop.f32.mrf.mxu0  ;;  %vm7516_vm2 = vcmp.eq.s32.totalorder %v1781_v57, 1 }
 0x2b3   : > { %v1381_v16 = vadd.f32 %v1380_v22, %v7158_v0  ;;  %v9629_v0 = vpack.c.bf16 %v7299_v17, %v7290_v55  ;;  %v9631_v17 = vpack.c.bf16 %v7265_v28, %v7256_v33  ;;  %v1343_v55 = vadd.f32 %v7366_v10, %v7154_v30  ;;  %v9636_v10 = vld [vmem:[#allocation83_spill] sm:$0xff] }
 0x2b4   : > { %v1382_v7 = vpop.f32.mrf.mxu0  ;;  %5301 = vmatpush3.bf16.msra.mxu0 %v9628_v9  ;;  %v9634_v28 = vpack.c.bf16 %v7351_v11, %v7344_v54  ;;  %v9635_v33 = vpack.c.bf16 %v7209_v59, %v7202_v23  ;;  %v9647_v11 = vpack.c.bf16 %v9645_v19, %v9646_v20  ;;  %v9648_v54 = vld [vmem:[#allocation67_spill] sm:$0xff]  ;;  %v9649_v23 = vld [vmem:[#allocation70_spill] sm:$0xff]  ;;  %v9650_v59 = vld [vmem:[#allocation72_spill] sm:$0xff] }
 0x2b5   : > { %v1561_v29 = vpack.c.bf16 %v1381_v16, %v1377_v5  ;;  %v1383_v32 = vadd.f32 %v1382_v7, %v7154_v30  ;;  %v1573_v38 = vpack.c.bf16 %v1343_v55, %v1339_v40  ;;  %v9637_v30 = vld [vmem:[#allocation81_spill] sm:$0xff] }
 0x2b6   : > { %v9638_v61 = vpack.c.bf16 %v9636_v10, %v9637_v30 }
 0x2b7   : > { %v1577_v58 = vpack.c.bf16 %v1383_v32, %v1379_v15 }
 0x2b9   : > { %5238 = vmatprep.subr.bf16.mxu1 %v1577_v58 }
 0x2ba   : > { %5239 = vmatpush3.bf16.xpose.msra.mxu1 %v9629_v0 }
 0x2bb   : > { %5240 = vmatprep.subr.bf16.mxu1 %v1576_v62 }
 0x2c2   : > { %5241 = vmatpush3.bf16.xpose.msra.mxu1 %v9630_v42 }
 0x2c3   : > { %5242 = vmatprep.subr.bf16.mxu1 %v1575_v14 }
 0x2ca   : > { %5243 = vmatpush3.bf16.xpose.msra.mxu1 %v9631_v17 }
 0x2cb   : > { %5244 = vmatprep.subr.bf16.mxu1 %v1574_v26 }
 0x2d2   : > { %5245 = vmatpush3.bf16.xpose.msra.mxu1 %v9632_v8 }
 0x2d3   : > { %5246 = vmatprep.subr.bf16.mxu1 %v1573_v38 }
 0x2da   : > { %5247 = vmatpush3.bf16.xpose.msra.mxu1 %v9633_v44 }
 0x2db   : > { %5248 = vmatprep.subr.bf16.mxu1 %v9634_v28 }
 0x2e2   : > { %5249 = vmatpush3.bf16.xpose.msra.mxu1 %v9635_v33 }
 0x2e3   : > { %5250 = vmatprep.subr.bf16.mxu1 %v9638_v61 }
 0x2ea   : > { %5251 = vmatpush3.bf16.xpose.msra.mxu1 %v9641_v60 }
 0x2eb   : > { %5252 = vmatprep.subr.bf16.mxu1 %v9644_v53 }
 0x2f2   : > { %5253 = vmatpush3.bf16.xpose.msra.mxu1 %v9647_v11 }
 0x2f9   : > { %5255 = vmatmul.mubr.bf16.vlgmr.msra.gmra.mxu1 %v9648_v54 }
 0x2fa   : > { %5256 = vmatprep.mubr.bf16.mxu1 %v9649_v23 }
 0x301   : > { %5257 = vmatmul.mubr.bf16.gmra.mxu1 %v9649_v23 }
 0x302   : > { %5258 = vmatprep.mubr.bf16.mxu1 %v9650_v59 }
 0x309   : > { %5259 = vmatmul.mubr.bf16.gmra.mxu1 %v9650_v59 }
 0x30a   : > { %5260 = vmatprep.mubr.bf16.mxu1 %v9651_v27 }
 0x311   : > { %5261 = vmatmul.mubr.bf16.gmra.mxu1 %v9651_v27 }
 0x312   : > { %5262 = vmatprep.mubr.bf16.mxu1 %v9652_v6 }
 0x319   : > { %5263 = vmatmul.mubr.bf16.gmra.mxu1 %v9652_v6 }
 0x31a   : > { %5264 = vmatprep.mubr.bf16.mxu1 %v9653_v35 }
 0x321   : > { %5265 = vmatmul.mubr.bf16.gmra.mxu1 %v9653_v35 }
 0x322   : > { %5266 = vmatprep.mubr.bf16.mxu1 %v9654_v12 }
 0x329   : > { %5267 = vmatmul.mubr.bf16.gmra.mxu1 %v9654_v12 }
 0x32a   : > { %5268 = vmatprep.mubr.bf16.mxu1 %v9655_v49 }
 0x331   : > { %5269 = vmatmul.mubr.bf16.gmra.mxu1 %v9655_v49 }
 0x332   : > { %5270 = vmatprep.mubr.bf16.mxu1 %v9656_v41 }
 0x339   : > { %5271 = vmatmul.mubr.bf16.gmra.mxu1 %v9656_v41 }
 0x33a   : > { %5272 = vmatprep.mubr.bf16.mxu1 %v9657_v36 }
 0x341   : > { %5273 = vmatmul.mubr.bf16.gmra.mxu1 %v9657_v36 }
 0x342   : > { %5274 = vmatprep.mubr.bf16.mxu1 %v9658_v18 }
 0x349   : > { %5275 = vmatmul.mubr.bf16.gmra.mxu1 %v9658_v18 }
 0x34a   : > { %5276 = vmatprep.mubr.bf16.mxu1 %v7369_v34 }
 0x351   : > { %5277 = vmatmul.mubr.bf16.gmra.mxu1 %v7369_v34  ;;  %v1777_v34 = vrot.slane %v1773_v39, %v9660_v13 }
 0x352   : > { %5278 = vmatprep.mubr.bf16.mxu1 %v7388_v24 }
 0x353   : > { %vm7512_vm1 = vcmp.eq.s32.totalorder %v1777_v34, 1 }
 0x359   : > { %5279 = vmatmul.mubr.bf16.gmra.mxu1 %v7388_v24 }
 0x35a   : > { %5280 = vmatprep.mubr.bf16.mxu1 %v7404_v21 }
 0x361   : > { %5281 = vmatmul.mubr.bf16.gmra.mxu1 %v7404_v21 }
 0x362   : > { %5282 = vmatprep.mubr.bf16.mxu1 %v7422_v1 }
 0x369   : > { %5283 = vmatmul.mubr.bf16.gmra.mxu1 %v7422_v1 }
 0x36a   : > { %5284 = vmatprep.mubr.bf16.mxu1 %v1561_v29 }
 0x371   : > { %5285 = vmatmul.mubr.bf16.gmra.mxu1 %v1561_v29 }
 0x3b9   : > { %v1612_v25 = vpop.f32.mrf.mxu1 }
 0x3ba   : > { %v7522_v45 = vsel %vm7512_vm1, -1e+30, %v1612_v25 }
 0x3bb   : > { %v1614_v1 = vpop.f32.mrf.mxu1 }
 0x3bc   : > { %v7526_v51 = vsel %vm7516_vm2, -1e+30, %v1614_v1 }
 0x3bd   : > { %v1616_v22 = vpop.f32.mrf.mxu1  ;;  %v1848_v5 = vmax.f32 %v7522_v45, %v7526_v51 }
 0x3be   : > { %v7532_v7 = vsel %vm7512_vm1, -1e+30, %v1616_v22 }
 0x3bf   : > { %1849 = vmax.xlane.f32.xlu0 %v1848_v5  ;;  %v1618_v16 = vpop.f32.mrf.mxu1 }
 0x3c0   : > { %v7536_v9 = vsel %vm7516_vm2, -1e+30, %v1618_v16 }
 0x3c1   : > { %v1622_v37 = vpop.f32.mrf.mxu1  ;;  %v1851_v15 = vmax.f32 %v7532_v7, %v7536_v9 }
 0x3c2   : > { %v7542_v32 = vsel %vm7512_vm1, -1e+30, %v1622_v37 }
 0x3c3   : > { %1852 = vmax.xlane.f32.xlu1 %v1851_v15  ;;  %v1624_v29 = vpop.f32.mrf.mxu1 }
 0x3c4   : > { %v7546_v31 = vsel %vm7516_vm2, -1e+30, %v1624_v29 }
 0x3c5   : > { %v1626_v58 = vpop.f32.mrf.mxu1  ;;  %v1854_v62 = vmax.f32 %v7542_v32, %v7546_v31 }
 0x3c6   : > { %v7552_v47 = vsel %vm7512_vm1, -1e+30, %v1626_v58 }
 0x3c7   : > { %1855 = vmax.xlane.f32.xlu1 %v1854_v62  ;;  %v1628_v0 = vpop.f32.mrf.mxu1 }
 0x3c8   : > { %v7556_v2 = vsel %vm7516_vm2, -1e+30, %v1628_v0 }
 0x3c9   : > { %v1632_v14 = vpop.f32.mrf.mxu1  ;;  %v1857_v42 = vmax.f32 %v7552_v47, %v7556_v2 }
 0x3ca   : > { %v7562_v4 = vsel %vm7512_vm1, -1e+30, %v1632_v14 }
 0x3cb   : > { %1858 = vmax.xlane.f32.xlu1 %v1857_v42  ;;  %v1634_v63 = vpop.f32.mrf.mxu1 }
 0x3cc   : > { %v7566_v26 = vsel %vm7516_vm2, -1e+30, %v1634_v63 }
 0x3cd   : > { %v1636_v17 = vpop.f32.mrf.mxu1  ;;  %v1860_v55 = vmax.f32 %v7562_v4, %v7566_v26 }
 0x3ce   : > { %v7572_v38 = vsel %vm7512_vm1, -1e+30, %v1636_v17 }
 0x3cf   : > { %1861 = vmax.xlane.f32.xlu0 %v1860_v55  ;;  %v1638_v40 = vpop.f32.mrf.mxu1 }
 0x3d0   : > { %v7576_v8 = vsel %vm7516_vm2, -1e+30, %v1638_v40 }
 0x3d1   : > { %v1642_v44 = vpop.f32.mrf.mxu1  ;;  %v1863_v28 = vmax.f32 %v7572_v38, %v7576_v8 }
 0x3d2   : > { %v7582_v10 = vsel %vm7512_vm1, -1e+30, %v1642_v44 }
 0x3d3   : > { %1864 = vmax.xlane.f32.xlu1 %v1863_v28  ;;  %v1644_v33 = vpop.f32.mrf.mxu1 }
 0x3d4   : > { %v7586_v30 = vsel %vm7516_vm2, -1e+30, %v1644_v33 }
 0x3d5   : > { %v1646_v61 = vpop.f32.mrf.mxu1  ;;  %v1866_v52 = vmax.f32 %v7582_v10, %v7586_v30 }
 0x3d6   : > { %v7592_v60 = vsel %vm7512_vm1, -1e+30, %v1646_v61 }
 0x3d7   : > { %1867 = vmax.xlane.f32.xlu0 %v1866_v52  ;;  %v1648_v46 = vpop.f32.mrf.mxu1 }
 0x3d8   : > { %v7596_v50 = vsel %vm7516_vm2, -1e+30, %v1648_v46 }
 0x3d9   : > { %v1652_v48 = vpop.f32.mrf.mxu1  ;;  %v1869_v53 = vmax.f32 %v7592_v60, %v7596_v50 }
 0x3da   : > { %v7602_v20 = vsel %vm7512_vm1, -1e+30, %v1652_v48 }
 0x3db   : > { %1870 = vmax.xlane.f32.xlu1 %v1869_v53  ;;  %v1654_v19 = vpop.f32.mrf.mxu1 }
 0x3dc   : > { %v7606_v11 = vsel %vm7516_vm2, -1e+30, %v1654_v19 }
 0x3dd   : > { %v1656_v54 = vpop.f32.mrf.mxu1  ;;  %v1872_v23 = vmax.f32 %v7602_v20, %v7606_v11 }
 0x3de   : > { %v7612_v27 = vsel %vm7512_vm1, -1e+30, %v1656_v54 }
 0x3df   : > { %1873 = vmax.xlane.f32.xlu0 %v1872_v23  ;;  %v1658_v59 = vpop.f32.mrf.mxu1 }
 0x3e0   : > { %v7616_v6 = vsel %vm7516_vm2, -1e+30, %v1658_v59 }
 0x3e1   : > { %v1662_v35 = vpop.f32.mrf.mxu1  ;;  %v1875_v12 = vmax.f32 %v7612_v27, %v7616_v6 }
 0x3e2   : > { %v7622_v41 = vsel %vm7512_vm1, -1e+30, %v1662_v35 }
 0x3e3   : > { %1876 = vmax.xlane.f32.xlu1 %v1875_v12  ;;  %v1664_v49 = vpop.f32.mrf.mxu1 }
 0x3e4   : > { %v7626_v36 = vsel %vm7516_vm2, -1e+30, %v1664_v49 }
 0x3e5   : > { %v1666_v18 = vpop.f32.mrf.mxu1  ;;  %v1878_v3 = vmax.f32 %v7622_v41, %v7626_v36 }
 0x3e6   : > { %v7632_v34 = vsel %vm7512_vm1, -1e+30, %v1666_v18 }
 0x3e7   : > { %1879 = vmax.xlane.f32.xlu0 %v1878_v3  ;;  %v1668_v39 = vpop.f32.mrf.mxu1 }
 0x3e8   : > { %v7636_v57 = vsel %vm7516_vm2, -1e+30, %v1668_v39 }
 0x3e9   : > { %v1672_v25 = vpop.f32.mrf.mxu1  ;;  %v1881_v1 = vmax.f32 %v7632_v34, %v7636_v57 }
 0x3ea   : > { %v7642_v5 = vsel %vm7512_vm1, -1e+30, %v1672_v25 }
 0x3eb   : > { %1882 = vmax.xlane.f32.xlu1 %v1881_v1  ;;  %v1674_v22 = vpop.f32.mrf.mxu1 }
 0x3ec   : > { %v7646_v16 = vsel %vm7516_vm2, -1e+30, %v1674_v22 }
 0x3ed   : > { %v1676_v37 = vpop.f32.mrf.mxu1  ;;  %v1884_v15 = vmax.f32 %v7642_v5, %v7646_v16 }
 0x3ee   : > { %v7652_v58 = vsel %vm7512_vm1, -1e+30, %v1676_v37 }
 0x3ef   : > { %1885 = vmax.xlane.f32.xlu0 %v1884_v15  ;;  %v1678_v29 = vpop.f32.mrf.mxu1 }
 0x3f0   : > { %v7656_v62 = vsel %vm7516_vm2, -1e+30, %v1678_v29 }
 0x3f1   : > { %v1682_v0 = vpop.f32.mrf.mxu1  ;;  %v1887_v14 = vmax.f32 %v7652_v58, %v7656_v62 }
 0x3f2   : > { %v7662_v63 = vsel %vm7512_vm1, -1e+30, %v1682_v0 }
 0x3f3   : > { %1888 = vmax.xlane.f32.xlu1 %v1887_v14  ;;  %v1684_v42 = vpop.f32.mrf.mxu1 }
 0x3f4   : > { %v7666_v17 = vsel %vm7516_vm2, -1e+30, %v1684_v42 }
 0x3f5   : > { %v1686_v55 = vpop.f32.mrf.mxu1  ;;  %v1890_v40 = vmax.f32 %v7662_v63, %v7666_v17 }
 0x3f6   : > { %v7672_v28 = vsel %vm7512_vm1, -1e+30, %v1686_v55 }
 0x3f7   : > { %1891 = vmax.xlane.f32.xlu0 %v1890_v40  ;;  %v1688_v44 = vpop.f32.mrf.mxu1 }
 0x3f8   : > { %v7676_v33 = vsel %vm7516_vm2, -1e+30, %v1688_v44 }
 0x3f9   : > { %v1692_v61 = vpop.f32.mrf.mxu1  ;;  %v1893_v52 = vmax.f32 %v7672_v28, %v7676_v33 }
 0x3fa   : > { %v7682_v48 = vsel %vm7512_vm1, -1e+30, %v1692_v61 }
 0x3fb   : > { %1894 = vmax.xlane.f32.xlu1 %v1893_v52  ;;  %v1694_v46 = vpop.f32.mrf.mxu1 }
 0x3fc   : > { %v7686_v53 = vsel %vm7516_vm2, -1e+30, %v1694_v46 }
 0x3fd   : > { %v1696_v19 = vpop.f32.mrf.mxu1  ;;  %v1896_v54 = vmax.f32 %v7682_v48, %v7686_v53 }
 0x3fe   : > { %v7692_v59 = vsel %vm7512_vm1, -1e+30, %v1696_v19 }
 0x3ff   : > { %1897 = vmax.xlane.f32.xlu0 %v1896_v54  ;;  %v1698_v23 = vpop.f32.mrf.mxu1 }
 0x400   : > { %v7696_v35 = vsel %vm7516_vm2, -1e+30, %v1698_v23 }
 0x401   : > { %v1702_v12 = vpop.f32.mrf.mxu1  ;;  %v1899_v49 = vmax.f32 %v7692_v59, %v7696_v35 }
 0x402   : > { %v7702_v3 = vsel %vm7512_vm1, -1e+30, %v1702_v12 }
 0x403   : > { %1900 = vmax.xlane.f32.xlu1 %v1899_v49  ;;  %v1704_v18 = vpop.f32.mrf.mxu1 }
 0x404   : > { %v7706_v39 = vsel %vm7516_vm2, -1e+30, %v1704_v18 }
 0x405   : > { %v1706_v25 = vpop.f32.mrf.mxu1  ;;  %v1902_v1 = vmax.f32 %v7702_v3, %v7706_v39 }
 0x406   : > { %v7712_v37 = vsel %vm7512_vm1, -1e+30, %v1706_v25 }
 0x407   : > { %1903 = vmax.xlane.f32.xlu0 %v1902_v1  ;;  %v1708_v22 = vpop.f32.mrf.mxu1 }
 0x408   : > { %v7716_v15 = vsel %vm7516_vm2, -1e+30, %v1708_v22 }
 0x409   : > { %v1712_v29 = vpop.f32.mrf.mxu1  ;;  %v1905_v0 = vmax.f32 %v7712_v37, %v7716_v15 }
 0x40a   : > { %v7722_v42 = vsel %vm7512_vm1, -1e+30, %v1712_v29 }
 0x40b   : > { %1906 = vmax.xlane.f32.xlu1 %v1905_v0  ;;  %v1714_v14 = vpop.f32.mrf.mxu1 }
 0x40c   : > { %v7726_v55 = vsel %vm7516_vm2, -1e+30, %v1714_v14 }
 0x40d   : > { %v1716_v40 = vpop.f32.mrf.mxu1  ;;  %v1908_v44 = vmax.f32 %v7722_v42, %v7726_v55 }
 0x40e   : > { %v7732_v52 = vsel %vm7512_vm1, -1e+30, %v1716_v40 }
 0x40f   : > { %1909 = vmax.xlane.f32.xlu0 %v1908_v44  ;;  %v1718_v61 = vpop.f32.mrf.mxu1 }
 0x410   : > { %v7736_v46 = vsel %vm7516_vm2, -1e+30, %v1718_v61 }
 0x411   : > { %v1722_v19 = vpop.f32.mrf.mxu1  ;;  %v1911_v54 = vmax.f32 %v7732_v52, %v7736_v46 }
 0x412   : > { %v7742_v12 = vsel %vm7512_vm1, -1e+30, %v1722_v19 }
 0x413   : > { %1912 = vmax.xlane.f32.xlu1 %v1911_v54  ;;  %v1724_v23 = vpop.f32.mrf.mxu1 }
 0x414   : > { %v7746_v49 = vsel %vm7516_vm2, -1e+30, %v1724_v23 }
 0x415   : > { %9666 = vst [vmem:[#allocation83_spill] sm:$0xff] %v7746_v49  ;;  %v1726_v18 = vpop.f32.mrf.mxu1  ;;  %v1914_v25 = vmax.f32 %v7742_v12, %v7746_v49 }
 0x416   : > { %v7752_v22 = vsel %vm7512_vm1, -1e+30, %v1726_v18 }
 0x417   : > { %1915 = vmax.xlane.f32.xlu0 %v1914_v25  ;;  %v1728_v1 = vpop.f32.mrf.mxu1  ;;  %9667 = vst [vmem:[#allocation81_spill] sm:$0xff] %v7752_v22 }
 0x418   : > { %v7756_v29 = vsel %vm7516_vm2, -1e+30, %v1728_v1 }
 0x419   : > { %9668 = vst [vmem:[#allocation71_spill] sm:$0xff] %v7756_v29  ;;  %v1917_v0 = vmax.f32 %v7752_v22, %v7756_v29  ;;  %v1732_v14 = vpop.f32.mrf.mxu1 }
 0x41b   : > { %1918 = vmax.xlane.f32.xlu1 %v1917_v0  ;;  %v1734_v40 = vpop.f32.mrf.mxu1 }
 0x41d   : > { %v7760_v44 = vpop.f32.mrf.mxu1 }
 0x41f   : > { %v1738_v61 = vpop.f32.mrf.mxu1 }
 0x421   : > { %v7764_v18 = vpop.f32.mrf.mxu1 }
 0x423   : > { %v7768_v56 = vpop.f32.mrf.mxu1 }
 0x448   : > { %v1850_v19 = vpop.xlane.xlu0 %1849 }
 0x449   : > { %v1944_v54 = vsub.f32 %v7522_v45, %v1850_v19  ;;  %v1945_v23 = vsub.f32 %v7526_v51, %v1850_v19  ;;  %v7772_v19 = vpop.f32.mrf.mxu1 }
 0x44b   : > { %v2008_v25 = vmul.f32 1.442695, %v1944_v54  ;;  %v2010_v13 = vmul.f32 1.442695, %v1945_v23 }
 0x44c   : > { %v1853_v1 = vpop.xlane.xlu1 %1852 }
 0x44d   : > { %5853 = vpow2.f32 %v2008_v25  ;;  %v1946_v43 = vsub.f32 %v7532_v7, %v1853_v1  ;;  %v1947_v0 = vsub.f32 %v7536_v9, %v1853_v1 }
 0x44e   : > { %5855 = vpow2.f32 %v2010_v13  ;;  %v7776_v13 = vpop.f32.mrf.mxu1 }
 0x44f   : > { %v2012_v29 = vmul.f32 1.442695, %v1946_v43  ;;  %v2014_v22 = vmul.f32 1.442695, %v1947_v0 }
 0x450   : > { %v1856_v49 = vpop.xlane.xlu1 %1855 }
 0x451   : > { %5857 = vpow2.f32 %v2012_v29  ;;  %v1948_v45 = vsub.f32 %v7542_v32, %v1856_v49  ;;  %v1949_v51 = vsub.f32 %v7546_v31, %v1856_v49 }
 0x452   : > { %5859 = vpow2.f32 %v2014_v22  ;;  %v7782_v22 = vpop.f32.mrf.mxu1 }
 0x453   : > { %v2016_v54 = vmul.f32 1.442695, %v1948_v45  ;;  %v2018_v23 = vmul.f32 1.442695, %v1949_v51 }
 0x454   : > { %v1859_v25 = vpop.xlane.xlu1 %1858 }
 0x455   : > { %5861 = vpow2.f32 %v2016_v54  ;;  %v1950_v7 = vsub.f32 %v7552_v47, %v1859_v25  ;;  %v1951_v9 = vsub.f32 %v7556_v2, %v1859_v25  ;;  %v7790_v54 = vsel %vm7516_vm2, -1e+30, %v1734_v40  ;;  %v1754_v25 = vpop.f32.mrf.mxu1 }
 0x456   : > { %5863 = vpow2.f32 %v2018_v23 }
 0x457   : > { %v2020_v43 = vmul.f32 1.442695, %v1950_v7  ;;  %v2022_v29 = vmul.f32 1.442695, %v1951_v9  ;;  %v7800_v9 = vsel %vm7512_vm1, -1e+30, %v1732_v14 }
 0x458   : > { %v1862_v1 = vpop.xlane.xlu0 %1861 }
 0x459   : > { %5865 = vpow2.f32 %v2020_v43  ;;  %v1952_v32 = vsub.f32 %v7562_v4, %v1862_v1  ;;  %v1953_v31 = vsub.f32 %v7566_v26, %v1862_v1 }
 0x45a   : > { %v7780_v49 = vpop.eup %5853  ;;  %5867 = vpow2.f32 %v2022_v29 }
 0x45b   : > { %v7784_v0 = vpop.eup %5855  ;;  %v2024_v47 = vmul.f32 1.442695, %v1952_v32  ;;  %v2026_v2 = vmul.f32 1.442695, %v1953_v31 }
 0x45c   : > { %v1865_v45 = vpop.xlane.xlu1 %1864  ;;  %v2136_v51 = vadd.f32 %v7784_v0, %v7780_v49 }
 0x45d   : > { %5869 = vpow2.f32 %v2024_v47  ;;  %v1954_v4 = vsub.f32 %v7572_v38, %v1865_v45  ;;  %v1955_v26 = vsub.f32 %v7576_v8, %v1865_v45  ;;  %v1920_v38 = vmax.f32 %v7800_v9, %v7790_v54  ;;  %v7814_v47 = vpop.f32.mrf.mxu1 }
 0x45e   : > { %v7794_v23 = vpop.eup %5857  ;;  %5871 = vpow2.f32 %v2026_v2  ;;  %2137 = vadd.xlane.f32.xlu0 %v2136_v51  ;;  %v7808_v8 = vsel %vm7516_vm2, -1e+30, %v1738_v61  ;;  %v7821_v45 = vsel %vm7512_vm1, -1e+30, %v7760_v44 }
 0x45f   : > { %v7796_v7 = vpop.eup %5859  ;;  %v2028_v43 = vmul.f32 1.442695, %v1954_v4  ;;  %v2030_v29 = vmul.f32 1.442695, %v1955_v26  ;;  %v7830_v26 = vsel %vm7516_vm2, -1e+30, %v7768_v56 }
 0x460   : > { %v1868_v40 = vpop.xlane.xlu0 %1867  ;;  %v2139_v1 = vadd.f32 %v7796_v7, %v7794_v23 }
 0x461   : > { %5873 = vpow2.f32 %v2028_v43  ;;  %v1956_v32 = vsub.f32 %v7582_v10, %v1868_v40  ;;  %v1957_v31 = vsub.f32 %v7586_v30, %v1868_v40  ;;  %v1923_v30 = vmax.f32 %v7821_v45, %v7808_v8  ;;  %v1758_v40 = vpop.f32.mrf.mxu1 }
 0x462   : > { %v7812_v14 = vpop.eup %5861  ;;  %5875 = vpow2.f32 %v2030_v29  ;;  %2140 = vadd.xlane.f32.xlu1 %v2139_v1  ;;  %1921 = vmax.xlane.f32.xlu0 %v1920_v38  ;;  %v7841_v38 = vsel %vm7512_vm1, -1e+30, %v7764_v18 }
 0x463   : > { %v7816_v2 = vpop.eup %5863  ;;  %v2032_v61 = vmul.f32 1.442695, %v1956_v32  ;;  %v2034_v51 = vmul.f32 1.442695, %v1957_v31 }
 0x464   : > { %v1871_v4 = vpop.xlane.xlu1 %1870  ;;  %v2142_v10 = vadd.f32 %v7816_v2, %v7812_v14 }
 0x465   : > { %5877 = vpow2.f32 %v2032_v61  ;;  %v1958_v43 = vsub.f32 %v7592_v60, %v1871_v4  ;;  %v1959_v44 = vsub.f32 %v7596_v50, %v1871_v4  ;;  %v1926_v50 = vmax.f32 %v7841_v38, %v7830_v26 }
 0x466   : > { %v7834_v29 = vpop.eup %5865  ;;  %5879 = vpow2.f32 %v2034_v51  ;;  %2143 = vadd.xlane.f32.xlu0 %v2142_v10  ;;  %1924 = vmax.xlane.f32.xlu1 %v1923_v30  ;;  %v7850_v61 = vsel %vm7516_vm2, -1e+30, %v7776_v13  ;;  %v1762_v10 = vpop.f32.mrf.mxu1 }
 0x467   : > { %v7836_v1 = vpop.eup %5867  ;;  %v2036_v56 = vmul.f32 1.442695, %v1958_v43  ;;  %v2038_v32 = vmul.f32 1.442695, %v1959_v44  ;;  %v7861_v43 = vsel %vm7512_vm1, -1e+30, %v7772_v19 }
 0x468   : > { %v1874_v31 = vpop.xlane.xlu0 %1873  ;;  %v2145_v60 = vadd.f32 %v7836_v1, %v7834_v29 }
 0x469   : > { %5881 = vpow2.f32 %v2036_v56  ;;  %v1960_v51 = vsub.f32 %v7602_v20, %v1874_v31  ;;  %v1961_v18 = vsub.f32 %v7606_v11, %v1874_v31  ;;  %v1929_v11 = vmax.f32 %v7861_v43, %v7850_v61 }
 0x46a   : > { %v7854_v4 = vpop.eup %5869  ;;  %5883 = vpow2.f32 %v2038_v32  ;;  %2146 = vadd.xlane.f32.xlu1 %v2145_v60  ;;  %1927 = vmax.xlane.f32.xlu0 %v1926_v50  ;;  %v7869_v32 = vsel %vm7516_vm2, -1e+30, %v1754_v25  ;;  %v1764_v50 = vpop.f32.mrf.mxu1 }
 0x46b   : > { %9669 = vst [vmem:[#allocation69_spill] sm:$0xff] %v7854_v4  ;;  %v7856_v30 = vpop.eup %5871  ;;  %v2040_v13 = vmul.f32 1.442695, %v1960_v51  ;;  %v2042_v44 = vmul.f32 1.442695, %v1961_v18 }
 0x46c   : > { %v1877_v56 = vpop.xlane.xlu1 %1876  ;;  %v2148_v20 = vadd.f32 %v7856_v30, %v7854_v4  ;;  %v7880_v18 = vsel %vm7512_vm1, -1e+30, %v7782_v22 }
 0x46d   : > { %5885 = vpow2.f32 %v2040_v13  ;;  %v1962_v31 = vsub.f32 %v7612_v27, %v1877_v56  ;;  %v1963_v60 = vsub.f32 %v7616_v6, %v1877_v56  ;;  %v1932_v6 = vmax.f32 %v7880_v18, %v7869_v32 }
 0x46e   : > { %v7873_v19 = vpop.eup %5873  ;;  %5887 = vpow2.f32 %v2042_v44  ;;  %2149 = vadd.xlane.f32.xlu0 %v2148_v20  ;;  %1930 = vmax.xlane.f32.xlu1 %v1929_v11  ;;  %v7888_v44 = vsel %vm7516_vm2, -1e+30, %v1758_v40  ;;  %v1766_v11 = vpop.f32.mrf.mxu1 }
 0x46f   : > { %9670 = vst [vmem:[#allocation80_spill] sm:$0xff] %v7873_v19  ;;  %v7875_v51 = vpop.eup %5875  ;;  %v2044_v25 = vmul.f32 1.442695, %v1962_v31  ;;  %v2046_v4 = vmul.f32 1.442695, %v1963_v60 }
 0x470   : > { %v1880_v13 = vpop.xlane.xlu0 %1879  ;;  %v2151_v27 = vadd.f32 %v7875_v51, %v7873_v19  ;;  %v7899_v60 = vsel %vm7512_vm1, -1e+30, %v7814_v47 }
 0x471   : > { %5889 = vpow2.f32 %v2044_v25  ;;  %v1964_v56 = vsub.f32 %v7622_v41, %v1880_v13  ;;  %v1965_v20 = vsub.f32 %v7626_v36, %v1880_v13  ;;  %v1935_v36 = vmax.f32 %v7899_v60, %v7888_v44 }
 0x472   : > { %v7892_v22 = vpop.eup %5877  ;;  %5891 = vpow2.f32 %v2046_v4  ;;  %2152 = vadd.xlane.f32.xlu1 %v2151_v27  ;;  %1933 = vmax.xlane.f32.xlu0 %v1932_v6  ;;  %v7907_v4 = vsel %vm7516_vm2, -1e+30, %v1764_v50  ;;  %v1768_v6 = vpop.f32.mrf.mxu1 }
 0x473   : > { %9671 = vst [vmem:[#allocation78_spill] sm:$0xff] %v7892_v22  ;;  %v7894_v31 = vpop.eup %5879  ;;  %v2048_v40 = vmul.f32 1.442695, %v1964_v56  ;;  %v2050_v19 = vmul.f32 1.442695, %v1965_v20 }
 0x474   : > { %9672 = vst [vmem:[#allocation68_spill] sm:$0xff] %v7894_v31  ;;  %v1883_v25 = vpop.xlane.xlu1 %1882  ;;  %v2154_v41 = vadd.f32 %v7894_v31, %v7892_v22  ;;  %v7917_v20 = vsel %vm7512_vm1, -1e+30, %v1762_v10 }
 0x475   : > { %5893 = vpow2.f32 %v2048_v40  ;;  %v1966_v13 = vsub.f32 %v7632_v34, %v1883_v25  ;;  %v1967_v27 = vsub.f32 %v7636_v57, %v1883_v25  ;;  %v1938_v57 = vmax.f32 %v7917_v20, %v7907_v4 }
 0x476   : > { %v7911_v47 = vpop.eup %5881  ;;  %5895 = vpow2.f32 %v2050_v19  ;;  %2155 = vadd.xlane.f32.xlu0 %v2154_v41  ;;  %1936 = vmax.xlane.f32.xlu1 %v1935_v36  ;;  %v7925_v19 = vsel %vm7516_vm2, -1e+30, %v1768_v6  ;;  %v7935_v36 = vsel %vm7512_vm1, -1e+30, %v1766_v11 }
 0x477   : > { %v7913_v56 = vpop.eup %5883  ;;  %v2052_v22 = vmul.f32 1.442695, %v1966_v13  ;;  %v2054_v50 = vmul.f32 1.442695, %v1967_v27 }
 0x478   : > { %v1886_v31 = vpop.xlane.xlu0 %1885  ;;  %v2157_v34 = vadd.f32 %v7913_v56, %v7911_v47 }
 0x479   : > { %5897 = vpow2.f32 %v2052_v22  ;;  %v1968_v40 = vsub.f32 %v7642_v5, %v1886_v31  ;;  %v1969_v25 = vsub.f32 %v7646_v16, %v1886_v31  ;;  %v1941_v5 = vmax.f32 %v7935_v36, %v7925_v19 }
 0x47a   : > { %v7929_v10 = vpop.eup %5885  ;;  %5899 = vpow2.f32 %v2054_v50  ;;  %2158 = vadd.xlane.f32.xlu1 %v2157_v34  ;;  %1939 = vmax.xlane.f32.xlu0 %v1938_v57 }
 0x47b   : > { %v7931_v41 = vpop.eup %5887  ;;  %v2056_v13 = vmul.f32 1.442695, %v1968_v40  ;;  %v2058_v21 = vmul.f32 1.442695, %v1969_v25 }
 0x47c   : > { %v1889_v27 = vpop.xlane.xlu1 %1888  ;;  %v2160_v22 = vadd.f32 %v7931_v41, %v7929_v10 }
 0x47d   : > { %5901 = vpow2.f32 %v2056_v13  ;;  %v1970_v16 = vsub.f32 %v7652_v58, %v1889_v27  ;;  %v1971_v31 = vsub.f32 %v7656_v62, %v1889_v27 }
 0x47e   : > { %v7943_v6 = vpop.eup %5889  ;;  %5903 = vpow2.f32 %v2058_v21  ;;  %2161 = vadd.xlane.f32.xlu0 %v2160_v22  ;;  %1942 = vmax.xlane.f32.xlu1 %v1941_v5 }
 0x47f   : > { %v7945_v24 = vpop.eup %5891  ;;  %v2060_v11 = vmul.f32 1.442695, %v1970_v16  ;;  %v2062_v50 = vmul.f32 1.442695, %v1971_v31 }
 0x480   : > { %v1892_v34 = vpop.xlane.xlu0 %1891  ;;  %v2163_v57 = vadd.f32 %v7945_v24, %v7943_v6 }
 0x481   : > { %5905 = vpow2.f32 %v2060_v11  ;;  %v1972_v40 = vsub.f32 %v7662_v63, %v1892_v34  ;;  %v1973_v58 = vsub.f32 %v7666_v17, %v1892_v34 }
 0x482   : > { %v7951_v25 = vpop.eup %5893  ;;  %5907 = vpow2.f32 %v2062_v50  ;;  %2164 = vadd.xlane.f32.xlu1 %v2163_v57 }
 0x483   : > { %v7953_v62 = vpop.eup %5895  ;;  %v2064_v13 = vmul.f32 1.442695, %v1972_v40  ;;  %v2066_v21 = vmul.f32 1.442695, %v1973_v58 }
 0x484   : > { %v1895_v27 = vpop.xlane.xlu1 %1894  ;;  %v2166_v22 = vadd.f32 %v7953_v62, %v7951_v25 }
 0x485   : > { %5909 = vpow2.f32 %v2064_v13  ;;  %v1974_v5 = vsub.f32 %v7672_v28, %v1895_v27  ;;  %v1975_v16 = vsub.f32 %v7676_v33, %v1895_v27 }
 0x486   : > { %v7959_v63 = vpop.eup %5897  ;;  %5911 = vpow2.f32 %v2066_v21  ;;  %2167 = vadd.xlane.f32.xlu0 %v2166_v22 }
 0x487   : > { %v7961_v17 = vpop.eup %5899  ;;  %v2068_v31 = vmul.f32 1.442695, %v1974_v5  ;;  %v2070_v11 = vmul.f32 1.442695, %v1975_v16 }
 0x488   : > { %v1898_v50 = vpop.xlane.xlu0 %1897  ;;  %v2169_v34 = vadd.f32 %v7961_v17, %v7959_v63 }
 0x489   : > { %5913 = vpow2.f32 %v2068_v31  ;;  %v1976_v57 = vsub.f32 %v7682_v48, %v1898_v50  ;;  %v1977_v40 = vsub.f32 %v7686_v53, %v1898_v50 }
 0x48a   : > { %v7967_v28 = vpop.eup %5901  ;;  %5915 = vpow2.f32 %v2070_v11  ;;  %2170 = vadd.xlane.f32.xlu1 %v2169_v34 }
 0x48b   : > { %v7969_v33 = vpop.eup %5903  ;;  %v2072_v58 = vmul.f32 1.442695, %v1976_v57  ;;  %v2074_v13 = vmul.f32 1.442695, %v1977_v40 }
 0x48c   : > { %v1901_v21 = vpop.xlane.xlu1 %1900  ;;  %v2172_v27 = vadd.f32 %v7969_v33, %v7967_v28 }
 0x48d   : > { %5917 = vpow2.f32 %v2072_v58  ;;  %v1978_v22 = vsub.f32 %v7692_v59, %v1901_v21  ;;  %v1979_v5 = vsub.f32 %v7696_v35, %v1901_v21 }
 0x48e   : > { %v7975_v48 = vpop.eup %5905  ;;  %5919 = vpow2.f32 %v2074_v13  ;;  %2173 = vadd.xlane.f32.xlu0 %v2172_v27 }
 0x48f   : > { %v7977_v53 = vpop.eup %5907  ;;  %v2076_v16 = vmul.f32 1.442695, %v1978_v22  ;;  %v2078_v31 = vmul.f32 1.442695, %v1979_v5 }
 0x490   : > { %v1904_v11 = vpop.xlane.xlu0 %1903  ;;  %v2175_v50 = vadd.f32 %v7977_v53, %v7975_v48 }
 0x491   : > { %5921 = vpow2.f32 %v2076_v16  ;;  %v1980_v34 = vsub.f32 %v7702_v3, %v1904_v11  ;;  %v1981_v57 = vsub.f32 %v7706_v39, %v1904_v11 }
 0x492   : > { %v7983_v59 = vpop.eup %5909  ;;  %5923 = vpow2.f32 %v2078_v31  ;;  %2176 = vadd.xlane.f32.xlu1 %v2175_v50 }
 0x493   : > { %v7985_v35 = vpop.eup %5911  ;;  %v2080_v40 = vmul.f32 1.442695, %v1980_v34  ;;  %v2082_v58 = vmul.f32 1.442695, %v1981_v57 }
 0x494   : > { %v1907_v13 = vpop.xlane.xlu1 %1906  ;;  %v2178_v21 = vadd.f32 %v7985_v35, %v7983_v59 }
 0x495   : > { %5925 = vpow2.f32 %v2080_v40  ;;  %v1982_v27 = vsub.f32 %v7712_v37, %v1907_v13  ;;  %v1983_v22 = vsub.f32 %v7716_v15, %v1907_v13 }
 0x496   : > { %v7991_v3 = vpop.eup %5913  ;;  %5927 = vpow2.f32 %v2082_v58  ;;  %2179 = vadd.xlane.f32.xlu0 %v2178_v21 }
 0x497   : > { %v7993_v39 = vpop.eup %5915  ;;  %v2084_v5 = vmul.f32 1.442695, %v1982_v27  ;;  %v2086_v16 = vmul.f32 1.442695, %v1983_v22 }
 0x498   : > { %v1910_v31 = vpop.xlane.xlu0 %1909  ;;  %v2181_v11 = vadd.f32 %v7993_v39, %v7991_v3 }
 0x499   : > { %5929 = vpow2.f32 %v2084_v5  ;;  %v1984_v50 = vsub.f32 %v7722_v42, %v1910_v31  ;;  %v1985_v34 = vsub.f32 %v7726_v55, %v1910_v31 }
 0x49a   : > { %v7999_v37 = vpop.eup %5917  ;;  %5931 = vpow2.f32 %v2086_v16  ;;  %2182 = vadd.xlane.f32.xlu1 %v2181_v11 }
 0x49b   : > { %9673 = vst [vmem:[#allocation66_spill] sm:$0xff] %v7999_v37  ;;  %v8001_v15 = vpop.eup %5919  ;;  %v2088_v57 = vmul.f32 1.442695, %v1984_v50  ;;  %v2090_v40 = vmul.f32 1.442695, %v1985_v34  ;;  %v9674_v50 = vld [vmem:[#allocation83_spill] sm:$0xff] }
 0x49c   : > { %v1913_v58 = vpop.xlane.xlu1 %1912  ;;  %v2184_v13 = vadd.f32 %v8001_v15, %v7999_v37 }
 0x49d   : > { %5933 = vpow2.f32 %v2088_v57  ;;  %v1986_v21 = vsub.f32 %v7732_v52, %v1913_v58  ;;  %v1987_v27 = vsub.f32 %v7736_v46, %v1913_v58 }
 0x49e   : > { %v8007_v42 = vpop.eup %5921  ;;  %5935 = vpow2.f32 %v2090_v40  ;;  %2185 = vadd.xlane.f32.xlu0 %v2184_v13 }
 0x49f   : > { %v8009_v55 = vpop.eup %5923  ;;  %v2092_v22 = vmul.f32 1.442695, %v1986_v21  ;;  %v2094_v5 = vmul.f32 1.442695, %v1987_v27  ;;  %v9676_v21 = vld [vmem:[#allocation81_spill] sm:$0xff] }
 0x4a0   : > { %v1916_v16 = vpop.xlane.xlu0 %1915  ;;  %v2187_v31 = vadd.f32 %v8009_v55, %v8007_v42 }
 0x4a1   : > { %5937 = vpow2.f32 %v2092_v22  ;;  %v1988_v11 = vsub.f32 %v7742_v12, %v1916_v16  ;;  %v1989_v34 = vsub.f32 %v9674_v50, %v1916_v16  ;;  %v9677_v22 = vld [vmem:[#allocation71_spill] sm:$0xff] }
 0x4a2   : > { %v8015_v52 = vpop.eup %5925  ;;  %5939 = vpow2.f32 %v2094_v5  ;;  %2188 = vadd.xlane.f32.xlu1 %v2187_v31 }
 0x4a3   : > { %9675 = vst [vmem:[#allocation67_spill] sm:$0xff] %v8015_v52  ;;  %v8017_v46 = vpop.eup %5927  ;;  %v2096_v57 = vmul.f32 1.442695, %v1988_v11  ;;  %v2098_v40 = vmul.f32 1.442695, %v1989_v34 }
 0x4a4   : > { %v1919_v58 = vpop.xlane.xlu1 %1918  ;;  %v2190_v13 = vadd.f32 %v8017_v46, %v8015_v52 }
 0x4a5   : > { %5941 = vpow2.f32 %v2096_v57  ;;  %v1990_v27 = vsub.f32 %v9676_v21, %v1919_v58  ;;  %v1991_v37 = vsub.f32 %v9677_v22, %v1919_v58 }
 0x4a6   : > { %v8023_v12 = vpop.eup %5929  ;;  %5943 = vpow2.f32 %v2098_v40  ;;  %2191 = vadd.xlane.f32.xlu0 %v2190_v13 }
 0x4a7   : > { %v8025_v16 = vpop.eup %5931  ;;  %v2100_v5 = vmul.f32 1.442695, %v1990_v27  ;;  %v2102_v31 = vmul.f32 1.442695, %v1991_v37 }
 0x4a8   : > { %v2193_v11 = vadd.f32 %v8025_v16, %v8023_v12 }
 0x4a9   : > { %5945 = vpow2.f32 %v2100_v5 }
 0x4aa   : > { %v8029_v50 = vpop.eup %5933  ;;  %5947 = vpow2.f32 %v2102_v31  ;;  %2194 = vadd.xlane.f32.xlu1 %v2193_v11 }
 0x4ab   : > { %9678 = vst [vmem:[#allocation70_spill] sm:$0xff] %v8029_v50  ;;  %v8031_v34 = vpop.eup %5935 }
 0x4ac   : > { %9679 = vst [vmem:[#allocation72_spill] sm:$0xff] %v8031_v34  ;;  %v2196_v57 = vadd.f32 %v8031_v34, %v8029_v50 }
 0x4ae   : > { %v8035_v58 = vpop.eup %5937  ;;  %2197 = vadd.xlane.f32.xlu0 %v2196_v57 }
 0x4af   : > { %9680 = vst [vmem:[#allocation73_spill] sm:$0xff] %v8035_v58  ;;  %v8037_v40 = vpop.eup %5939 }
 0x4b0   : > { %9681 = vst [vmem:[#allocation74_spill] sm:$0xff] %v8037_v40  ;;  %v2199_v37 = vadd.f32 %v8037_v40, %v8035_v58 }
 0x4b2   : > { %v8041_v13 = vpop.eup %5941  ;;  %2200 = vadd.xlane.f32.xlu1 %v2199_v37 }
 0x4b3   : > { %9682 = vst [vmem:[#allocation75_spill] sm:$0xff] %v8041_v13  ;;  %v8043_v21 = vpop.eup %5943 }
 0x4b4   : > { %9683 = vst [vmem:[#allocation76_spill] sm:$0xff] %v8043_v21  ;;  %v2202_v27 = vadd.f32 %v8043_v21, %v8041_v13 }
 0x4b6   : > { %v8047_v22 = vpop.eup %5945  ;;  %2203 = vadd.xlane.f32.xlu0 %v2202_v27 }
 0x4b7   : > { %9684 = vst [vmem:[#allocation77_spill] sm:$0xff] %v8047_v22  ;;  %v8049_v5 = vpop.eup %5947 }
 0x4b8   : > { %9685 = vst [vmem:[#allocation79_spill] sm:$0xff] %v8049_v5  ;;  %v2205_v31 = vadd.f32 %v8049_v5, %v8047_v22 }
 0x4ba   : > { %2206 = vadd.xlane.f32.xlu1 %v2205_v31 }
 0x4e7   : > { %v2138_v11 = vpop.xlane.xlu0 %2137 }
 0x4e8   : > { %5949 = vrcp.f32 %v2138_v11 }
 0x4eb   : > { %v2141_v57 = vpop.xlane.xlu1 %2140  ;;  %v1922_v50 = vpop.xlane.xlu0 %1921 }
 0x4ec   : > { %5951 = vrcp.f32 %v2141_v57  ;;  %v1992_v37 = vsub.f32 %v7800_v9, %v1922_v50  ;;  %v1993_v58 = vsub.f32 %v7790_v54, %v1922_v50 }
 0x4ee   : > { %v2104_v40 = vmul.f32 1.442695, %v1992_v37  ;;  %v2106_v13 = vmul.f32 1.442695, %v1993_v58 }
 0x4ef   : > { %v2144_v21 = vpop.xlane.xlu0 %2143  ;;  %v1925_v34 = vpop.xlane.xlu1 %1924 }
 0x4f0   : > { %5953 = vpow2.f32 %v2104_v40  ;;  %v1994_v27 = vsub.f32 %v7821_v45, %v1925_v34  ;;  %v1995_v52 = vsub.f32 %v7808_v8, %v1925_v34 }
 0x4f1   : > { %5955 = vpow2.f32 %v2106_v13 }
 0x4f2   : > { %v2108_v31 = vmul.f32 1.442695, %v1994_v27  ;;  %v2110_v22 = vmul.f32 1.442695, %v1995_v52  ;;  %5957 = vrcp.f32 %v2144_v21 }
 0x4f3   : > { %v2147_v11 = vpop.xlane.xlu1 %2146  ;;  %v1928_v5 = vpop.xlane.xlu0 %1927 }
 0x4f4   : > { %5959 = vpow2.f32 %v2108_v31  ;;  %v1996_v9 = vsub.f32 %v7841_v38, %v1928_v5  ;;  %v1997_v54 = vsub.f32 %v7830_v26, %v1928_v5 }
 0x4f5   : > { %5961 = vpow2.f32 %v2110_v22  ;;  %v5950_v40 = vpop.eup %5949 }
 0x4f6   : > { %5963 = vrcp.f32 %v2147_v11  ;;  %v2112_v50 = vmul.f32 1.442695, %v1996_v9  ;;  %v2114_v58 = vmul.f32 1.442695, %v1997_v54  ;;  %v2265_v38 = vmul.f32 %v5950_v40, %v7784_v0 }
 0x4f7   : > { %v2150_v57 = vpop.xlane.xlu0 %2149  ;;  %v1931_v45 = vpop.xlane.xlu1 %1930  ;;  %v2264_v37 = vmul.f32 %v5950_v40, %v7780_v49 }
 0x4f8   : > { %5965 = vpow2.f32 %v2112_v50  ;;  %v1998_v8 = vsub.f32 %v7861_v43, %v1931_v45  ;;  %v1999_v52 = vsub.f32 %v7850_v61, %v1931_v45 }
 0x4f9   : > { %v5952_v34 = vpop.eup %5951  ;;  %5967 = vpow2.f32 %v2114_v58 }
 0x4fa   : > { %v2116_v13 = vmul.f32 1.442695, %v1998_v8  ;;  %v2118_v21 = vmul.f32 1.442695, %v1999_v52  ;;  %v2267_v26 = vmul.f32 %v5952_v34, %v7796_v7  ;;  %5969 = vrcp.f32 %v2150_v57 }
 0x4fb   : > { %v2153_v22 = vpop.xlane.xlu1 %2152  ;;  %v1934_v5 = vpop.xlane.xlu0 %1933  ;;  %v2266_v27 = vmul.f32 %v5952_v34, %v7794_v23 }
 0x4fc   : > { %5971 = vpow2.f32 %v2116_v13  ;;  %v2000_v43 = vsub.f32 %v7880_v18, %v1934_v5  ;;  %v2001_v61 = vsub.f32 %v7869_v32, %v1934_v5  ;;  %v2329_v31 = vpack.c.bf16 %v2267_v26, %v2265_v38 }
 0x4fd   : > { %v8067_v11 = vpop.eup %5953  ;;  %5973 = vpow2.f32 %v2118_v21  ;;  %v2328_v9 = vpack.c.bf16 %v2266_v27, %v2264_v37 }
 0x4fe   : > { %v8069_v0 = vpop.eup %5955  ;;  %5975 = vrcp.f32 %v2153_v22  ;;  %v2120_v7 = vmul.f32 1.442695, %v2000_v43  ;;  %v2122_v54 = vmul.f32 1.442695, %v2001_v61  ;;  %2408 = vmatprep.mubr.bf16.mxu0 %v2329_v31 }
 0x4ff   : > { %2409 = vmatmul.mubr.bf16.vlgmr.msra.gmra.mxu0 %v2328_v9  ;;  %v2156_v49 = vpop.xlane.xlu0 %2155  ;;  %v1937_v50 = vpop.xlane.xlu1 %1936  ;;  %v2208_v23 = vadd.f32 %v8069_v0, %v8067_v11 }
 0x500   : > { %v5958_v18 = vpop.eup %5957  ;;  %5977 = vpow2.f32 %v2120_v7  ;;  %v2002_v32 = vsub.f32 %v7899_v60, %v1937_v50  ;;  %v2003_v58 = vsub.f32 %v7888_v44, %v1937_v50 }
 0x501   : > { %v8075_v40 = vpop.eup %5959  ;;  %5979 = vpow2.f32 %v2122_v54  ;;  %2209 = vadd.xlane.f32.xlu0 %v2208_v23  ;;  %v2269_v38 = vmul.f32 %v5958_v18, %v7816_v2  ;;  %v2268_v5 = vmul.f32 %v5958_v18, %v7812_v14 }
 0x502   : > { %v8077_v57 = vpop.eup %5961  ;;  %v2124_v45 = vmul.f32 1.442695, %v2002_v32  ;;  %v2126_v8 = vmul.f32 1.442695, %v2003_v58  ;;  %5981 = vrcp.f32 %v2156_v49 }
 0x503   : > { %v5964_v52 = vpop.eup %5963  ;;  %v2159_v34 = vpop.xlane.xlu1 %2158  ;;  %v2211_v21 = vadd.f32 %v8077_v57, %v8075_v40 }
 0x504   : > { %v1940_v13 = vpop.xlane.xlu0 %1939  ;;  %5983 = vpow2.f32 %v2124_v45  ;;  %v2271_v26 = vmul.f32 %v5964_v52, %v7836_v1  ;;  %v2270_v37 = vmul.f32 %v5964_v52, %v7834_v29 }
 0x505   : > { %v2004_v44 = vsub.f32 %v7917_v20, %v1940_v13  ;;  %v2005_v60 = vsub.f32 %v7907_v4, %v1940_v13  ;;  %v8085_v22 = vpop.eup %5965  ;;  %5985 = vpow2.f32 %v2126_v8  ;;  %2212 = vadd.xlane.f32.xlu1 %v2211_v21  ;;  %v9687_v8 = vld [vmem:[#allocation80_spill] sm:$0xff] }
 0x506   : > { %v8089_v27 = vpop.eup %5967  ;;  %5987 = vrcp.f32 %v2159_v34  ;;  %v2331_v61 = vpack.c.bf16 %v2271_v26, %v2269_v38  ;;  %v2330_v31 = vpack.c.bf16 %v2270_v37, %v2268_v5 }
 0x507   : > { %v2128_v43 = vmul.f32 1.442695, %v2004_v44  ;;  %v2130_v2 = vmul.f32 1.442695, %v2005_v60  ;;  %v1943_v20 = vpop.xlane.xlu1 %1942  ;;  %v2214_v4 = vadd.f32 %v8089_v27, %v8085_v22  ;;  %v5970_v1 = vpop.eup %5969 }
 0x508   : > { %2416 = vmatprep.mubr.bf16.mxu0 %v2331_v61  ;;  %v2162_v9 = vpop.xlane.xlu0 %2161  ;;  %v2006_v7 = vsub.f32 %v7935_v36, %v1943_v20  ;;  %v2007_v14 = vsub.f32 %v7925_v19, %v1943_v20  ;;  %v2273_v58 = vmul.f32 %v5970_v1, %v7856_v30  ;;  %v9686_v36 = vld [vmem:[#allocation69_spill] sm:$0xff]  ;;  %v9689_v20 = vld [vmem:[#allocation78_spill] sm:$0xff] }
 0x509   : > { %5989 = vpow2.f32 %v2128_v43  ;;  %v8095_v29 = vpop.eup %5971  ;;  %2417 = vmatmul.mubr.bf16.gmra.mxu0 %v2330_v31  ;;  %2215 = vadd.xlane.f32.xlu0 %v2214_v4  ;;  %v2272_v45 = vmul.f32 %v5970_v1, %v9686_v36 }
 0x50a   : > { %5991 = vpow2.f32 %v2130_v2  ;;  %v8097_v54 = vpop.eup %5973  ;;  %v2132_v49 = vmul.f32 1.442695, %v2006_v7  ;;  %v2134_v50 = vmul.f32 1.442695, %v2007_v14  ;;  %v9688_v2 = vld [vmem:[#allocation68_spill] sm:$0xff] }
 0x50b   : > { %v5976_v23 = vpop.eup %5975  ;;  %5993 = vrcp.f32 %v2162_v9  ;;  %v2165_v18 = vpop.xlane.xlu1 %2164  ;;  %v2217_v32 = vadd.f32 %v8097_v54, %v8095_v29 }
 0x50c   : > { %5995 = vpow2.f32 %v2132_v49  ;;  %v2275_v19 = vmul.f32 %v5976_v23, %v7875_v51  ;;  %v2274_v52 = vmul.f32 %v5976_v23, %v9687_v8 }
 0x50d   : > { %v8105_v34 = vpop.eup %5977  ;;  %5997 = vpow2.f32 %v2134_v50  ;;  %2218 = vadd.xlane.f32.xlu1 %v2217_v32 }
 0x50e   : > { %v8107_v13 = vpop.eup %5979  ;;  %5999 = vrcp.f32 %v2165_v18  ;;  %v2333_v21 = vpack.c.bf16 %v2275_v19, %v2273_v58  ;;  %v2332_v38 = vpack.c.bf16 %v2274_v52, %v2272_v45 }
 0x50f   : > { %v2168_v44 = vpop.xlane.xlu0 %2167  ;;  %v2220_v30 = vadd.f32 %v8107_v13, %v8105_v34  ;;  %v5982_v60 = vpop.eup %5981 }
 0x510   : > { %2424 = vmatprep.mubr.bf16.mxu0 %v2333_v21  ;;  %6001 = vrcp.f32 %v2168_v44  ;;  %v2277_v61 = vmul.f32 %v5982_v60, %v9688_v2  ;;  %v2276_v4 = vmul.f32 %v5982_v60, %v9689_v20 }
 0x511   : > { %v8111_v51 = vpop.eup %5983  ;;  %2425 = vmatmul.mubr.bf16.gmra.mxu0 %v2332_v38  ;;  %2221 = vadd.xlane.f32.xlu0 %v2220_v30 }
 0x512   : > { %v8113_v26 = vpop.eup %5985 }
 0x513   : > { %v5988_v5 = vpop.eup %5987  ;;  %v2171_v37 = vpop.xlane.xlu1 %2170  ;;  %v2223_v43 = vadd.f32 %v8113_v26, %v8111_v51 }
 0x514   : > { %6003 = vrcp.f32 %v2171_v37  ;;  %v2279_v31 = vmul.f32 %v5988_v5, %v7913_v56  ;;  %v2278_v1 = vmul.f32 %v5988_v5, %v7911_v47 }
 0x515   : > { %2224 = vadd.xlane.f32.xlu1 %v2223_v43 }
 0x516   : > { %v8121_v9 = vpop.eup %5989  ;;  %v2335_v14 = vpack.c.bf16 %v2279_v31, %v2277_v61  ;;  %v2334_v49 = vpack.c.bf16 %v2278_v1, %v2276_v4  ;;  %v5805_v4 = vld [vmem:[#allocation11 + $0x38] sm:$0xff]  }
 0x517   : > { %v8123_v7 = vpop.eup %5991  ;;  %v2174_v50 = vpop.xlane.xlu0 %2173  ;;  %5604 = vmatprep.subr.bf16.mxu1 %v5805_v4 }
 0x518   : > { %v2226_v23 = vadd.f32 %v8123_v7, %v8121_v9  ;;  %v5994_v18 = vpop.eup %5993  ;;  %2432 = vmatprep.mubr.bf16.mxu0 %v2335_v14  ;;  %6005 = vrcp.f32 %v2174_v50  ;;  %5605 = vmatpush3.bf16.msra.mxu1 %v5805_v4 }
 0x519   : > { %v8127_v32 = vpop.eup %5995  ;;  %2433 = vmatmul.mubr.bf16.gmra.mxu0 %v2334_v49  ;;  %v2281_v36 = vmul.f32 %v5994_v18, %v7931_v41  ;;  %v2280_v8 = vmul.f32 %v5994_v18, %v7929_v10  ;;  %v5806_v18 = vld [vmem:[#allocation11 + $0x30] sm:$0xff]  }
 0x51a   : > { %2227 = vadd.xlane.f32.xlu0 %v2226_v23  ;;  %v8129_v56 = vpop.eup %5997  ;;  %5606 = vmatprep.subr.bf16.mxu1 %v5806_v18 }
 0x51b   : > { %v6000_v47 = vpop.eup %5999  ;;  %v2177_v58 = vpop.xlane.xlu1 %2176  ;;  %v2229_v19 = vadd.f32 %v8129_v56, %v8127_v32 }
 0x51c   : > { %6007 = vrcp.f32 %v2177_v58  ;;  %v2283_v45 = vmul.f32 %v6000_v47, %v7945_v24  ;;  %v2282_v52 = vmul.f32 %v6000_v47, %v7943_v6  ;;  %5607 = vmatpush3.bf16.msra.mxu1 %v5806_v18 }
 0x51d   : > { %2230 = vadd.xlane.f32.xlu1 %v2229_v19  ;;  %v6002_v44 = vpop.eup %6001 }
 0x51e   : > { %v2337_v21 = vpack.c.bf16 %v2283_v45, %v2281_v36  ;;  %v2336_v38 = vpack.c.bf16 %v2282_v52, %v2280_v8  ;;  %v2285_v5 = vmul.f32 %v6002_v44, %v7953_v62  ;;  %v2284_v10 = vmul.f32 %v6002_v44, %v7951_v25  ;;  %v5807_v52 = vld [vmem:[#allocation11 + $0x28] sm:$0xff]  }
 0x51f   : > { %v2180_v30 = vpop.xlane.xlu0 %2179  ;;  %5608 = vmatprep.subr.bf16.mxu1 %v5807_v52 }
 0x520   : > { %2440 = vmatprep.mubr.bf16.mxu0 %v2337_v21  ;;  %6009 = vrcp.f32 %v2180_v30  ;;  %v5808_v21 = vld [vmem:[#allocation11 + $0x20] sm:$0xff]   ;;  %5609 = vmatpush3.bf16.msra.mxu1 %v5807_v52 }
 0x521   : > { %v6004_v60 = vpop.eup %6003  ;;  %2441 = vmatmul.mubr.bf16.gmra.mxu0 %v2336_v38  ;;  %v9690_v38 = vld [vmem:[#allocation66_spill] sm:$0xff]  ;;  %5610 = vmatprep.subr.bf16.mxu1 %v5808_v21 }
 0x522   : > { %v2287_v41 = vmul.f32 %v6004_v60, %v7961_v17  ;;  %v2286_v37 = vmul.f32 %v6004_v60, %v7959_v63 }
 0x523   : > { %v2183_v24 = vpop.xlane.xlu1 %2182 }
 0x524   : > { %6011 = vrcp.f32 %v2183_v24  ;;  %v2339_v6 = vpack.c.bf16 %v2287_v41, %v2285_v5  ;;  %v2338_v43 = vpack.c.bf16 %v2286_v37, %v2284_v10  ;;  %5611 = vmatpush3.bf16.msra.mxu1 %v5808_v21  ;;  %v5809_v24 = vld [vmem:[#allocation11 + $0x18] sm:$0xff]  }
 0x525   : > { %v6006_v2 = vpop.eup %6005  ;;  %5612 = vmatprep.subr.bf16.mxu1 %v5809_v24 }
 0x526   : > { %2448 = vmatprep.mubr.bf16.mxu0 %v2339_v6  ;;  %v2289_v20 = vmul.f32 %v6006_v2, %v7969_v33  ;;  %v2288_v1 = vmul.f32 %v6006_v2, %v7967_v28  ;;  %v9691_v6 = vld [vmem:[#allocation67_spill] sm:$0xff] }
 0x527   : > { %v2186_v61 = vpop.xlane.xlu0 %2185 }
 0x528   : > { %6013 = vrcp.f32 %v2186_v61  ;;  %5613 = vmatpush3.bf16.msra.mxu1 %v5809_v24 }
 0x529   : > { %v6008_v31 = vpop.eup %6007  ;;  %2449 = vmatmul.mubr.bf16.gmra.mxu0 %v2338_v43 }
 0x52a   : > { %v2291_v62 = vmul.f32 %v6008_v31, %v7977_v53  ;;  %v2290_v17 = vmul.f32 %v6008_v31, %v7975_v48 }
 0x52b   : > { %v2189_v63 = vpop.xlane.xlu1 %2188 }
 0x52c   : > { %6015 = vrcp.f32 %v2189_v63  ;;  %v2341_v25 = vpack.c.bf16 %v2291_v62, %v2289_v20  ;;  %v2340_v14 = vpack.c.bf16 %v2290_v17, %v2288_v1  ;;  %v5810_v20 = vld [vmem:[#allocation11 + $0x10] sm:$0xff]  }
 0x52d   : > { %v6010_v49 = vpop.eup %6009  ;;  %5614 = vmatprep.subr.bf16.mxu1 %v5810_v20  ;;  %v9695_v1 = vld [vmem:[#allocation70_spill] sm:$0xff] }
 0x52e   : > { %2456 = vmatprep.mubr.bf16.mxu0 %v2341_v25  ;;  %v2293_v33 = vmul.f32 %v6010_v49, %v7985_v35  ;;  %v2292_v28 = vmul.f32 %v6010_v49, %v7983_v59  ;;  %5615 = vmatpush3.bf16.msra.mxu1 %v5810_v20 }
 0x52f   : > { %v2192_v50 = vpop.xlane.xlu0 %2191 }
 0x530   : > { %6017 = vrcp.f32 %v2192_v50 }
 0x531   : > { %v6012_v23 = vpop.eup %6011  ;;  %2457 = vmatmul.mubr.bf16.gmra.mxu0 %v2340_v14  ;;  %v5811_v14 = vld [vmem:[#allocation11 + $0x8] sm:$0xff]  }
 0x532   : > { %v2295_v53 = vmul.f32 %v6012_v23, %v7993_v39  ;;  %v2294_v48 = vmul.f32 %v6012_v23, %v7991_v3  ;;  %5616 = vmatprep.subr.bf16.mxu1 %v5811_v14 }
 0x533   : > { %v2195_v47 = vpop.xlane.xlu1 %2194  ;;  %5617 = vmatpush3.bf16.msra.mxu1 %v5811_v14 }
 0x534   : > { %6019 = vrcp.f32 %v2195_v47  ;;  %v2343_v58 = vpack.c.bf16 %v2295_v53, %v2293_v33  ;;  %v2342_v19 = vpack.c.bf16 %v2294_v48, %v2292_v28  ;;  %v5812_v33 = vld [vmem:[#allocation11] sm:$0xff]  }
 0x535   : > { %v6014_v36 = vpop.eup %6013  ;;  %5618 = vmatprep.subr.bf16.mxu1 %v5812_v33  ;;  %v9696_v48 = vld [vmem:[#allocation76_spill] sm:$0xff]  ;;  %v9697_v47 = vld [vmem:[#allocation79_spill] sm:$0xff] }
 0x536   : > { %2464 = vmatprep.mubr.bf16.mxu0 %v2343_v58  ;;  %v2297_v35 = vmul.f32 %v6014_v36, %v8001_v15  ;;  %v2296_v44 = vmul.f32 %v6014_v36, %v9690_v38  ;;  %v9698_v58 = vld [vmem:[#allocation77_spill] sm:$0xff]  ;;  %v9699_v36 = vld [vmem:[#allocation75_spill] sm:$0xff] }
 0x537   : > { %v2198_v45 = vpop.xlane.xlu0 %2197  ;;  %5619 = vmatpush3.bf16.msra.mxu1 %v5812_v33 }
 0x538   : > { %6021 = vrcp.f32 %v2198_v45 }
 0x539   : > { %v6016_v8 = vpop.eup %6015  ;;  %2465 = vmatmul.mubr.bf16.gmra.mxu0 %v2342_v19 }
 0x53a   : > { %v2299_v39 = vmul.f32 %v6016_v8, %v8009_v55  ;;  %v2298_v3 = vmul.f32 %v6016_v8, %v8007_v42 }
 0x53b   : > { %v2201_v59 = vpop.xlane.xlu1 %2200 }
 0x53c   : > { %6023 = vrcp.f32 %v2201_v59  ;;  %v2345_v30 = vpack.c.bf16 %v2299_v39, %v2297_v35  ;;  %v2344_v60 = vpack.c.bf16 %v2298_v3, %v2296_v44 }
 0x53d   : > { %v6018_v5 = vpop.eup %6017 }
 0x53e   : > { %2472 = vmatprep.mubr.bf16.mxu0 %v2345_v30  ;;  %v2301_v15 = vmul.f32 %v6018_v5, %v8017_v46  ;;  %v2300_v43 = vmul.f32 %v6018_v5, %v9691_v6  ;;  %v9692_v46 = vld [vmem:[#allocation72_spill] sm:$0xff] }
 0x53f   : > { %v2204_v41 = vpop.xlane.xlu0 %2203 }
 0x540   : > { %6025 = vrcp.f32 %v2204_v41 }
 0x541   : > { %v6020_v37 = vpop.eup %6019  ;;  %2473 = vmatmul.mubr.bf16.gmra.mxu0 %v2344_v60 }
 0x542   : > { %v2303_v42 = vmul.f32 %v6020_v37, %v8025_v16  ;;  %v2302_v55 = vmul.f32 %v6020_v37, %v8023_v12  ;;  %v9693_v16 = vld [vmem:[#allocation74_spill] sm:$0xff]  ;;  %v9694_v12 = vld [vmem:[#allocation73_spill] sm:$0xff] }
 0x543   : > { %v2207_v10 = vpop.xlane.xlu1 %2206 }
 0x544   : > { %6027 = vrcp.f32 %v2207_v10  ;;  %v2347_v2 = vpack.c.bf16 %v2303_v42, %v2301_v15  ;;  %v2346_v61 = vpack.c.bf16 %v2302_v55, %v2300_v43 }
 0x545   : > { %v6022_v31 = vpop.eup %6021 }
 0x546   : > { %2480 = vmatprep.mubr.bf16.mxu0 %v2347_v2  ;;  %v2305_v17 = vmul.f32 %v6022_v31, %v9692_v46  ;;  %v2304_v25 = vmul.f32 %v6022_v31, %v9695_v1 }
 0x549   : > { %v6024_v62 = vpop.eup %6023  ;;  %2481 = vmatmul.mubr.bf16.gmra.mxu0 %v2346_v61 }
 0x54a   : > { %v2307_v4 = vmul.f32 %v6024_v62, %v9693_v16  ;;  %v2306_v63 = vmul.f32 %v6024_v62, %v9694_v12 }
 0x54c   : > { %v2349_v49 = vpack.c.bf16 %v2307_v4, %v2305_v17  ;;  %v2348_v50 = vpack.c.bf16 %v2306_v63, %v2304_v25 }
 0x54d   : > { %v6026_v23 = vpop.eup %6025 }
 0x54e   : > { %2488 = vmatprep.mubr.bf16.mxu0 %v2349_v49  ;;  %v2309_v18 = vmul.f32 %v6026_v23, %v9696_v48  ;;  %v2308_v45 = vmul.f32 %v6026_v23, %v9699_v36 }
 0x551   : > { %v6028_v53 = vpop.eup %6027  ;;  %2489 = vmatmul.mubr.bf16.gmra.mxu0 %v2348_v50 }
 0x552   : > { %v2311_v28 = vmul.f32 %v6028_v53, %v9697_v47  ;;  %v2310_v19 = vmul.f32 %v6028_v53, %v9698_v58 }
 0x554   : > { %v2351_v8 = vpack.c.bf16 %v2311_v28, %v2309_v18  ;;  %v2350_v35 = vpack.c.bf16 %v2310_v19, %v2308_v45 }
 0x556   : > { %2496 = vmatprep.mubr.bf16.mxu0 %v2351_v8 }
 0x559   : > { %2497 = vmatmul.mubr.bf16.gmra.mxu0 %v2350_v35 }
 0x58a   : > { %v2210_v39 = vpop.xlane.xlu0 %2209 }
 0x58b   : > { %6029 = vrcp.f32 %v2210_v39 }
 0x58e   : > { %v2213_v3 = vpop.xlane.xlu1 %2212 }
 0x58f   : > { %6031 = vrcp.f32 %v2213_v3 }
 0x592   : > { %v2216_v52 = vpop.xlane.xlu0 %2215 }
 0x593   : > { %6033 = vrcp.f32 %v2216_v52 }
 0x596   : > { %v2219_v21 = vpop.xlane.xlu1 %2218 }
 0x597   : > { %6035 = vrcp.f32 %v2219_v21 }
 0x598   : > { %v6030_v59 = vpop.eup %6029 }
 0x599   : > { %v2313_v30 = vmul.f32 %v6030_v59, %v8069_v0  ;;  %v2312_v5 = vmul.f32 %v6030_v59, %v8067_v11 }
 0x59a   : > { %v2222_v38 = vpop.xlane.xlu0 %2221 }
 0x59b   : > { %6037 = vrcp.f32 %v2222_v38 }
 0x59c   : > { %v6032_v44 = vpop.eup %6031 }
 0x59d   : > { %v2315_v60 = vmul.f32 %v6032_v44, %v8077_v57  ;;  %v2314_v41 = vmul.f32 %v6032_v44, %v8075_v40 }
 0x59e   : > { %v2225_v37 = vpop.xlane.xlu1 %2224 }
 0x59f   : > { %6039 = vrcp.f32 %v2225_v37  ;;  %v2353_v15 = vpack.c.bf16 %v2315_v60, %v2313_v30  ;;  %v2352_v42 = vpack.c.bf16 %v2314_v41, %v2312_v5 }
 0x5a0   : > { %v6034_v55 = vpop.eup %6033 }
 0x5a1   : > { %2504 = vmatprep.mubr.bf16.mxu0 %v2353_v15  ;;  %v2317_v6 = vmul.f32 %v6034_v55, %v8089_v27  ;;  %v2316_v57 = vmul.f32 %v6034_v55, %v8085_v22 }
 0x5a2   : > { %2505 = vmatmul.mubr.bf16.gmra.mxu0 %v2352_v42 }
 0x5a3   : > { %v2228_v24 = vpop.xlane.xlu0 %2227 }
 0x5a4   : > { %v6036_v10 = vpop.eup %6035  ;;  %6041 = vrcp.f32 %v2228_v24 }
 0x5a5   : > { %v2319_v0 = vmul.f32 %v6036_v10, %v8097_v54  ;;  %v2318_v11 = vmul.f32 %v6036_v10, %v8095_v29 }
 0x5a6   : > { %v2231_v43 = vpop.xlane.xlu1 %2230 }
 0x5a7   : > { %6043 = vrcp.f32 %v2231_v43  ;;  %v2355_v40 = vpack.c.bf16 %v2319_v0, %v2317_v6  ;;  %v2354_v2 = vpack.c.bf16 %v2318_v11, %v2316_v57 }
 0x5a8   : > { %v6038_v61 = vpop.eup %6037 }
 0x5a9   : > { %2512 = vmatprep.mubr.bf16.mxu0 %v2355_v40  ;;  %v2321_v20 = vmul.f32 %v6038_v61, %v8107_v13  ;;  %v2320_v27 = vmul.f32 %v6038_v61, %v8105_v34  ;;  %v9700_v34 = vmov 0  }
 0x5aa   : > { %2513 = vmatmul.mubr.bf16.gmra.mxu0 %v2354_v2 }
 0x5ac   : > { %v6040_v31 = vpop.eup %6039 }
 0x5ad   : > { %v2323_v62 = vmul.f32 %v6040_v31, %v8113_v26  ;;  %v2322_v54 = vmul.f32 %v6040_v31, %v8111_v51 }
 0x5af   : > { %v2357_v46 = vpack.c.bf16 %v2323_v62, %v2321_v20  ;;  %v2356_v22 = vpack.c.bf16 %v2322_v54, %v2320_v27 }
 0x5b1   : > { %2520 = vmatprep.mubr.bf16.mxu0 %v2357_v46  ;;  %v6042_v29 = vpop.eup %6041 }
 0x5b2   : > { %2521 = vmatmul.mubr.bf16.gmra.mxu0 %v2356_v22  ;;  %v2325_v16 = vmul.f32 %v6042_v29, %v8123_v7  ;;  %v2324_v12 = vmul.f32 %v6042_v29, %v8121_v9 }
 0x5b4   : > { %v6044_v17 = vpop.eup %6043 }
 0x5b5   : > { %v2327_v4 = vmul.f32 %v6044_v17, %v8129_v56  ;;  %v2326_v13 = vmul.f32 %v6044_v17, %v8127_v32 }
 0x5b7   : > { %v2359_v63 = vpack.c.bf16 %v2327_v4, %v2325_v16  ;;  %v2358_v26 = vpack.c.bf16 %v2326_v13, %v2324_v12 }
 0x5b9   : > { %2528 = vmatprep.mubr.bf16.mxu0 %v2359_v63 }
 0x5ba   : > { %2529 = vmatmul.mubr.bf16.gmra.mxu0 %v2358_v26 }
 0x5bb   : > { %3404 = vmatprep.mubr.bf16.mxu0 %v9700_v34 }
 0x5bf   : > { %v5302_v51 = vpop.f32.mrf.mxu0 }
 0x5c1   : > { %v5303_v1 = vpop.f32.mrf.mxu0 }
 0x5c2   : > { %v5304_v49 = vadd.f32 %v5303_v1, %v5302_v51 }
 0x5c3   : > { %v5305_v25 = vpop.f32.mrf.mxu0 }
 0x5c5   : > { %v5306_v14 = vpop.f32.mrf.mxu0 }
 0x5c6   : > { %v5307_v50 = vadd.f32 %v5306_v14, %v5305_v25 }
 0x5c8   : > { %v2537_v23 = vpack.c.bf16 %v5307_v50, %v5304_v49 }
 0x5c9   : > { %v5308_v7 = vpop.f32.mrf.mxu0 }
 0x5ca   : > { %5620 = vmatprep.mubr.bf16.mxu1 %v2537_v23 }
 0x5cb   : > { %v5309_v56 = vpop.f32.mrf.mxu0 }
 0x5cc   : > { %v5310_v53 = vadd.f32 %v5309_v56, %v5308_v7 }
 0x5cd   : > { %v5311_v33 = vpop.f32.mrf.mxu0 }
 0x5cf   : > { %v5312_v9 = vpop.f32.mrf.mxu0 }
 0x5d0   : > { %v5313_v32 = vadd.f32 %v5312_v9, %v5311_v33 }
 0x5d1   : > { %v5314_v48 = vpop.f32.mrf.mxu0 }
 0x5d2   : > { %v2538_v18 = vpack.c.bf16 %v5313_v32, %v5310_v53 }
 0x5d3   : > { %v5315_v47 = vpop.f32.mrf.mxu0 }
 0x5d4   : > { %5621 = vmatmul.mubr.bf16.vlgmr.msra.gmra.mxu1 %v2538_v18  ;;  %v5316_v19 = vadd.f32 %v5315_v47, %v5314_v48 }
 0x5d5   : > { %v5317_v28 = vpop.f32.mrf.mxu0 }
 0x5d7   : > { %v5318_v58 = vpop.f32.mrf.mxu0 }
 0x5d8   : > { %v5319_v36 = vadd.f32 %v5318_v58, %v5317_v28 }
 0x5d9   : > { %v5320_v45 = vpop.f32.mrf.mxu0 }
 0x5da   : > { %v2539_v8 = vpack.c.bf16 %v5319_v36, %v5316_v19 }
 0x5db   : > { %v5321_v35 = vpop.f32.mrf.mxu0 }
 0x5dc   : > { %5624 = vmatprep.mubr.bf16.mxu1 %v2539_v8  ;;  %v5322_v52 = vadd.f32 %v5321_v35, %v5320_v45 }
 0x5dd   : > { %v5323_v39 = vpop.f32.mrf.mxu0 }
 0x5df   : > { %v5324_v3 = vpop.f32.mrf.mxu0 }
 0x5e0   : > { %v5325_v21 = vadd.f32 %v5324_v3, %v5323_v39 }
 0x5e1   : > { %v5326_v59 = vpop.f32.mrf.mxu0 }
 0x5e2   : > { %v2540_v38 = vpack.c.bf16 %v5325_v21, %v5322_v52 }
 0x5e3   : > { %v5327_v44 = vpop.f32.mrf.mxu0 }
 0x5e4   : > { %5625 = vmatmul.mubr.bf16.gmra.mxu1 %v2540_v38  ;;  %v5328_v5 = vadd.f32 %v5327_v44, %v5326_v59 }
 0x5e5   : > { %v5329_v30 = vpop.f32.mrf.mxu0 }
 0x5e7   : > { %v5330_v60 = vpop.f32.mrf.mxu0 }
 0x5e8   : > { %v5331_v41 = vadd.f32 %v5330_v60, %v5329_v30 }
 0x5e9   : > { %v5332_v37 = vpop.f32.mrf.mxu0 }
 0x5ea   : > { %v2541_v15 = vpack.c.bf16 %v5331_v41, %v5328_v5 }
 0x5eb   : > { %v5333_v42 = vpop.f32.mrf.mxu0 }
 0x5ec   : > { %5628 = vmatprep.mubr.bf16.mxu1 %v2541_v15  ;;  %v5334_v10 = vadd.f32 %v5333_v42, %v5332_v37 }
 0x5ed   : > { %v5335_v55 = vpop.f32.mrf.mxu0 }
 0x5ef   : > { %v5336_v24 = vpop.f32.mrf.mxu0 }
 0x5f0   : > { %v5337_v6 = vadd.f32 %v5336_v24, %v5335_v55 }
 0x5f1   : > { %v5338_v0 = vpop.f32.mrf.mxu0 }
 0x5f2   : > { %v2542_v57 = vpack.c.bf16 %v5337_v6, %v5334_v10 }
 0x5f3   : > { %v5339_v11 = vpop.f32.mrf.mxu0 }
 0x5f4   : > { %5629 = vmatmul.mubr.bf16.gmra.mxu1 %v2542_v57  ;;  %v5340_v2 = vadd.f32 %v5339_v11, %v5338_v0 }
 0x5f5   : > { %v5341_v43 = vpop.f32.mrf.mxu0 }
 0x5f7   : > { %v5342_v40 = vpop.f32.mrf.mxu0 }
 0x5f8   : > { %v5343_v61 = vadd.f32 %v5342_v40, %v5341_v43 }
 0x5f9   : > { %v5344_v31 = vpop.f32.mrf.mxu0 }
 0x5fa   : > { %v2543_v20 = vpack.c.bf16 %v5343_v61, %v5340_v2 }
 0x5fb   : > { %v5345_v62 = vpop.f32.mrf.mxu0 }
 0x5fc   : > { %5632 = vmatprep.mubr.bf16.mxu1 %v2543_v20  ;;  %v5346_v46 = vadd.f32 %v5345_v62, %v5344_v31  ;;  %v8185_v62 = vld [vmem:[%s9407_s8] ss:$0 sm:$0xff] }
 0x5fd   : > { %v5347_v27 = vpop.f32.mrf.mxu0 }
 0x5ff   : > { %v5348_v54 = vpop.f32.mrf.mxu0 }
 0x600   : > { %v5349_v22 = vadd.f32 %v5348_v54, %v5347_v27 }
 0x601   : > { %v5350_v29 = vpop.f32.mrf.mxu0 }
 0x602   : > { %v2544_v17 = vpack.c.bf16 %v5349_v22, %v5346_v46 }
 0x603   : > { %v5351_v16 = vpop.f32.mrf.mxu0 }
 0x604   : > { %5633 = vmatmul.mubr.bf16.gmra.mxu1 %v2544_v17  ;;  %v5352_v13 = vadd.f32 %v5351_v16, %v5350_v29  ;;  %v9701_v29 = vld [vmem:[#allocation34_spill] sm:$0xff] }
 0x605   : > { %v5353_v4 = vpop.f32.mrf.mxu0 }
 0x607   : > { %v5354_v12 = vpop.f32.mrf.mxu0 }
 0x608   : > { %v5355_v63 = vadd.f32 %v5354_v12, %v5353_v4 }
 0x609   : > { %v5356_v26 = vpop.f32.mrf.mxu0 }
 0x60a   : > { %v2545_v51 = vpack.c.bf16 %v5355_v63, %v5352_v13  ;;  %v9702_v13 = vld [vmem:[#allocation35_spill] sm:$0xff] }
 0x60b   : > { %v5357_v1 = vpop.f32.mrf.mxu0 }
 0x60c   : > { %5636 = vmatprep.mubr.bf16.mxu1 %v2545_v51  ;;  %v5358_v49 = vadd.f32 %v5357_v1, %v5356_v26  ;;  %v9703_v26 = vld [vmem:[#allocation36_spill] sm:$0xff]  ;;  %v9704_v1 = vld [vmem:[#allocation37_spill] sm:$0xff] }
 0x60d   : > { %v5359_v25 = vpop.f32.mrf.mxu0 }
 0x60f   : > { %v5360_v14 = vpop.f32.mrf.mxu0 }
 0x610   : > { %v5361_v50 = vadd.f32 %v5360_v14, %v5359_v25 }
 0x611   : > { %v5362_v23 = vpop.f32.mrf.mxu0 }
 0x612   : > { %v2546_v7 = vpack.c.bf16 %v5361_v50, %v5358_v49 }
 0x613   : > { %v5363_v56 = vpop.f32.mrf.mxu0 }
 0x614   : > { %5637 = vmatmul.mubr.bf16.gmra.mxu1 %v2546_v7  ;;  %v5364_v53 = vadd.f32 %v5363_v56, %v5362_v23  ;;  %v9705_v56 = vld [vmem:[#allocation38_spill] sm:$0xff] }
 0x615   : > { %v5365_v33 = vpop.f32.mrf.mxu0 }
 0x617   : > { %v5366_v9 = vpop.f32.mrf.mxu0 }
 0x618   : > { %v5367_v32 = vadd.f32 %v5366_v9, %v5365_v33 }
 0x619   : > { %v5368_v48 = vpop.f32.mrf.mxu0 }
 0x61a   : > { %v2547_v18 = vpack.c.bf16 %v5367_v32, %v5364_v53  ;;  %v9706_v32 = vld [vmem:[#allocation40_spill] sm:$0xff] }
 0x61b   : > { %v5369_v47 = vpop.f32.mrf.mxu0 }
 0x61c   : > { %5640 = vmatprep.mubr.bf16.mxu1 %v2547_v18  ;;  %v5370_v19 = vadd.f32 %v5369_v47, %v5368_v48  ;;  %v9707_v47 = vld [vmem:[#allocation39_spill] sm:$0xff] }
 0x61d   : > { %v5371_v28 = vpop.f32.mrf.mxu0 }
 0x61f   : > { %v5372_v58 = vpop.f32.mrf.mxu0 }
 0x620   : > { %v5373_v36 = vadd.f32 %v5372_v58, %v5371_v28  ;;  %v9708_v58 = vld [vmem:[#allocation41_spill] sm:$0xff] }
 0x622   : > { %v2548_v45 = vpack.c.bf16 %v5373_v36, %v5370_v19 }
 0x624   : > { %5641 = vmatmul.mubr.bf16.gmra.mxu1 %v2548_v45 }
 0x662   : > { %v5374_v8 = vpop.f32.mrf.mxu0 }
 0x664   : > { %v5375_v35 = vpop.f32.mrf.mxu0 }
 0x665   : > { %v5376_v52 = vadd.f32 %v5375_v35, %v5374_v8 }
 0x666   : > { %v5377_v39 = vpop.f32.mrf.mxu0 }
 0x668   : > { %v5378_v3 = vpop.f32.mrf.mxu0 }
 0x669   : > { %v5379_v21 = vadd.f32 %v5378_v3, %v5377_v39  ;;  %v9709_v3 = vld [vmem:[#allocation42_spill] sm:$0xff] }
 0x66a   : > { %v5380_v59 = vpop.f32.mrf.mxu0 }
 0x66b   : > { %v2549_v38 = vpack.c.bf16 %v5379_v21, %v5376_v52 }
 0x66c   : > { %v5381_v44 = vpop.f32.mrf.mxu0 }
 0x66d   : > { %5644 = vmatprep.mubr.bf16.mxu1 %v2549_v38  ;;  %v5382_v5 = vadd.f32 %v5381_v44, %v5380_v59  ;;  %v9710_v38 = vld [vmem:[#allocation44_spill] sm:$0xff] }
 0x66e   : > { %v5383_v30 = vpop.f32.mrf.mxu0 }
 0x670   : > { %v5384_v60 = vpop.f32.mrf.mxu0 }
 0x671   : > { %v5385_v41 = vadd.f32 %v5384_v60, %v5383_v30  ;;  %v9711_v60 = vld [vmem:[#allocation43_spill] sm:$0xff] }
 0x672   : > { %v5386_v37 = vpop.f32.mrf.mxu0 }
 0x673   : > { %v2550_v15 = vpack.c.bf16 %v5385_v41, %v5382_v5  ;;  %v9712_v41 = vld [vmem:[#allocation45_spill] sm:$0xff] }
 0x674   : > { %v5387_v42 = vpop.f32.mrf.mxu0 }
 0x675   : > { %5645 = vmatmul.mubr.bf16.gmra.mxu1 %v2550_v15  ;;  %v5388_v10 = vadd.f32 %v5387_v42, %v5386_v37 }
 0x676   : > { %v5389_v55 = vpop.f32.mrf.mxu0 }
 0x678   : > { %v5390_v24 = vpop.f32.mrf.mxu0 }
 0x679   : > { %v5391_v6 = vadd.f32 %v5390_v24, %v5389_v55 }
 0x67a   : > { %v5392_v0 = vpop.f32.mrf.mxu0 }
 0x67b   : > { %v2551_v57 = vpack.c.bf16 %v5391_v6, %v5388_v10  ;;  %v9713_v6 = vld [vmem:[#allocation46_spill] sm:$0xff] }
 0x67c   : > { %v5393_v11 = vpop.f32.mrf.mxu0 }
 0x67d   : > { %5648 = vmatprep.mubr.bf16.mxu1 %v2551_v57  ;;  %v5394_v2 = vadd.f32 %v5393_v11, %v5392_v0 }
 0x67e   : > { %v5395_v43 = vpop.f32.mrf.mxu0 }
 0x680   : > { %v5396_v40 = vpop.f32.mrf.mxu0 }
 0x681   : > { %v5397_v61 = vadd.f32 %v5396_v40, %v5395_v43  ;;  %v9714_v43 = vld [vmem:[#allocation50_spill] sm:$0xff] }
 0x683   : > { %v2552_v31 = vpack.c.bf16 %v5397_v61, %v5394_v2  ;;  %v9715_v61 = vld [vmem:[#allocation47_spill] sm:$0xff] }
 0x685   : > { %5649 = vmatmul.mubr.bf16.gmra.mxu1 %v2552_v31 }
 0x694   : > { %v5622_v20 = vpop.f32.mrf.mxu1 }
 0x695   : > { %v2667_v22 = vadd.f32 %v5622_v20, %v8185_v62  ;;  %v9716_v20 = vld [vmem:[#allocation51_spill] sm:$0xff] }
 0x696   : > { %v2658_v27 = vpop.f32.mrf.mxu1 }
 0x697   : > { %v2659_v54 = vadd.f32 %v8185_v62, %v2658_v27  ;;  %v8199_v51 = vadd.f32 %v2667_v22, %v9703_v26 }
 0x698   : > { %v5623_v46 = vpop.f32.mrf.mxu1 }
 0x699   : > { %v8190_v17 = vadd.f32 %v2659_v54, %v9701_v29  ;;  %v2670_v12 = vadd.f32 %v5623_v46, %v8185_v62 }
 0x69a   : > { %v2661_v16 = vpop.f32.mrf.mxu1 }
 0x69b   : > { %v2662_v4 = vadd.f32 %v8185_v62, %v2661_v16  ;;  %2817 = vadd.xlane.f32.xlu0 %v8190_v17  ;;  %v8204_v25 = vadd.f32 %v2670_v12, %v9704_v1  ;;  %v9718_v1 = vld [vmem:[#allocation52_spill] sm:$0xff] }
 0x69d   : > { %v8196_v63 = vadd.f32 %v2662_v4, %v9702_v13  ;;  %v9717_v4 = vld [vmem:[#allocation48_spill] sm:$0xff] }
 0x69f   : > { %2821 = vadd.xlane.f32.xlu0 %v8199_v51  ;;  %2819 = vadd.xlane.f32.xlu1 %v8196_v63 }
 0x6a3   : > { %2823 = vadd.xlane.f32.xlu1 %v8204_v25 }
 0x6a4   : > { %v5626_v14 = vpop.f32.mrf.mxu1 }
 0x6a5   : > { %v2683_v7 = vadd.f32 %v5626_v14, %v8185_v62 }
 0x6a6   : > { %v2674_v49 = vpop.f32.mrf.mxu1 }
 0x6a7   : > { %v2675_v50 = vadd.f32 %v8185_v62, %v2674_v49  ;;  %v8215_v48 = vadd.f32 %v2683_v7, %v9706_v32  ;;  %v9720_v7 = vld [vmem:[#allocation53_spill] sm:$0xff] }
 0x6a8   : > { %v5627_v23 = vpop.f32.mrf.mxu1 }
 0x6a9   : > { %v8210_v33 = vadd.f32 %v2675_v50, %v9705_v56  ;;  %v2686_v18 = vadd.f32 %v5627_v23, %v8185_v62  ;;  %v9719_v50 = vld [vmem:[#allocation49_spill] sm:$0xff] }
 0x6aa   : > { %v2677_v9 = vpop.f32.mrf.mxu1 }
 0x6ab   : > { %v2678_v53 = vadd.f32 %v8185_v62, %v2677_v9  ;;  %2825 = vadd.xlane.f32.xlu0 %v8210_v33  ;;  %v8224_v19 = vadd.f32 %v2686_v18, %v9708_v58  ;;  %v5813_v9 = vld [vmem:[#allocation13 + $0x70] ss:$8 sps:$4 sm:$0xff]  }
 0x6ad   : > { %v8219_v28 = vadd.f32 %v2678_v53, %v9707_v47  ;;  %v5815_v53 = vld [vmem:[#allocation13 + $0x74] ss:$8 sps:$4 sm:$0xff]  }
 0x6ae   : > { %3372 = vmatprep.subr.bf16.mxu0 %v5815_v53  ;;  %v5821_v53 = vld [vmem:[#allocation13 + $0x54] ss:$8 sps:$4 sm:$0xff]  }
 0x6af   : > { %2829 = vadd.xlane.f32.xlu0 %v8215_v48  ;;  %2827 = vadd.xlane.f32.xlu1 %v8219_v28 }
 0x6b0   : > { %3373 = vmatpush1.bf16.msra.mxu0 %v5813_v9 }
 0x6b3   : > { %2831 = vadd.xlane.f32.xlu1 %v8224_v19 }
 0x6b4   : > { %v5630_v36 = vpop.f32.mrf.mxu1 }
 0x6b5   : > { %v2699_v39 = vadd.f32 %v5630_v36, %v8185_v62 }
 0x6b6   : > { %v2690_v45 = vpop.f32.mrf.mxu1 }
 0x6b7   : > { %v2691_v8 = vadd.f32 %v8185_v62, %v2690_v45  ;;  %v8235_v44 = vadd.f32 %v2699_v39, %v9710_v38 }
 0x6b8   : > { %v5631_v35 = vpop.f32.mrf.mxu1 }
 0x6b9   : > { %v8230_v52 = vadd.f32 %v2691_v8, %v9709_v3  ;;  %v2702_v30 = vadd.f32 %v5631_v35, %v8185_v62 }
 0x6ba   : > { %v2693_v21 = vpop.f32.mrf.mxu1 }
 0x6bb   : > { %v2694_v59 = vadd.f32 %v8185_v62, %v2693_v21  ;;  %2833 = vadd.xlane.f32.xlu0 %v8230_v52  ;;  %v8244_v37 = vadd.f32 %v2702_v30, %v9712_v41 }
 0x6bd   : > { %v8239_v5 = vadd.f32 %v2694_v59, %v9711_v60  ;;  %v9721_v60 = vld [vmem:[#allocation54_spill] sm:$0xff] }
 0x6bf   : > { %2835 = vadd.xlane.f32.xlu1 %v8239_v5  ;;  %2837 = vadd.xlane.f32.xlu0 %v8235_v44 }
 0x6c3   : > { %2839 = vadd.xlane.f32.xlu1 %v8244_v37 }
 0x6c4   : > { %v5634_v15 = vpop.f32.mrf.mxu1 }
 0x6c5   : > { %v2715_v10 = vadd.f32 %v5634_v15, %v8185_v62 }
 0x6c6   : > { %v2706_v42 = vpop.f32.mrf.mxu1 }
 0x6c7   : > { %v2707_v55 = vadd.f32 %v8185_v62, %v2706_v42  ;;  %v8255_v40 = vadd.f32 %v2715_v10, %v9714_v43  ;;  %v9722_v10 = vld [vmem:[#allocation55_spill] sm:$0xff]  ;;  %v9723_v43 = vld [vmem:[#allocation56_spill] sm:$0xff] }
 0x6c8   : > { %v5635_v24 = vpop.f32.mrf.mxu1 }
 0x6c9   : > { %v8250_v0 = vadd.f32 %v2707_v55, %v9713_v6  ;;  %v2718_v2 = vadd.f32 %v5635_v24, %v8185_v62 }
 0x6ca   : > { %v2709_v57 = vpop.f32.mrf.mxu1 }
 0x6cb   : > { %v2710_v11 = vadd.f32 %v8185_v62, %v2709_v57  ;;  %2841 = vadd.xlane.f32.xlu0 %v8250_v0  ;;  %v8264_v27 = vadd.f32 %v2718_v2, %v9716_v20 }
 0x6cd   : > { %v8259_v31 = vadd.f32 %v2710_v11, %v9715_v61 }
 0x6cf   : > { %2843 = vadd.xlane.f32.xlu1 %v8259_v31  ;;  %2845 = vadd.xlane.f32.xlu0 %v8255_v40 }
 0x6d3   : > { %2847 = vadd.xlane.f32.xlu1 %v8264_v27 }
 0x6d4   : > { %v5638_v54 = vpop.f32.mrf.mxu1 }
 0x6d5   : > { %v2731_v16 = vadd.f32 %v5638_v54, %v8185_v62 }
 0x6d6   : > { %v2722_v46 = vpop.f32.mrf.mxu1 }
 0x6d7   : > { %v2723_v22 = vadd.f32 %v8185_v62, %v2722_v46  ;;  %v8275_v14 = vadd.f32 %v2731_v16, %v9718_v1  ;;  %v5816_v16 = vld [vmem:[#allocation13 + $0x60] ss:$8 sps:$4 sm:$0xff]  }
 0x6d8   : > { %v5639_v29 = vpop.f32.mrf.mxu1  ;;  %v9724_v1 = vld [vmem:[#allocation57_spill] sm:$0xff] }
 0x6d9   : > { %v8270_v12 = vadd.f32 %v2723_v22, %v9717_v4  ;;  %v2734_v49 = vadd.f32 %v5639_v29, %v8185_v62  ;;  %v5818_v22 = vld [vmem:[#allocation13 + $0x64] ss:$8 sps:$4 sm:$0xff]  }
 0x6da   : > { %v2725_v13 = vpop.f32.mrf.mxu1  ;;  %3374 = vmatprep.subr.bf16.mxu0 %v5818_v22  ;;  %v5828_v22 = vld [vmem:[#allocation13 + $0x20] ss:$8 sps:$4 sm:$0xff]  }
 0x6db   : > { %v2726_v26 = vadd.f32 %v8185_v62, %v2725_v13  ;;  %2849 = vadd.xlane.f32.xlu0 %v8270_v12  ;;  %v8284_v56 = vadd.f32 %v2734_v49, %v9720_v7  ;;  %3375 = vmatpush1.bf16.msra.mxu0 %v5816_v16 }
 0x6dc   : > { %3376 = vmatprep.subr.bf16.mxu0 %v5821_v53 }
 0x6dd   : > { %v8279_v23 = vadd.f32 %v2726_v26, %v9719_v50 }
 0x6df   : > { %2851 = vadd.xlane.f32.xlu1 %v8279_v23  ;;  %2853 = vadd.xlane.f32.xlu0 %v8275_v14 }
 0x6e3   : > { %2855 = vadd.xlane.f32.xlu1 %v8284_v56 }
 0x6e4   : > { %v5642_v32 = vpop.f32.mrf.mxu1 }
 0x6e6   : > { %v2738_v18 = vpop.f32.mrf.mxu1 }
 0x6e7   : > { %v2739_v8 = vadd.f32 %v8185_v62, %v2738_v18 }
 0x6e8   : > { %v5643_v36 = vpop.f32.mrf.mxu1 }
 0x6e9   : > { %v8297_v41 = vadd.f32 %v2739_v8, %v9721_v60  ;;  %v2750_v61 = vadd.f32 %v5643_v36, %v8185_v62  ;;  %v9726_v60 = vld [vmem:[#allocation59_spill] sm:$0xff] }
 0x6ea   : > { %v2741_v38 = vpop.f32.mrf.mxu1 }
 0x6eb   : > { %v8328_v49 = vadd.f32 %v2750_v61, %v9724_v1 }
 0x724   : > { %v2818_v47 = vpop.xlane.xlu0 %2817 }
 0x725   : > { %v2882_v58 = vmul.f32 0.0078125, %v2818_v47  ;;  %v5819_v47 = vld [vmem:[#allocation13 + $0x50] ss:$8 sps:$4 sm:$0xff]  }
 0x726   : > { %3377 = vmatpush1.bf16.msra.mxu0 %v5819_v47  ;;  %v9729_v47 = vld [vmem:[#allocation62_spill] sm:$0xff] }
 0x727   : > { %v8288_v45 = vsub.f32 %v8190_v17, %v2882_v58  ;;  %v2742_v17 = vadd.f32 %v8185_v62, %v2741_v38  ;;  %v9725_v58 = vld [vmem:[#allocation58_spill] sm:$0xff] }
 0x728   : > { %v2822_v35 = vpop.xlane.xlu0 %2821  ;;  %v2820_v39 = vpop.xlane.xlu1 %2819 }
 0x729   : > { %v2884_v3 = vmul.f32 0.0078125, %v2822_v35  ;;  %v2883_v21 = vmul.f32 0.0078125, %v2820_v39  ;;  %v2946_v59 = vmul.f32 %v8288_v45, %v8288_v45  ;;  %v8308_v6 = vadd.f32 %v2742_v17, %v9722_v10  ;;  %v9727_v10 = vld [vmem:[#allocation60_spill] sm:$0xff] }
 0x72b   : > { %v8294_v30 = vsub.f32 %v8196_v63, %v2883_v21  ;;  %2978 = vadd.xlane.f32.xlu0 %v2946_v59  ;;  %v8301_v42 = vsub.f32 %v8199_v51, %v2884_v3  ;;  %v2747_v63 = vadd.f32 %v5642_v32, %v8185_v62  ;;  %v5824_v21 = vld [vmem:[#allocation13 + $0x44] ss:$8 sps:$4 sm:$0xff]   ;;  %v5822_v59 = vld [vmem:[#allocation13 + $0x40] ss:$8 sps:$4 sm:$0xff]  }
 0x72c   : > { %v2824_v15 = vpop.xlane.xlu1 %2823  ;;  %3378 = vmatprep.subr.bf16.mxu0 %v5824_v21  ;;  %v5836_v21 = vld [vmem:[#allocation13 + $0x4] ss:$8 sps:$4 sm:$0xff]  }
 0x72d   : > { %v2885_v55 = vmul.f32 0.0078125, %v2824_v15  ;;  %v2947_v24 = vmul.f32 %v8294_v30, %v8294_v30  ;;  %v2948_v11 = vmul.f32 %v8301_v42, %v8301_v42  ;;  %v8317_v2 = vadd.f32 %v2747_v63, %v9723_v43  ;;  %3379 = vmatpush1.bf16.msra.mxu0 %v5822_v59  ;;  %v5834_v59 = vld [vmem:[#allocation13] ss:$8 sps:$4 sm:$0xff]  }
 0x72f   : > { %2857 = vadd.xlane.f32.xlu0 %v8297_v41  ;;  %2980 = vadd.xlane.f32.xlu1 %v2947_v24  ;;  %v8311_v57 = vsub.f32 %v8204_v25, %v2885_v55  ;;  %v5827_v55 = vld [vmem:[#allocation13 + $0x34] ss:$8 sps:$4 sm:$0xff]   ;;  %v5825_v24 = vld [vmem:[#allocation13 + $0x30] ss:$8 sps:$4 sm:$0xff]  }
 0x730   : > { %3380 = vmatprep.subr.bf16.mxu0 %v5827_v55 }
 0x731   : > { %v2949_v46 = vmul.f32 %v8311_v57, %v8311_v57  ;;  %3381 = vmatpush1.bf16.msra.mxu0 %v5825_v24 }
 0x733   : > { %2982 = vadd.xlane.f32.xlu0 %v2948_v11  ;;  %2859 = vadd.xlane.f32.xlu1 %v8308_v6 }
 0x734   : > { %v2826_v51 = vpop.xlane.xlu0 %2825 }
 0x735   : > { %v2886_v20 = vmul.f32 0.0078125, %v2826_v51  ;;  %v5646_v54 = vpop.f32.mrf.mxu1 }
 0x736   : > { %v2763_v38 = vadd.f32 %v5646_v54, %v8185_v62 }
 0x737   : > { %v8323_v25 = vsub.f32 %v8210_v33, %v2886_v20  ;;  %2861 = vadd.xlane.f32.xlu0 %v8317_v2  ;;  %2984 = vadd.xlane.f32.xlu1 %v2949_v46  ;;  %v2754_v29 = vpop.f32.mrf.mxu1  ;;  %v5830_v20 = vld [vmem:[#allocation13 + $0x24] ss:$8 sps:$4 sm:$0xff]  }
 0x738   : > { %v2830_v4 = vpop.xlane.xlu0 %2829  ;;  %v2755_v13 = vadd.f32 %v8185_v62, %v2754_v29  ;;  %v2828_v26 = vpop.xlane.xlu1 %2827  ;;  %v8357_v11 = vadd.f32 %v2763_v38, %v9727_v10  ;;  %3382 = vmatprep.subr.bf16.mxu0 %v5830_v20 }
 0x739   : > { %v2888_v50 = vmul.f32 0.0078125, %v2830_v4  ;;  %v2887_v7 = vmul.f32 0.0078125, %v2828_v26  ;;  %v5647_v9 = vpop.f32.mrf.mxu1  ;;  %v2950_v33 = vmul.f32 %v8323_v25, %v8323_v25  ;;  %3383 = vmatpush1.bf16.msra.mxu0 %v5828_v22 }
 0x73a   : > { %v8337_v36 = vadd.f32 %v2755_v13, %v9725_v58  ;;  %v2766_v51 = vadd.f32 %v5647_v9, %v8185_v62  ;;  %v9728_v13 = vld [vmem:[#allocation61_spill] sm:$0xff]  ;;  %v5833_v9 = vld [vmem:[#allocation13 + $0x14] ss:$8 sps:$4 sm:$0xff]  }
 0x73b   : > { %v8333_v32 = vsub.f32 %v8219_v28, %v2887_v7  ;;  %2986 = vadd.xlane.f32.xlu0 %v2950_v33  ;;  %2863 = vadd.xlane.f32.xlu1 %v8328_v49  ;;  %v2757_v18 = vpop.f32.mrf.mxu1  ;;  %v8340_v35 = vsub.f32 %v8215_v48, %v2888_v50 }
 0x73c   : > { %v2832_v8 = vpop.xlane.xlu1 %2831  ;;  %v2758_v39 = vadd.f32 %v8185_v62, %v2757_v18  ;;  %v8368_v26 = vadd.f32 %v2766_v51, %v9728_v13  ;;  %v5831_v18 = vld [vmem:[#allocation13 + $0x10] ss:$8 sps:$4 sm:$0xff]   ;;  %3384 = vmatprep.subr.bf16.mxu0 %v5833_v9 }
 0x73d   : > { %v2889_v3 = vmul.f32 0.0078125, %v2832_v8  ;;  %v2951_v28 = vmul.f32 %v8333_v32, %v8333_v32  ;;  %v2952_v17 = vmul.f32 %v8340_v35, %v8340_v35  ;;  %3385 = vmatpush1.bf16.msra.mxu0 %v5831_v18 }
 0x73e   : > { %v8348_v15 = vadd.f32 %v2758_v39, %v9726_v60  ;;  %3386 = vmatprep.subr.bf16.mxu0 %v5836_v21  ;;  %v9730_v60 = vld [vmem:[#allocation63_spill] sm:$0xff] }
 0x73f   : > { %2865 = vadd.xlane.f32.xlu0 %v8337_v36  ;;  %2988 = vadd.xlane.f32.xlu1 %v2951_v28  ;;  %v8351_v48 = vsub.f32 %v8224_v19, %v2889_v3 }
 0x741   : > { %v2953_v19 = vmul.f32 %v8351_v48, %v8351_v48  ;;  %3387 = vmatpush1.bf16.msra.mxu0 %v5834_v59 }
 0x743   : > { %2990 = vadd.xlane.f32.xlu0 %v2952_v17  ;;  %2867 = vadd.xlane.f32.xlu1 %v8348_v15 }
 0x744   : > { %v2834_v63 = vpop.xlane.xlu0 %2833 }
 0x745   : > { %v2890_v43 = vmul.f32 0.0078125, %v2834_v63  ;;  %v5650_v61 = vpop.f32.mrf.mxu1  ;;  %v9731_v63 = vld [vmem:[#allocation64_spill] sm:$0xff] }
 0x746   : > { %v2779_v38 = vadd.f32 %v5650_v61, %v8185_v62 }
 0x747   : > { %v8363_v54 = vsub.f32 %v8230_v52, %v2890_v43  ;;  %2869 = vadd.xlane.f32.xlu0 %v8357_v11  ;;  %2992 = vadd.xlane.f32.xlu1 %v2953_v19  ;;  %v2770_v46 = vpop.f32.mrf.mxu1 }
 0x748   : > { %v2838_v29 = vpop.xlane.xlu0 %2837  ;;  %v2771_v16 = vadd.f32 %v8185_v62, %v2770_v46  ;;  %v2836_v4 = vpop.xlane.xlu1 %2835  ;;  %v8397_v10 = vadd.f32 %v2779_v38, %v9731_v63  ;;  %v9732_v46 = vld [vmem:[#allocation65_spill] sm:$0xff] }
 0x749   : > { %v2892_v1 = vmul.f32 0.0078125, %v2838_v29  ;;  %v2891_v50 = vmul.f32 0.0078125, %v2836_v4  ;;  %v5651_v7 = vpop.f32.mrf.mxu1  ;;  %v2954_v52 = vmul.f32 %v8363_v54, %v8363_v54 }
 0x74a   : > { %v8377_v58 = vadd.f32 %v2771_v16, %v9729_v47  ;;  %v2782_v51 = vadd.f32 %v5651_v7, %v8185_v62 }
 0x74b   : > { %v8373_v33 = vsub.f32 %v8239_v5, %v2891_v50  ;;  %2994 = vadd.xlane.f32.xlu0 %v2954_v52  ;;  %2871 = vadd.xlane.f32.xlu1 %v8368_v26  ;;  %v2773_v53 = vpop.f32.mrf.mxu1  ;;  %v8380_v39 = vsub.f32 %v8235_v44, %v2892_v1 }
 0x74c   : > { %v2840_v8 = vpop.xlane.xlu1 %2839  ;;  %v2774_v3 = vadd.f32 %v8185_v62, %v2773_v53  ;;  %v8407_v22 = vadd.f32 %v2782_v51, %v9732_v46 }
 0x74d   : > { %v2893_v28 = vmul.f32 0.0078125, %v2840_v8  ;;  %v2955_v5 = vmul.f32 %v8373_v33, %v8373_v33  ;;  %v2956_v55 = vmul.f32 %v8380_v39, %v8380_v39 }
 0x74e   : > { %v8388_v17 = vadd.f32 %v2774_v3, %v9730_v60 }
 0x74f   : > { %2873 = vadd.xlane.f32.xlu0 %v8377_v58  ;;  %2996 = vadd.xlane.f32.xlu1 %v2955_v5  ;;  %v8391_v44 = vsub.f32 %v8244_v37, %v2893_v28 }
 0x751   : > { %v2957_v61 = vmul.f32 %v8391_v44, %v8391_v44 }
 0x753   : > { %2998 = vadd.xlane.f32.xlu0 %v2956_v55  ;;  %2875 = vadd.xlane.f32.xlu1 %v8388_v17 }
 0x754   : > { %v2842_v24 = vpop.xlane.xlu0 %2841 }
 0x755   : > { %v2894_v43 = vmul.f32 0.0078125, %v2842_v24 }
 0x757   : > { %v8403_v37 = vsub.f32 %v8250_v0, %v2894_v43  ;;  %2877 = vadd.xlane.f32.xlu0 %v8397_v10  ;;  %3000 = vadd.xlane.f32.xlu1 %v2957_v61 }
 0x758   : > { %v2846_v19 = vpop.xlane.xlu0 %2845  ;;  %v2844_v20 = vpop.xlane.xlu1 %2843 }
 0x759   : > { %v2896_v29 = vmul.f32 0.0078125, %v2846_v19  ;;  %v2895_v16 = vmul.f32 0.0078125, %v2844_v20  ;;  %v2958_v62 = vmul.f32 %v8403_v37, %v8403_v37 }
 0x75b   : > { %v8412_v4 = vsub.f32 %v8255_v40, %v2896_v29  ;;  %v8415_v13 = vsub.f32 %v8259_v31, %v2895_v16  ;;  %3002 = vadd.xlane.f32.xlu0 %v2958_v62  ;;  %2879 = vadd.xlane.f32.xlu1 %v8407_v22 }
 0x75c   : > { %v2848_v0 = vpop.xlane.xlu1 %2847 }
 0x75d   : > { %v2897_v1 = vmul.f32 0.0078125, %v2848_v0  ;;  %v2960_v50 = vmul.f32 %v8412_v4, %v8412_v4  ;;  %v2959_v7 = vmul.f32 %v8415_v13, %v8415_v13 }
 0x75f   : > { %v8423_v52 = vsub.f32 %v8264_v27, %v2897_v1  ;;  %3006 = vadd.xlane.f32.xlu0 %v2960_v50  ;;  %3004 = vadd.xlane.f32.xlu1 %v2959_v7 }
 0x761   : > { %v2961_v40 = vmul.f32 %v8423_v52, %v8423_v52 }
 0x763   : > { %3008 = vadd.xlane.f32.xlu1 %v2961_v40 }
 0x764   : > { %v2850_v31 = vpop.xlane.xlu0 %2849 }
 0x765   : > { %v2898_v9 = vmul.f32 0.0078125, %v2850_v31 }
 0x767   : > { %v8428_v53 = vsub.f32 %v8270_v12, %v2898_v9 }
 0x768   : > { %v2854_v18 = vpop.xlane.xlu0 %2853  ;;  %v2852_v47 = vpop.xlane.xlu1 %2851 }
 0x769   : > { %v2900_v8 = vmul.f32 0.0078125, %v2854_v18  ;;  %v2899_v3 = vmul.f32 0.0078125, %v2852_v47  ;;  %v2962_v28 = vmul.f32 %v8428_v53, %v8428_v53 }
 0x76b   : > { %v8433_v27 = vsub.f32 %v8275_v14, %v2900_v8  ;;  %v8436_v5 = vsub.f32 %v8279_v23, %v2899_v3  ;;  %3010 = vadd.xlane.f32.xlu0 %v2962_v28 }
 0x76c   : > { %v2856_v21 = vpop.xlane.xlu1 %2855 }
 0x76d   : > { %v2901_v59 = vmul.f32 0.0078125, %v2856_v21  ;;  %v2964_v12 = vmul.f32 %v8433_v27, %v8433_v27  ;;  %v2963_v38 = vmul.f32 %v8436_v5, %v8436_v5 }
 0x76f   : > { %v8443_v60 = vsub.f32 %v8284_v56, %v2901_v59  ;;  %3014 = vadd.xlane.f32.xlu0 %v2964_v12  ;;  %3012 = vadd.xlane.f32.xlu1 %v2963_v38 }
 0x771   : > { %v2965_v14 = vmul.f32 %v8443_v60, %v8443_v60 }
 0x773   : > { %3016 = vadd.xlane.f32.xlu1 %v2965_v14 }
 0x7b4   : > { %v2979_v23 = vpop.xlane.xlu0 %2978 }
 0x7b5   : > { %v3042_v55 = vmul.f32 0.0078125, %v2979_v23 }
 0x7b7   : > { %v3074_v24 = vadd.f32 1e-05, %v3042_v55 }
 0x7b8   : > { %v2858_v63 = vpop.xlane.xlu0 %2857  ;;  %v2981_v51 = vpop.xlane.xlu1 %2980 }
 0x7b9   : > { %6045 = vrsqrt.f32 %v3074_v24  ;;  %v2902_v43 = vmul.f32 0.0078125, %v2858_v63  ;;  %v3043_v61 = vmul.f32 0.0078125, %v2981_v51 }
 0x7bb   : > { %v8448_v19 = vsub.f32 %v8297_v41, %v2902_v43  ;;  %v3075_v20 = vadd.f32 1e-05, %v3043_v61 }
 0x7bc   : > { %v2983_v56 = vpop.xlane.xlu0 %2982  ;;  %v2860_v46 = vpop.xlane.xlu1 %2859 }
 0x7bd   : > { %6047 = vrsqrt.f32 %v3075_v20  ;;  %v3044_v29 = vmul.f32 0.0078125, %v2983_v56  ;;  %v2903_v16 = vmul.f32 0.0078125, %v2860_v46  ;;  %v2966_v62 = vmul.f32 %v8448_v19, %v8448_v19  ;;  %v8481_v46 = vld [vmem:[%s9409_s10] ss:$0 sm:$0xff] }
 0x7bf   : > { %v3076_v0 = vadd.f32 1e-05, %v3044_v29  ;;  %v8453_v1 = vsub.f32 %v8308_v6, %v2903_v16  ;;  %3018 = vadd.xlane.f32.xlu0 %v2966_v62 }
 0x7c0   : > { %v2862_v50 = vpop.xlane.xlu0 %2861  ;;  %v2985_v7 = vpop.xlane.xlu1 %2984 }
 0x7c1   : > { %6049 = vrsqrt.f32 %v3076_v0  ;;  %v2904_v40 = vmul.f32 0.0078125, %v2862_v50  ;;  %v3045_v41 = vmul.f32 0.0078125, %v2985_v7  ;;  %v2967_v31 = vmul.f32 %v8453_v1, %v8453_v1 }
 0x7c3   : > { %v8458_v9 = vsub.f32 %v8317_v2, %v2904_v40  ;;  %v3077_v18 = vadd.f32 1e-05, %v3045_v41  ;;  %3020 = vadd.xlane.f32.xlu1 %v2967_v31  ;;  %v8469_v2 = vld [vmem:[%s9408_s9] ss:$0 sm:$0xff] }
 0x7c4   : > { %v2987_v47 = vpop.xlane.xlu0 %2986  ;;  %v2864_v8 = vpop.xlane.xlu1 %2863 }
 0x7c5   : > { %6051 = vrsqrt.f32 %v3077_v18  ;;  %v3046_v3 = vmul.f32 0.0078125, %v2987_v47  ;;  %v2905_v6 = vmul.f32 0.0078125, %v2864_v8  ;;  %v2968_v28 = vmul.f32 %v8458_v9, %v8458_v9 }
 0x7c6   : > { %v6046_v21 = vpop.eup %6045 }
 0x7c7   : > { %v3138_v59 = vmul.f32 %v6046_v21, %v8288_v45  ;;  %v3078_v12 = vadd.f32 1e-05, %v3046_v3  ;;  %v8464_v38 = vsub.f32 %v8328_v49, %v2905_v6  ;;  %3022 = vadd.xlane.f32.xlu0 %v2968_v28 }
 0x7c8   : > { %v2866_v14 = vpop.xlane.xlu0 %2865  ;;  %v2989_v23 = vpop.xlane.xlu1 %2988 }
 0x7c9   : > { %6053 = vrsqrt.f32 %v3078_v12  ;;  %v2906_v55 = vmul.f32 0.0078125, %v2866_v14  ;;  %v3047_v24 = vmul.f32 0.0078125, %v2989_v23  ;;  %v2969_v51 = vmul.f32 %v8464_v38, %v8464_v38 }
 0x7ca   : > { %v6048_v63 = vpop.eup %6047  ;;  %v3177_v45 = vmul.f32 %v8469_v2, %v3138_v59 }
 0x7cb   : > { %v3139_v49 = vmul.f32 %v6048_v63, %v8294_v30  ;;  %v8476_v43 = vsub.f32 %v8337_v36, %v2906_v55  ;;  %v3079_v61 = vadd.f32 1e-05, %v3047_v24  ;;  %3024 = vadd.xlane.f32.xlu1 %v2969_v51 }
 0x7cc   : > { %v2991_v20 = vpop.xlane.xlu0 %2990  ;;  %v2868_v56 = vpop.xlane.xlu1 %2867  ;;  %v8490_v7 = vadd.f32 %v8481_v46, %v3177_v45 }
 0x7cd   : > { %v3178_v29 = vmul.f32 %v8469_v2, %v3139_v49  ;;  %6055 = vrsqrt.f32 %v3079_v61  ;;  %v3048_v16 = vmul.f32 0.0078125, %v2991_v20  ;;  %v2907_v62 = vmul.f32 0.0078125, %v2868_v56 }
 0x7ce   : > { %v6050_v0 = vpop.eup %6049  ;;  %v2970_v30 = vmul.f32 %v8476_v43, %v8476_v43 }
 0x7cf   : > { %v3080_v36 = vadd.f32 1e-05, %v3048_v16  ;;  %v8487_v50 = vsub.f32 %v8348_v15, %v2907_v62  ;;  %v8493_v40 = vadd.f32 %v8481_v46, %v3178_v29  ;;  %v3140_v18 = vmul.f32 %v6050_v0, %v8301_v42 }
 0x7d0   : > { %3026 = vadd.xlane.f32.xlu0 %v2970_v30  ;;  %v2870_v41 = vpop.xlane.xlu0 %2869  ;;  %v2993_v31 = vpop.xlane.xlu1 %2992 }
 0x7d1   : > { %6057 = vrsqrt.f32 %v3080_v36  ;;  %v2908_v47 = vmul.f32 0.0078125, %v2870_v41  ;;  %v3049_v8 = vmul.f32 0.0078125, %v2993_v31  ;;  %v3248_v3 = vpack.c.bf16 %v8493_v40, %v8490_v7 }
 0x7d2   : > { %v6052_v6 = vpop.eup %6051  ;;  %v2971_v15 = vmul.f32 %v8487_v50, %v8487_v50  ;;  %v3179_v14 = vmul.f32 %v8469_v2, %v3140_v18 }
 0x7d3   : > { %v8501_v28 = vsub.f32 %v8357_v11, %v2908_v47  ;;  %v3081_v21 = vadd.f32 1e-05, %v3049_v8  ;;  %3405 = vmatmul.mubr.bf16.vlgmr.msra.gmra.mxu0 %v3248_v3  ;;  %v3141_v59 = vmul.f32 %v6052_v6, %v8311_v57 }
 0x7d4   : > { %3028 = vadd.xlane.f32.xlu1 %v2971_v15  ;;  %v2995_v12 = vpop.xlane.xlu0 %2994  ;;  %v2872_v42 = vpop.xlane.xlu1 %2871  ;;  %3414 = vmatprep.mubr.bf16.mxu0 %v9700_v34  ;;  %v8513_v61 = vadd.f32 %v8481_v46, %v3179_v14 }
 0x7d5   : > { %6059 = vrsqrt.f32 %v3081_v21  ;;  %v3050_v23 = vmul.f32 0.0078125, %v2995_v12  ;;  %v2909_v55 = vmul.f32 0.0078125, %v2872_v42  ;;  %v2972_v24 = vmul.f32 %v8501_v28, %v8501_v28 }
 0x7d6   : > { %v6054_v63 = vpop.eup %6053  ;;  %v3180_v11 = vmul.f32 %v8469_v2, %v3141_v59 }
 0x7d7   : > { %v3082_v51 = vadd.f32 1e-05, %v3050_v23  ;;  %v8510_v45 = vsub.f32 %v8368_v26, %v2909_v55  ;;  %3030 = vadd.xlane.f32.xlu0 %v2972_v24  ;;  %v3142_v56 = vmul.f32 %v6054_v63, %v8323_v25 }
 0x7d8   : > { %v2874_v57 = vpop.xlane.xlu0 %2873  ;;  %v2997_v49 = vpop.xlane.xlu1 %2996  ;;  %v8516_v20 = vadd.f32 %v8481_v46, %v3180_v11 }
 0x7d9   : > { %6061 = vrsqrt.f32 %v3082_v51  ;;  %v2910_v29 = vmul.f32 0.0078125, %v2874_v57  ;;  %v3051_v16 = vmul.f32 0.0078125, %v2997_v49  ;;  %v2973_v62 = vmul.f32 %v8510_v45, %v8510_v45 }
 0x7da   : > { %v6056_v0 = vpop.eup %6055  ;;  %v3249_v26 = vpack.c.bf16 %v8516_v20, %v8513_v61  ;;  %v3181_v18 = vmul.f32 %v8469_v2, %v3142_v56 }
 0x7db   : > { %v8524_v30 = vsub.f32 %v8377_v58, %v2910_v29  ;;  %v3083_v36 = vadd.f32 1e-05, %v3051_v16  ;;  %3032 = vadd.xlane.f32.xlu1 %v2973_v62  ;;  %v3143_v41 = vmul.f32 %v6056_v0, %v8333_v32 }
 0x7dc   : > { %3415 = vmatmul.mubr.bf16.gmra.mxu0 %v3249_v26  ;;  %v2999_v31 = vpop.xlane.xlu0 %2998  ;;  %v2876_v25 = vpop.xlane.xlu1 %2875  ;;  %v8536_v12 = vadd.f32 %v8481_v46, %v3181_v18 }
 0x7dd   : > { %6063 = vrsqrt.f32 %v3083_v36  ;;  %v3052_v47 = vmul.f32 0.0078125, %v2999_v31  ;;  %v2911_v8 = vmul.f32 0.0078125, %v2876_v25  ;;  %v2974_v3 = vmul.f32 %v8524_v30, %v8524_v30  ;;  %3424 = vmatprep.mubr.bf16.mxu0 %v9700_v34 }
 0x7de   : > { %v6058_v6 = vpop.eup %6057  ;;  %v3182_v58 = vmul.f32 %v8469_v2, %v3143_v41 }
 0x7df   : > { %v3084_v15 = vadd.f32 1e-05, %v3052_v47  ;;  %v8533_v21 = vsub.f32 %v8388_v17, %v2911_v8  ;;  %3034 = vadd.xlane.f32.xlu0 %v2974_v3  ;;  %v3144_v14 = vmul.f32 %v6058_v6, %v8340_v35 }
 0x7e0   : > { %v2878_v32 = vpop.xlane.xlu0 %2877  ;;  %v3001_v59 = vpop.xlane.xlu1 %3000  ;;  %v8539_v42 = vadd.f32 %v8481_v46, %v3182_v58 }
 0x7e1   : > { %6065 = vrsqrt.f32 %v3084_v15  ;;  %v2912_v23 = vmul.f32 0.0078125, %v2878_v32  ;;  %v3053_v55 = vmul.f32 0.0078125, %v3001_v59  ;;  %v2975_v24 = vmul.f32 %v8533_v21, %v8533_v21 }
 0x7e2   : > { %v6060_v63 = vpop.eup %6059  ;;  %v3250_v17 = vpack.c.bf16 %v8539_v42, %v8536_v12  ;;  %v3183_v56 = vmul.f32 %v8469_v2, %v3144_v14 }
 0x7e3   : > { %v8547_v11 = vsub.f32 %v8397_v10, %v2912_v23  ;;  %v3085_v51 = vadd.f32 1e-05, %v3053_v55  ;;  %3036 = vadd.xlane.f32.xlu1 %v2975_v24  ;;  %v3145_v57 = vmul.f32 %v6060_v63, %v8351_v48 }
 0x7e4   : > { %3425 = vmatmul.mubr.bf16.gmra.mxu0 %v3250_v17  ;;  %v3003_v49 = vpop.xlane.xlu0 %3002  ;;  %v2880_v35 = vpop.xlane.xlu1 %2879  ;;  %v8560_v25 = vadd.f32 %v8481_v46, %v3183_v56 }
 0x7e5   : > { %6067 = vrsqrt.f32 %v3085_v51  ;;  %v3054_v29 = vmul.f32 0.0078125, %v3003_v49  ;;  %v2913_v16 = vmul.f32 0.0078125, %v2880_v35  ;;  %v2976_v62 = vmul.f32 %v8547_v11, %v8547_v11  ;;  %3434 = vmatprep.mubr.bf16.mxu0 %v9700_v34 }
 0x7e6   : > { %v6062_v0 = vpop.eup %6061  ;;  %v3184_v10 = vmul.f32 %v8469_v2, %v3145_v57 }
 0x7e7   : > { %v3086_v26 = vadd.f32 1e-05, %v3054_v29  ;;  %v8556_v36 = vsub.f32 %v8407_v22, %v2913_v16  ;;  %3038 = vadd.xlane.f32.xlu0 %v2976_v62  ;;  %v3146_v48 = vmul.f32 %v6062_v0, %v8363_v54 }
 0x7e8   : > { %v3007_v41 = vpop.xlane.xlu0 %3006  ;;  %v3005_v31 = vpop.xlane.xlu1 %3004  ;;  %v8563_v18 = vadd.f32 %v8481_v46, %v3184_v10 }
 0x7e9   : > { %6069 = vrsqrt.f32 %v3086_v26  ;;  %v3056_v47 = vmul.f32 0.0078125, %v3007_v41  ;;  %v3055_v8 = vmul.f32 0.0078125, %v3005_v31  ;;  %v2977_v3 = vmul.f32 %v8556_v36, %v8556_v36 }
 0x7ea   : > { %v6064_v6 = vpop.eup %6063  ;;  %v3251_v22 = vpack.c.bf16 %v8563_v18, %v8560_v25  ;;  %v3185_v15 = vmul.f32 %v8469_v2, %v3146_v48 }
 0x7eb   : > { %v3087_v58 = vadd.f32 1e-05, %v3055_v8  ;;  %3040 = vadd.xlane.f32.xlu1 %v2977_v3  ;;  %v3147_v54 = vmul.f32 %v6064_v6, %v8373_v33  ;;  %v3088_v32 = vadd.f32 1e-05, %v3056_v47 }
 0x7ec   : > { %3435 = vmatmul.mubr.bf16.gmra.mxu0 %v3251_v22  ;;  %v3009_v59 = vpop.xlane.xlu1 %3008  ;;  %v8574_v63 = vadd.f32 %v8481_v46, %v3185_v15 }
 0x7ed   : > { %v3057_v14 = vmul.f32 0.0078125, %v3009_v59  ;;  %3444 = vmatprep.mubr.bf16.mxu0 %v9700_v34  ;;  %v3186_v23 = vmul.f32 %v8469_v2, %v3147_v54  ;;  %6071 = vrsqrt.f32 %v3087_v58 }
 0x7ee   : > { %v6066_v55 = vpop.eup %6065  ;;  %6073 = vrsqrt.f32 %v3088_v32 }
 0x7ef   : > { %v3089_v24 = vadd.f32 1e-05, %v3057_v14  ;;  %v8577_v17 = vadd.f32 %v8481_v46, %v3186_v23  ;;  %v3148_v33 = vmul.f32 %v6066_v55, %v8380_v39 }
 0x7f1   : > { %6075 = vrsqrt.f32 %v3089_v24  ;;  %v3252_v51 = vpack.c.bf16 %v8577_v17, %v8574_v63  ;;  %v3187_v35 = vmul.f32 %v8469_v2, %v3148_v33  ;;  %v5837_v33 = vld [vmem:[#allocation14 + $0x78] sm:$0xff]  }
 0x7f2   : > { %v6068_v57 = vpop.eup %6067  ;;  %5422 = vmatprep.subr.bf16.mxu1 %v5837_v33  ;;  %v5849_v33 = vld [vmem:[#allocation14 + $0x48] sm:$0xff]  }
 0x7f3   : > { %v3149_v49 = vmul.f32 %v6068_v57, %v8391_v44  ;;  %v8587_v39 = vadd.f32 %v8481_v46, %v3187_v35  ;;  %v5839_v57 = vld [vmem:[#allocation14 + $0x70] sm:$0xff]  }
 0x7f4   : > { %3445 = vmatmul.mubr.bf16.gmra.mxu0 %v3252_v51  ;;  %v3011_v56 = vpop.xlane.xlu0 %3010  ;;  %v5838_v51 = vld [vmem:[#allocation14 + $0x38] sm:$0xff]  }
 0x7f5   : > { %v3058_v29 = vmul.f32 0.0078125, %v3011_v56  ;;  %3454 = vmatprep.mubr.bf16.mxu0 %v9700_v34  ;;  %v3188_v16 = vmul.f32 %v8469_v2, %v3149_v49  ;;  %5423 = vmatpush3.bf16.msra.mxu1 %v5838_v51  ;;  %v5850_v51 = vld [vmem:[#allocation14 + $0x8] sm:$0xff]  }
 0x7f6   : > { %v6070_v62 = vpop.eup %6069  ;;  %5424 = vmatprep.subr.bf16.mxu1 %v5839_v57 }
 0x7f7   : > { %v3090_v0 = vadd.f32 1e-05, %v3058_v29  ;;  %v8590_v10 = vadd.f32 %v8481_v46, %v3188_v16  ;;  %v3150_v44 = vmul.f32 %v6070_v62, %v8403_v37 }
 0x7f8   : > { %v3015_v26 = vpop.xlane.xlu0 %3014  ;;  %v3013_v48 = vpop.xlane.xlu1 %3012 }
 0x7f9   : > { %6077 = vrsqrt.f32 %v3090_v0  ;;  %v3060_v41 = vmul.f32 0.0078125, %v3015_v26  ;;  %v3059_v31 = vmul.f32 0.0078125, %v3013_v48  ;;  %v3253_v47 = vpack.c.bf16 %v8590_v10, %v8587_v39  ;;  %v5841_v0 = vld [vmem:[#allocation14 + $0x68] sm:$0xff]   ;;  %v5843_v48 = vld [vmem:[#allocation14 + $0x60] sm:$0xff]  }
 0x7fa   : > { %v6072_v8 = vpop.eup %6071  ;;  %v3189_v54 = vmul.f32 %v8469_v2, %v3150_v44  ;;  %v5842_v26 = vld [vmem:[#allocation14 + $0x28] sm:$0xff]  }
 0x7fb   : > { %v3091_v3 = vadd.f32 1e-05, %v3059_v31  ;;  %v3092_v6 = vadd.f32 1e-05, %v3060_v41  ;;  %v3151_v58 = vmul.f32 %v6072_v8, %v8415_v13  ;;  %v6074_v15 = vpop.eup %6073  ;;  %v5844_v31 = vld [vmem:[#allocation14 + $0x20] sm:$0xff]  }
 0x7fc   : > { %3455 = vmatmul.mubr.bf16.gmra.mxu0 %v3253_v47  ;;  %v3017_v22 = vpop.xlane.xlu1 %3016  ;;  %v8601_v55 = vadd.f32 %v8481_v46, %v3189_v54  ;;  %v3152_v13 = vmul.f32 %v6074_v15, %v8412_v4  ;;  %v5845_v15 = vld [vmem:[#allocation14 + $0x58] sm:$0xff]  }
 0x7fd   : > { %v3061_v32 = vmul.f32 0.0078125, %v3017_v22  ;;  %3464 = vmatprep.mubr.bf16.mxu0 %v9700_v34  ;;  %6079 = vrsqrt.f32 %v3091_v3  ;;  %v3190_v59 = vmul.f32 %v8469_v2, %v3151_v58 }
 0x7fe   : > { %v6076_v37 = vpop.eup %6075  ;;  %6081 = vrsqrt.f32 %v3092_v6  ;;  %v3191_v56 = vmul.f32 %v8469_v2, %v3152_v13 }
 0x7ff   : > { %v3093_v14 = vadd.f32 1e-05, %v3061_v32  ;;  %v3153_v23 = vmul.f32 %v6076_v37, %v8423_v52  ;;  %v8604_v24 = vadd.f32 %v8481_v46, %v3190_v59  ;;  %v5840_v52 = vld [vmem:[#allocation14 + $0x30] sm:$0xff]   ;;  %v5846_v32 = vld [vmem:[#allocation14 + $0x18] sm:$0xff]  }
 0x800   : > { %5425 = vmatpush3.bf16.msra.mxu1 %v5840_v52  ;;  %v8616_v16 = vadd.f32 %v8481_v46, %v3191_v56 }
 0x801   : > { %6083 = vrsqrt.f32 %v3093_v14  ;;  %v3254_v49 = vpack.c.bf16 %v8604_v24, %v8601_v55  ;;  %v3192_v35 = vmul.f32 %v8469_v2, %v3153_v23  ;;  %5426 = vmatprep.subr.bf16.mxu1 %v5841_v0  ;;  %v5847_v14 = vld [vmem:[#allocation14 + $0x50] sm:$0xff]  }
 0x802   : > { %v5848_v23 = vld [vmem:[#allocation14 + $0x10] sm:$0xff]  }
 0x803   : > { %v8613_v4 = vadd.f32 %v8481_v46, %v3192_v35  ;;  %v5852_v35 = vld [vmem:[#allocation14] sm:$0xff]  }
 0x804   : > { %3465 = vmatmul.mubr.bf16.gmra.mxu0 %v3254_v49  ;;  %5427 = vmatpush3.bf16.msra.mxu1 %v5842_v26  ;;  %v5851_v49 = vld [vmem:[#allocation14 + $0x40] sm:$0xff]  }
 0x805   : > { %3474 = vmatprep.mubr.bf16.mxu0 %v9700_v34  ;;  %v3255_v44 = vpack.c.bf16 %v8613_v4, %v8616_v16  ;;  %5428 = vmatprep.subr.bf16.mxu1 %v5843_v48 }
 0x806   : > { %v6078_v29 = vpop.eup %6077 }
 0x807   : > { %v3154_v62 = vmul.f32 %v6078_v29, %v8428_v53 }
 0x808   : > { %5429 = vmatpush3.bf16.msra.mxu1 %v5844_v31 }
 0x809   : > { %v3193_v8 = vmul.f32 %v8469_v2, %v3154_v62  ;;  %5430 = vmatprep.subr.bf16.mxu1 %v5845_v15 }
 0x80a   : > { %v6080_v41 = vpop.eup %6079 }
 0x80b   : > { %v3155_v47 = vmul.f32 %v6080_v41, %v8436_v5  ;;  %v6082_v3 = vpop.eup %6081  ;;  %v8627_v58 = vadd.f32 %v8481_v46, %v3193_v8 }
 0x80c   : > { %3475 = vmatmul.mubr.bf16.gmra.mxu0 %v3255_v44  ;;  %v3156_v5 = vmul.f32 %v6082_v3, %v8433_v27  ;;  %5431 = vmatpush3.bf16.msra.mxu1 %v5846_v32 }
 0x80d   : > { %3484 = vmatprep.mubr.bf16.mxu0 %v9700_v34  ;;  %v3194_v6 = vmul.f32 %v8469_v2, %v3155_v47  ;;  %5432 = vmatprep.subr.bf16.mxu1 %v5847_v14 }
 0x80e   : > { %v6084_v53 = vpop.eup %6083 }
 0x80f   : > { %v3157_v22 = vmul.f32 %v6084_v53, %v8443_v60  ;;  %v8630_v54 = vadd.f32 %v8481_v46, %v3194_v6  ;;  %v3195_v60 = vmul.f32 %v8469_v2, %v3156_v5 }
 0x810   : > { %5433 = vmatpush3.bf16.msra.mxu1 %v5848_v23 }
 0x811   : > { %v3256_v37 = vpack.c.bf16 %v8630_v54, %v8627_v58  ;;  %v3196_v59 = vmul.f32 %v8469_v2, %v3157_v22  ;;  %v8642_v27 = vadd.f32 %v8481_v46, %v3195_v60  ;;  %5434 = vmatprep.subr.bf16.mxu1 %v5849_v33 }
 0x813   : > { %v8639_v13 = vadd.f32 %v8481_v46, %v3196_v59 }
 0x814   : > { %3485 = vmatmul.mubr.bf16.gmra.mxu0 %v3256_v37  ;;  %5435 = vmatpush3.bf16.msra.mxu1 %v5850_v51 }
 0x815   : > { %3494 = vmatprep.mubr.bf16.mxu0 %v9700_v34  ;;  %v3257_v57 = vpack.c.bf16 %v8639_v13, %v8642_v27  ;;  %5436 = vmatprep.subr.bf16.mxu1 %v5851_v49 }
 0x818   : > { %5437 = vmatpush3.bf16.msra.mxu1 %v5852_v35 }
 0x81c   : > { %3495 = vmatmul.mubr.bf16.gmra.mxu0 %v3257_v57 }
 0x81d   : > { %3504 = vmatprep.mubr.bf16.mxu0 %v9700_v34 }
 0x848   : > { %v3019_v52 = vpop.xlane.xlu0 %3018 }
 0x849   : > { %v3062_v56 = vmul.f32 0.0078125, %v3019_v52 }
 0x84b   : > { %v3094_v29 = vadd.f32 1e-05, %v3062_v56 }
 0x84c   : > { %v3021_v62 = vpop.xlane.xlu1 %3020 }
 0x84d   : > { %6085 = vrsqrt.f32 %v3094_v29  ;;  %v3063_v0 = vmul.f32 0.0078125, %v3021_v62 }
 0x84f   : > { %v3095_v26 = vadd.f32 1e-05, %v3063_v0 }
 0x850   : > { %v3023_v48 = vpop.xlane.xlu0 %3022 }
 0x851   : > { %6087 = vrsqrt.f32 %v3095_v26  ;;  %v3064_v44 = vmul.f32 0.0078125, %v3023_v48 }
 0x853   : > { %v3096_v41 = vadd.f32 1e-05, %v3064_v44 }
 0x854   : > { %v3025_v31 = vpop.xlane.xlu1 %3024 }
 0x855   : > { %6089 = vrsqrt.f32 %v3096_v41  ;;  %v3065_v47 = vmul.f32 0.0078125, %v3025_v31 }
 0x857   : > { %v3097_v8 = vadd.f32 1e-05, %v3065_v47 }
 0x859   : > { %v3027_v3 = vpop.xlane.xlu0 %3026  ;;  %6091 = vrsqrt.f32 %v3097_v8 }
 0x85a   : > { %v6086_v53 = vpop.eup %6085  ;;  %v3066_v6 = vmul.f32 0.0078125, %v3027_v3 }
 0x85b   : > { %v3158_v22 = vmul.f32 %v6086_v53, %v8448_v19 }
 0x85c   : > { %v3098_v5 = vadd.f32 1e-05, %v3066_v6 }
 0x85d   : > { %v3029_v15 = vpop.xlane.xlu1 %3028  ;;  %v3197_v60 = vmul.f32 %v8469_v2, %v3158_v22 }
 0x85e   : > { %v6088_v32 = vpop.eup %6087  ;;  %6093 = vrsqrt.f32 %v3098_v5  ;;  %v3067_v37 = vmul.f32 0.0078125, %v3029_v15 }
 0x85f   : > { %v3159_v59 = vmul.f32 %v6088_v32, %v8453_v1  ;;  %v8652_v35 = vadd.f32 %v8481_v46, %v3197_v60 }
 0x860   : > { %v3099_v14 = vadd.f32 1e-05, %v3067_v37  ;;  %v3031_v23 = vpop.xlane.xlu0 %3030 }
 0x861   : > { %v3068_v33 = vmul.f32 0.0078125, %v3031_v23  ;;  %v3198_v51 = vmul.f32 %v8469_v2, %v3159_v59 }
 0x862   : > { %v6090_v57 = vpop.eup %6089  ;;  %6095 = vrsqrt.f32 %v3099_v14 }
 0x863   : > { %v3100_v49 = vadd.f32 1e-05, %v3068_v33  ;;  %v8655_v19 = vadd.f32 %v8481_v46, %v3198_v51  ;;  %v3160_v56 = vmul.f32 %v6090_v57, %v8458_v9 }
 0x864   : > { %v3033_v52 = vpop.xlane.xlu1 %3032 }
 0x865   : > { %6097 = vrsqrt.f32 %v3100_v49  ;;  %v3069_v1 = vmul.f32 0.0078125, %v3033_v52  ;;  %v3258_v29 = vpack.c.bf16 %v8655_v19, %v8652_v35  ;;  %v3199_v44 = vmul.f32 %v8469_v2, %v3160_v56 }
 0x866   : > { %v6092_v62 = vpop.eup %6091 }
 0x867   : > { %v3101_v0 = vadd.f32 1e-05, %v3069_v1  ;;  %3505 = vmatmul.mubr.bf16.gmra.mxu0 %v3258_v29  ;;  %v3161_v48 = vmul.f32 %v6092_v62, %v8464_v38  ;;  %v8665_v3 = vadd.f32 %v8481_v46, %v3199_v44 }
 0x868   : > { %v3035_v26 = vpop.xlane.xlu0 %3034  ;;  %3514 = vmatprep.mubr.bf16.mxu0 %v9700_v34 }
 0x869   : > { %6099 = vrsqrt.f32 %v3101_v0  ;;  %v3070_v41 = vmul.f32 0.0078125, %v3035_v26  ;;  %v3200_v31 = vmul.f32 %v8469_v2, %v3161_v48 }
 0x86b   : > { %v6094_v9 = vpop.eup %6093  ;;  %v3102_v47 = vadd.f32 1e-05, %v3070_v41  ;;  %v8668_v53 = vadd.f32 %v8481_v46, %v3200_v31 }
 0x86c   : > { %v3037_v8 = vpop.xlane.xlu1 %3036  ;;  %v3162_v6 = vmul.f32 %v6094_v9, %v8476_v43 }
 0x86d   : > { %6101 = vrsqrt.f32 %v3102_v47  ;;  %v3071_v22 = vmul.f32 0.0078125, %v3037_v8  ;;  %v3259_v38 = vpack.c.bf16 %v8668_v53, %v8665_v3 }
 0x86e   : > { %v3201_v59 = vmul.f32 %v8469_v2, %v3162_v6 }
 0x86f   : > { %v6096_v5 = vpop.eup %6095  ;;  %v3103_v15 = vadd.f32 1e-05, %v3071_v22  ;;  %3515 = vmatmul.mubr.bf16.gmra.mxu0 %v3259_v38 }
 0x870   : > { %v3039_v32 = vpop.xlane.xlu0 %3038  ;;  %v3163_v37 = vmul.f32 %v6096_v5, %v8487_v50  ;;  %3524 = vmatprep.mubr.bf16.mxu0 %v9700_v34  ;;  %v8679_v57 = vadd.f32 %v8481_v46, %v3201_v59 }
 0x871   : > { %6103 = vrsqrt.f32 %v3103_v15  ;;  %v3072_v60 = vmul.f32 0.0078125, %v3039_v32 }
 0x872   : > { %v6098_v14 = vpop.eup %6097  ;;  %v3202_v43 = vmul.f32 %v8469_v2, %v3163_v37 }
 0x873   : > { %v3104_v23 = vadd.f32 1e-05, %v3072_v60  ;;  %v3164_v33 = vmul.f32 %v6098_v14, %v8501_v28  ;;  %v9734_v14 = vld [vmem:[#allocation33_spill] sm:$0xff] }
 0x874   : > { %v3041_v51 = vpop.xlane.xlu1 %3040  ;;  %v8682_v49 = vadd.f32 %v8481_v46, %v3202_v43 }
 0x875   : > { %6105 = vrsqrt.f32 %v3104_v23  ;;  %v3073_v50 = vmul.f32 0.0078125, %v3041_v51  ;;  %v3203_v62 = vmul.f32 %v8469_v2, %v3164_v33 }
 0x876   : > { %v6100_v52 = vpop.eup %6099  ;;  %v3260_v56 = vpack.c.bf16 %v8682_v49, %v8679_v57 }
 0x877   : > { %v3105_v1 = vadd.f32 1e-05, %v3073_v50  ;;  %v3165_v29 = vmul.f32 %v6100_v52, %v8510_v45  ;;  %v8691_v26 = vadd.f32 %v8481_v46, %v3203_v62 }
 0x878   : > { %3525 = vmatmul.mubr.bf16.gmra.mxu0 %v3260_v56 }
 0x879   : > { %6107 = vrsqrt.f32 %v3105_v1  ;;  %3534 = vmatprep.mubr.bf16.mxu0 %v9700_v34  ;;  %v3204_v28 = vmul.f32 %v8469_v2, %v3165_v29 }
 0x87a   : > { %v6102_v0 = vpop.eup %6101 }
 0x87b   : > { %v8694_v48 = vadd.f32 %v8481_v46, %v3204_v28  ;;  %v3166_v44 = vmul.f32 %v6102_v0, %v8524_v30 }
 0x87d   : > { %v3261_v45 = vpack.c.bf16 %v8694_v48, %v8691_v26  ;;  %v3205_v9 = vmul.f32 %v8469_v2, %v3166_v44 }
 0x87e   : > { %v6104_v41 = vpop.eup %6103 }
 0x87f   : > { %v3167_v31 = vmul.f32 %v6104_v41, %v8533_v21  ;;  %v8704_v6 = vadd.f32 %v8481_v46, %v3205_v9 }
 0x880   : > { %3535 = vmatmul.mubr.bf16.gmra.mxu0 %v3261_v45 }
 0x881   : > { %3544 = vmatprep.mubr.bf16.mxu0 %v9700_v34  ;;  %v3206_v47 = vmul.f32 %v8469_v2, %v3167_v31 }
 0x882   : > { %v6106_v8 = vpop.eup %6105 }
 0x883   : > { %v8707_v22 = vadd.f32 %v8481_v46, %v3206_v47  ;;  %v3168_v30 = vmul.f32 %v6106_v8, %v8547_v11 }
 0x885   : > { %v3262_v38 = vpack.c.bf16 %v8707_v22, %v8704_v6  ;;  %v3207_v15 = vmul.f32 %v8469_v2, %v3168_v30 }
 0x886   : > { %v6108_v21 = vpop.eup %6107 }
 0x887   : > { %v3169_v5 = vmul.f32 %v6108_v21, %v8556_v36  ;;  %v8717_v37 = vadd.f32 %v8481_v46, %v3207_v15  ;;  %v3280_v36 = vld [vmem:[%s9733_s14] sm:$0x3]  ;;  %s6516_s14 = smov [#allocation16]  }
 0x888   : > { %3545 = vmatmul.mubr.bf16.gmra.mxu0 %v3262_v38  ;;  %v8728_v43 = vrot.slane %v3280_v36, %v9734_v14  ;;  %s6393_s2 = sshll.u32 %s6516_s14, 4  ;;  %s6394_s2 = int_to_ptr.vmem [resolvable:$false] %s6393_s2 }
 0x889   : > { %3554 = vmatprep.mubr.bf16.mxu0 %v9700_v34  ;;  %v3208_v32 = vmul.f32 %v8469_v2, %v3169_v5  ;;  %v9735_v34 = vld [vmem:[#allocation32_spill] sm:$0xff]  ;;  %s6395_s5 = scalar_lea.vmem %s6394_s2, 4096  ;;  %p6396_p13 = scmp.lt.s32.totalorder %s9332_s23, %s6394_s2 }
 0x88a   : > { %v8731_v2 = vrot.slane %v3280_v36, %v9735_v34  ;;  %p6397_p2 = scmp.lt.s32.totalorder %s6395_s5, %s6389_s17 }
 0x88b   : > { %v8720_v59 = vadd.f32 %v8481_v46, %v3208_v32 }
 0x88c   : > { %p6398_p6 = por %p6397_p2, %p6396_p13 }
 0x88d   : > { %v3263_v11 = vpack.c.bf16 %v8720_v59, %v8717_v37 }
 0x88e   : > { %p6399_p4 = pnand %p6398_p6, %p6392_p12 }
 0x890   : > { %3555 = vmatmul.mubr.bf16.gmra.mxu0 %v3263_v11 }
 0x893   : > { %v3406_v60 = vpop.f32.mrf.mxu0 }
 0x894   : > { %v3407_v50 = vadd.f32 %v3406_v60, %v8731_v2 }
 0x895   : > { %v3408_v23 = vpop.f32.mrf.mxu0 }
 0x896   : > { %v3409_v46 = vadd.f32 %v3408_v23, %v8728_v43  ;;  %v3565_v0 = vmax.f32 %v3407_v50, 0.0 }
 0x897   : > { %v3410_v33 = vpop.f32.mrf.mxu0 }
 0x898   : > { %v3411_v51 = vadd.f32 %v3410_v33, %v8731_v2  ;;  %v3566_v29 = vmax.f32 %v3409_v46, 0.0 }
 0x899   : > { %v3412_v52 = vpop.f32.mrf.mxu0 }
 0x89a   : > { %v3413_v56 = vadd.f32 %v3412_v52, %v8728_v43  ;;  %v3567_v1 = vmax.f32 %v3411_v51, 0.0 }
 0x89c   : > { %v3568_v62 = vmax.f32 %v3413_v56, 0.0  ;;  %v3416_v28 = vpop.f32.mrf.mxu0  ;;  %v3629_v41 = vpack.c.bf16 %v3567_v1, %v3565_v0 }
 0x89d   : > { %v3417_v8 = vadd.f32 %v3416_v28, %v8731_v2 }
 0x89e   : > { %v3630_v44 = vpack.c.bf16 %v3568_v62, %v3566_v29  ;;  %v3418_v45 = vpop.f32.mrf.mxu0 }
 0x89f   : > { %v3419_v9 = vadd.f32 %v3418_v45, %v8728_v43  ;;  %v3569_v11 = vmax.f32 %v3417_v8, 0.0 }
 0x8a0   : > { %v3420_v31 = vpop.f32.mrf.mxu0  ;;  %3828 = vmatprep.mubr.bf16.mxu1 %v3630_v44 }
 0x8a1   : > { %v3421_v47 = vadd.f32 %v3420_v31, %v8731_v2  ;;  %3829 = vmatmul.mubr.bf16.vlgmr.msra.gmra.mxu1 %v3629_v41  ;;  %v3570_v15 = vmax.f32 %v3419_v9, 0.0 }
 0x8a2   : > { %v3422_v30 = vpop.f32.mrf.mxu0 }
 0x8a3   : > { %v3423_v38 = vadd.f32 %v3422_v30, %v8728_v43  ;;  %v3571_v21 = vmax.f32 %v3421_v47, 0.0 }
 0x8a4   : > { %v3426_v5 = vpop.f32.mrf.mxu0 }
 0x8a5   : > { %v3572_v32 = vmax.f32 %v3423_v38, 0.0  ;;  %v3631_v23 = vpack.c.bf16 %v3571_v21, %v3569_v11  ;;  %v3427_v50 = vadd.f32 %v3426_v5, %v8731_v2 }
 0x8a6   : > { %v3428_v36 = vpop.f32.mrf.mxu0 }
 0x8a7   : > { %v3632_v60 = vpack.c.bf16 %v3572_v32, %v3570_v15  ;;  %v3429_v46 = vadd.f32 %v3428_v36, %v8728_v43  ;;  %v3573_v0 = vmax.f32 %v3427_v50, 0.0 }
 0x8a8   : > { %v3430_v33 = vpop.f32.mrf.mxu0 }
 0x8a9   : > { %v3431_v51 = vadd.f32 %v3430_v33, %v8731_v2  ;;  %3836 = vmatprep.mubr.bf16.mxu1 %v3632_v60  ;;  %v3574_v62 = vmax.f32 %v3429_v46, 0.0 }
 0x8aa   : > { %v3432_v52 = vpop.f32.mrf.mxu0  ;;  %3837 = vmatmul.mubr.bf16.gmra.mxu1 %v3631_v23 }
 0x8ab   : > { %v3433_v56 = vadd.f32 %v3432_v52, %v8728_v43  ;;  %v3575_v1 = vmax.f32 %v3431_v51, 0.0 }
 0x8ac   : > { %v3436_v29 = vpop.f32.mrf.mxu0 }
 0x8ad   : > { %v3576_v28 = vmax.f32 %v3433_v56, 0.0  ;;  %v3633_v41 = vpack.c.bf16 %v3575_v1, %v3573_v0  ;;  %v3437_v8 = vadd.f32 %v3436_v29, %v8731_v2 }
 0x8ae   : > { %v3438_v44 = vpop.f32.mrf.mxu0 }
 0x8af   : > { %v3634_v45 = vpack.c.bf16 %v3576_v28, %v3574_v62  ;;  %v3439_v9 = vadd.f32 %v3438_v44, %v8728_v43  ;;  %v3577_v11 = vmax.f32 %v3437_v8, 0.0 }
 0x8b0   : > { %v3440_v31 = vpop.f32.mrf.mxu0 }
 0x8b1   : > { %v3441_v47 = vadd.f32 %v3440_v31, %v8731_v2  ;;  %3844 = vmatprep.mubr.bf16.mxu1 %v3634_v45  ;;  %v3578_v15 = vmax.f32 %v3439_v9, 0.0 }
 0x8b2   : > { %v3442_v30 = vpop.f32.mrf.mxu0  ;;  %3845 = vmatmul.mubr.bf16.gmra.mxu1 %v3633_v41 }
 0x8b3   : > { %v3443_v38 = vadd.f32 %v3442_v30, %v8728_v43  ;;  %v3579_v21 = vmax.f32 %v3441_v47, 0.0 }
 0x8b4   : > { %v3446_v5 = vpop.f32.mrf.mxu0 }
 0x8b5   : > { %v3580_v32 = vmax.f32 %v3443_v38, 0.0  ;;  %v3635_v23 = vpack.c.bf16 %v3579_v21, %v3577_v11  ;;  %v3447_v50 = vadd.f32 %v3446_v5, %v8731_v2 }
 0x8b6   : > { %v3448_v36 = vpop.f32.mrf.mxu0 }
 0x8b7   : > { %v3636_v60 = vpack.c.bf16 %v3580_v32, %v3578_v15  ;;  %v3449_v46 = vadd.f32 %v3448_v36, %v8728_v43  ;;  %v3581_v0 = vmax.f32 %v3447_v50, 0.0 }
 0x8b8   : > { %v3450_v33 = vpop.f32.mrf.mxu0 }
 0x8b9   : > { %v3451_v51 = vadd.f32 %v3450_v33, %v8731_v2  ;;  %3852 = vmatprep.mubr.bf16.mxu1 %v3636_v60  ;;  %v3582_v62 = vmax.f32 %v3449_v46, 0.0 }
 0x8ba   : > { %v3452_v52 = vpop.f32.mrf.mxu0  ;;  %3853 = vmatmul.mubr.bf16.gmra.mxu1 %v3635_v23 }
 0x8bb   : > { %v3453_v56 = vadd.f32 %v3452_v52, %v8728_v43  ;;  %v3583_v1 = vmax.f32 %v3451_v51, 0.0 }
 0x8bc   : > { %v3456_v29 = vpop.f32.mrf.mxu0 }
 0x8bd   : > { %v3584_v28 = vmax.f32 %v3453_v56, 0.0  ;;  %v3637_v41 = vpack.c.bf16 %v3583_v1, %v3581_v0  ;;  %v3457_v8 = vadd.f32 %v3456_v29, %v8731_v2 }
 0x8be   : > { %v3458_v44 = vpop.f32.mrf.mxu0 }
 0x8bf   : > { %v3638_v45 = vpack.c.bf16 %v3584_v28, %v3582_v62  ;;  %v3459_v9 = vadd.f32 %v3458_v44, %v8728_v43  ;;  %v3585_v11 = vmax.f32 %v3457_v8, 0.0 }
 0x8c0   : > { %v3460_v31 = vpop.f32.mrf.mxu0 }
 0x8c1   : > { %v3461_v47 = vadd.f32 %v3460_v31, %v8731_v2  ;;  %3860 = vmatprep.mubr.bf16.mxu1 %v3638_v45  ;;  %v3586_v15 = vmax.f32 %v3459_v9, 0.0 }
 0x8c2   : > { %v3462_v30 = vpop.f32.mrf.mxu0  ;;  %3861 = vmatmul.mubr.bf16.gmra.mxu1 %v3637_v41 }
 0x8c3   : > { %v3463_v38 = vadd.f32 %v3462_v30, %v8728_v43  ;;  %v3587_v21 = vmax.f32 %v3461_v47, 0.0 }
 0x8c4   : > { %v3466_v5 = vpop.f32.mrf.mxu0 }
 0x8c5   : > { %v3588_v32 = vmax.f32 %v3463_v38, 0.0  ;;  %v3639_v23 = vpack.c.bf16 %v3587_v21, %v3585_v11  ;;  %v3467_v50 = vadd.f32 %v3466_v5, %v8731_v2 }
 0x8c6   : > { %v3468_v36 = vpop.f32.mrf.mxu0 }
 0x8c7   : > { %v3640_v60 = vpack.c.bf16 %v3588_v32, %v3586_v15  ;;  %v3469_v46 = vadd.f32 %v3468_v36, %v8728_v43  ;;  %v3589_v0 = vmax.f32 %v3467_v50, 0.0 }
 0x8c8   : > { %v3470_v33 = vpop.f32.mrf.mxu0 }
 0x8c9   : > { %v3471_v51 = vadd.f32 %v3470_v33, %v8731_v2  ;;  %3868 = vmatprep.mubr.bf16.mxu1 %v3640_v60  ;;  %v3590_v62 = vmax.f32 %v3469_v46, 0.0 }
 0x8ca   : > { %v3472_v52 = vpop.f32.mrf.mxu0  ;;  %3869 = vmatmul.mubr.bf16.gmra.mxu1 %v3639_v23 }
 0x8cb   : > { %v3473_v56 = vadd.f32 %v3472_v52, %v8728_v43  ;;  %v3591_v1 = vmax.f32 %v3471_v51, 0.0 }
 0x8cc   : > { %v3476_v29 = vpop.f32.mrf.mxu0 }
 0x8cd   : > { %v3592_v28 = vmax.f32 %v3473_v56, 0.0  ;;  %v3641_v41 = vpack.c.bf16 %v3591_v1, %v3589_v0  ;;  %v3477_v8 = vadd.f32 %v3476_v29, %v8731_v2 }
 0x8ce   : > { %v3478_v44 = vpop.f32.mrf.mxu0 }
 0x8cf   : > { %v3642_v45 = vpack.c.bf16 %v3592_v28, %v3590_v62  ;;  %v3479_v9 = vadd.f32 %v3478_v44, %v8728_v43  ;;  %v3593_v11 = vmax.f32 %v3477_v8, 0.0 }
 0x8d0   : > { %v3480_v31 = vpop.f32.mrf.mxu0 }
 0x8d1   : > { %v3481_v47 = vadd.f32 %v3480_v31, %v8731_v2  ;;  %3876 = vmatprep.mubr.bf16.mxu1 %v3642_v45  ;;  %v3594_v15 = vmax.f32 %v3479_v9, 0.0 }
 0x8d2   : > { %v3482_v30 = vpop.f32.mrf.mxu0  ;;  %3877 = vmatmul.mubr.bf16.gmra.mxu1 %v3641_v41 }
 0x8d3   : > { %v3483_v38 = vadd.f32 %v3482_v30, %v8728_v43  ;;  %v3595_v21 = vmax.f32 %v3481_v47, 0.0 }
 0x8d4   : > { %v3486_v5 = vpop.f32.mrf.mxu0 }
 0x8d5   : > { %v3596_v32 = vmax.f32 %v3483_v38, 0.0  ;;  %v3643_v23 = vpack.c.bf16 %v3595_v21, %v3593_v11  ;;  %v3487_v50 = vadd.f32 %v3486_v5, %v8731_v2 }
 0x8d6   : > { %v3488_v36 = vpop.f32.mrf.mxu0 }
 0x8d7   : > { %v3644_v60 = vpack.c.bf16 %v3596_v32, %v3594_v15  ;;  %v3489_v46 = vadd.f32 %v3488_v36, %v8728_v43  ;;  %v3597_v0 = vmax.f32 %v3487_v50, 0.0 }
 0x8d8   : > { %v3490_v33 = vpop.f32.mrf.mxu0 }
 0x8d9   : > { %v3491_v51 = vadd.f32 %v3490_v33, %v8731_v2  ;;  %3884 = vmatprep.mubr.bf16.mxu1 %v3644_v60  ;;  %v3598_v62 = vmax.f32 %v3489_v46, 0.0 }
 0x8da   : > { %v3492_v52 = vpop.f32.mrf.mxu0  ;;  %3885 = vmatmul.mubr.bf16.gmra.mxu1 %v3643_v23 }
 0x8db   : > { %v3493_v56 = vadd.f32 %v3492_v52, %v8728_v43  ;;  %v3599_v1 = vmax.f32 %v3491_v51, 0.0 }
 0x8dc   : > { %v3496_v29 = vpop.f32.mrf.mxu0 }
 0x8dd   : > { %v3600_v28 = vmax.f32 %v3493_v56, 0.0  ;;  %v3645_v41 = vpack.c.bf16 %v3599_v1, %v3597_v0  ;;  %v3497_v8 = vadd.f32 %v3496_v29, %v8731_v2 }
 0x8de   : > { %v3498_v44 = vpop.f32.mrf.mxu0 }
 0x8df   : > { %v3646_v45 = vpack.c.bf16 %v3600_v28, %v3598_v62  ;;  %v3499_v9 = vadd.f32 %v3498_v44, %v8728_v43  ;;  %v3601_v32 = vmax.f32 %v3497_v8, 0.0 }
 0x8e0   : > { %v3500_v31 = vpop.f32.mrf.mxu0 }
 0x8e1   : > { %v3501_v47 = vadd.f32 %v3500_v31, %v8731_v2  ;;  %3892 = vmatprep.mubr.bf16.mxu1 %v3646_v45  ;;  %v3602_v5 = vmax.f32 %v3499_v9, 0.0 }
 0x8e2   : > { %v3502_v30 = vpop.f32.mrf.mxu0  ;;  %3893 = vmatmul.mubr.bf16.gmra.mxu1 %v3645_v41 }
 0x8e3   : > { %v3503_v38 = vadd.f32 %v3502_v30, %v8728_v43  ;;  %v3603_v21 = vmax.f32 %v3501_v47, 0.0 }
 0x8e5   : > { %v3604_v15 = vmax.f32 %v3503_v38, 0.0  ;;  %v3647_v36 = vpack.c.bf16 %v3603_v21, %v3601_v32 }
 0x8e7   : > { %v3648_v11 = vpack.c.bf16 %v3604_v15, %v3602_v5 }
 0x8e9   : > { %3900 = vmatprep.mubr.bf16.mxu1 %v3648_v11 }
 0x8ea   : > { %3901 = vmatmul.mubr.bf16.gmra.mxu1 %v3647_v36 }
 0x927   : > { %v3506_v60 = vpop.f32.mrf.mxu0 }
 0x928   : > { %v3507_v50 = vadd.f32 %v3506_v60, %v8731_v2 }
 0x929   : > { %v3508_v23 = vpop.f32.mrf.mxu0 }
 0x92a   : > { %v3509_v46 = vadd.f32 %v3508_v23, %v8728_v43  ;;  %v3605_v0 = vmax.f32 %v3507_v50, 0.0 }
 0x92b   : > { %v3510_v33 = vpop.f32.mrf.mxu0 }
 0x92c   : > { %v3511_v51 = vadd.f32 %v3510_v33, %v8731_v2  ;;  %v3606_v29 = vmax.f32 %v3509_v46, 0.0 }
 0x92d   : > { %v3512_v52 = vpop.f32.mrf.mxu0 }
 0x92e   : > { %v3513_v56 = vadd.f32 %v3512_v52, %v8728_v43  ;;  %v3607_v1 = vmax.f32 %v3511_v51, 0.0 }
 0x92f   : > { %v3516_v28 = vpop.f32.mrf.mxu0 }
 0x930   : > { %v3608_v62 = vmax.f32 %v3513_v56, 0.0  ;;  %v3649_v41 = vpack.c.bf16 %v3607_v1, %v3605_v0  ;;  %v3517_v8 = vadd.f32 %v3516_v28, %v8731_v2 }
 0x931   : > { %v3518_v45 = vpop.f32.mrf.mxu0 }
 0x932   : > { %v3650_v44 = vpack.c.bf16 %v3608_v62, %v3606_v29  ;;  %v3519_v9 = vadd.f32 %v3518_v45, %v8728_v43  ;;  %v3609_v11 = vmax.f32 %v3517_v8, 0.0 }
 0x933   : > { %v3520_v31 = vpop.f32.mrf.mxu0 }
 0x934   : > { %3908 = vmatprep.mubr.bf16.mxu1 %v3650_v44  ;;  %v3521_v47 = vadd.f32 %v3520_v31, %v8731_v2  ;;  %v3610_v15 = vmax.f32 %v3519_v9, 0.0 }
 0x935   : > { %3909 = vmatmul.mubr.bf16.gmra.mxu1 %v3649_v41  ;;  %v3522_v30 = vpop.f32.mrf.mxu0 }
 0x936   : > { %v3523_v38 = vadd.f32 %v3522_v30, %v8728_v43  ;;  %v3611_v21 = vmax.f32 %v3521_v47, 0.0 }
 0x938   : > { %v3526_v5 = vpop.f32.mrf.mxu0  ;;  %v3612_v32 = vmax.f32 %v3523_v38, 0.0  ;;  %v3651_v23 = vpack.c.bf16 %v3611_v21, %v3609_v11 }
 0x939   : > { %v3527_v50 = vadd.f32 %v3526_v5, %v8731_v2 }
 0x93a   : > { %v3528_v36 = vpop.f32.mrf.mxu0  ;;  %v3652_v60 = vpack.c.bf16 %v3612_v32, %v3610_v15 }
 0x93b   : > { %v3529_v46 = vadd.f32 %v3528_v36, %v8728_v43  ;;  %v3613_v0 = vmax.f32 %v3527_v50, 0.0 }
 0x93c   : > { %v3530_v33 = vpop.f32.mrf.mxu0  ;;  %3916 = vmatprep.mubr.bf16.mxu1 %v3652_v60 }
 0x93d   : > { %v3531_v51 = vadd.f32 %v3530_v33, %v8731_v2  ;;  %3917 = vmatmul.mubr.bf16.gmra.mxu1 %v3651_v23  ;;  %v3614_v62 = vmax.f32 %v3529_v46, 0.0 }
 0x93e   : > { %v3532_v52 = vpop.f32.mrf.mxu0 }
 0x93f   : > { %v3533_v56 = vadd.f32 %v3532_v52, %v8728_v43  ;;  %v3615_v1 = vmax.f32 %v3531_v51, 0.0 }
 0x940   : > { %v3536_v29 = vpop.f32.mrf.mxu0 }
 0x941   : > { %v3616_v28 = vmax.f32 %v3533_v56, 0.0  ;;  %v3653_v41 = vpack.c.bf16 %v3615_v1, %v3613_v0  ;;  %v3537_v8 = vadd.f32 %v3536_v29, %v8731_v2 }
 0x942   : > { %v3538_v44 = vpop.f32.mrf.mxu0 }
 0x943   : > { %v3654_v45 = vpack.c.bf16 %v3616_v28, %v3614_v62  ;;  %v3539_v9 = vadd.f32 %v3538_v44, %v8728_v43  ;;  %v3617_v11 = vmax.f32 %v3537_v8, 0.0 }
 0x944   : > { %v3540_v31 = vpop.f32.mrf.mxu0 }
 0x945   : > { %v3541_v47 = vadd.f32 %v3540_v31, %v8731_v2  ;;  %3924 = vmatprep.mubr.bf16.mxu1 %v3654_v45  ;;  %v3618_v15 = vmax.f32 %v3539_v9, 0.0 }
 0x946   : > { %v3542_v30 = vpop.f32.mrf.mxu0  ;;  %3925 = vmatmul.mubr.bf16.gmra.mxu1 %v3653_v41 }
 0x947   : > { %v3543_v38 = vadd.f32 %v3542_v30, %v8728_v43  ;;  %v3619_v21 = vmax.f32 %v3541_v47, 0.0 }
 0x948   : > { %v3546_v5 = vpop.f32.mrf.mxu0 }
 0x949   : > { %v3620_v32 = vmax.f32 %v3543_v38, 0.0  ;;  %v3655_v23 = vpack.c.bf16 %v3619_v21, %v3617_v11  ;;  %v3547_v50 = vadd.f32 %v3546_v5, %v8731_v2 }
 0x94a   : > { %v3548_v36 = vpop.f32.mrf.mxu0 }
 0x94b   : > { %v3656_v60 = vpack.c.bf16 %v3620_v32, %v3618_v15  ;;  %v3549_v46 = vadd.f32 %v3548_v36, %v8728_v43  ;;  %v3621_v0 = vmax.f32 %v3547_v50, 0.0 }
 0x94c   : > { %v3550_v33 = vpop.f32.mrf.mxu0 }
 0x94d   : > { %v3551_v51 = vadd.f32 %v3550_v33, %v8731_v2  ;;  %3932 = vmatprep.mubr.bf16.mxu1 %v3656_v60  ;;  %v3622_v62 = vmax.f32 %v3549_v46, 0.0 }
 0x94e   : > { %v3552_v52 = vpop.f32.mrf.mxu0  ;;  %3933 = vmatmul.mubr.bf16.gmra.mxu1 %v3655_v23 }
 0x94f   : > { %v3553_v56 = vadd.f32 %v3552_v52, %v8728_v43  ;;  %v3623_v1 = vmax.f32 %v3551_v51, 0.0 }
 0x950   : > { %v3556_v29 = vpop.f32.mrf.mxu0 }
 0x951   : > { %v3624_v28 = vmax.f32 %v3553_v56, 0.0  ;;  %v3657_v41 = vpack.c.bf16 %v3623_v1, %v3621_v0  ;;  %v3557_v8 = vadd.f32 %v3556_v29, %v8731_v2 }
 0x952   : > { %v3558_v44 = vpop.f32.mrf.mxu0 }
 0x953   : > { %v3658_v45 = vpack.c.bf16 %v3624_v28, %v3622_v62  ;;  %v3559_v9 = vadd.f32 %v3558_v44, %v8728_v43  ;;  %v3625_v32 = vmax.f32 %v3557_v8, 0.0 }
 0x954   : > { %v3560_v31 = vpop.f32.mrf.mxu0 }
 0x955   : > { %v3561_v47 = vadd.f32 %v3560_v31, %v8731_v2  ;;  %3940 = vmatprep.mubr.bf16.mxu1 %v3658_v45  ;;  %v3626_v5 = vmax.f32 %v3559_v9, 0.0 }
 0x956   : > { %v3562_v30 = vpop.f32.mrf.mxu0  ;;  %3941 = vmatmul.mubr.bf16.gmra.mxu1 %v3657_v41 }
 0x957   : > { %v3563_v38 = vadd.f32 %v3562_v30, %v8728_v43  ;;  %v3627_v21 = vmax.f32 %v3561_v47, 0.0 }
 0x959   : > { %v3628_v15 = vmax.f32 %v3563_v38, 0.0  ;;  %v3659_v36 = vpack.c.bf16 %v3627_v21, %v3625_v32  ;;  %v8816_v32 = vld [vmem:[%s9736_s20] ss:$0 sm:$0xff] }
 0x95b   : > { %v3660_v11 = vpack.c.bf16 %v3628_v15, %v3626_v5 }
 0x95d   : > { %3948 = vmatprep.mubr.bf16.mxu1 %v3660_v11 }
 0x95e   : > { %3949 = vmatmul.mubr.bf16.gmra.mxu1 %v3659_v36 }
 0x961   : > { %v5438_v60 = vpop.f32.mrf.mxu1 }
 0x963   : > { %v5439_v23 = vpop.f32.mrf.mxu1 }
 0x964   : > { %v8797_v33 = vadd.f32 %v5439_v23, %v5438_v60 }
 0x965   : > { %v5441_v46 = vpop.f32.mrf.mxu1 }
 0x967   : > { %v5442_v51 = vpop.f32.mrf.mxu1 }
 0x968   : > { %v8799_v50 = vadd.f32 %v5442_v51, %v5441_v46 }
 0x96a   : > { %v5444_v2 = vpop.f32.mrf.mxu1 }
 0x96c   : > { %v5445_v52 = vpop.f32.mrf.mxu1 }
 0x96d   : > { %v8801_v56 = vadd.f32 %v5445_v52, %v5444_v2 }
 0x96e   : > { %v5447_v43 = vpop.f32.mrf.mxu1 }
 0x970   : > { %v5448_v1 = vpop.f32.mrf.mxu1 }
 0x971   : > { %v8803_v29 = vadd.f32 %v5448_v1, %v5447_v43 }
 0x972   : > { %v5450_v62 = vpop.f32.mrf.mxu1 }
 0x974   : > { %v5451_v28 = vpop.f32.mrf.mxu1 }
 0x975   : > { %v8805_v0 = vadd.f32 %v5451_v28, %v5450_v62 }
 0x976   : > { %v5453_v44 = vpop.f32.mrf.mxu1 }
 0x978   : > { %v5454_v45 = vpop.f32.mrf.mxu1 }
 0x979   : > { %v8807_v41 = vadd.f32 %v5454_v45, %v5453_v44 }
 0x97a   : > { %v5456_v31 = vpop.f32.mrf.mxu1 }
 0x97c   : > { %v5457_v9 = vpop.f32.mrf.mxu1 }
 0x97d   : > { %v8809_v47 = vadd.f32 %v5457_v9, %v5456_v31 }
 0x97e   : > { %v5459_v8 = vpop.f32.mrf.mxu1 }
 0x980   : > { %v5460_v30 = vpop.f32.mrf.mxu1 }
 0x981   : > { %v8811_v38 = vadd.f32 %v5460_v30, %v5459_v8 }
 0x982   : > { %v5462_v21 = vpop.f32.mrf.mxu1 }
 0x984   : > { %v5463_v5 = vpop.f32.mrf.mxu1 }
 0x985   : > { %v5464_v15 = vadd.f32 %v5463_v5, %v5462_v21 }
 0x986   : > { %v5465_v11 = vpop.f32.mrf.mxu1 }
 0x987   : > { %v3863_v36 = vadd.f32 %v5464_v15, %v8816_v32 }
 0x988   : > { %v5466_v60 = vpop.f32.mrf.mxu1 }
 0x989   : > { %v5467_v23 = vadd.f32 %v5466_v60, %v5465_v11  ;;  %v8820_v46 = vadd.f32 %v3863_v36, %v8574_v63 }
 0x98a   : > { %v5468_v51 = vpop.f32.mrf.mxu1 }
 0x98b   : > { %v3866_v2 = vadd.f32 %v5467_v23, %v8816_v32  ;;  %4005 = vadd.xlane.f32.xlu0 %v8820_v46 }
 0x98c   : > { %v5469_v52 = vpop.f32.mrf.mxu1 }
 0x98d   : > { %v5470_v43 = vadd.f32 %v5469_v52, %v5468_v51  ;;  %v8825_v1 = vadd.f32 %v3866_v2, %v8577_v17 }
 0x98e   : > { %v5471_v62 = vpop.f32.mrf.mxu1 }
 0x98f   : > { %v3871_v28 = vadd.f32 %v5470_v43, %v8816_v32  ;;  %4007 = vadd.xlane.f32.xlu1 %v8825_v1 }
 0x990   : > { %v5472_v44 = vpop.f32.mrf.mxu1 }
 0x991   : > { %v5473_v45 = vadd.f32 %v5472_v44, %v5471_v62  ;;  %v8830_v63 = vadd.f32 %v3871_v28, %v8587_v39 }
 0x992   : > { %v5474_v31 = vpop.f32.mrf.mxu1 }
 0x993   : > { %v3874_v9 = vadd.f32 %v5473_v45, %v8816_v32  ;;  %4009 = vadd.xlane.f32.xlu0 %v8830_v63 }
 0x994   : > { %v5475_v8 = vpop.f32.mrf.mxu1 }
 0x995   : > { %v5476_v30 = vadd.f32 %v5475_v8, %v5474_v31  ;;  %v8835_v17 = vadd.f32 %v3874_v9, %v8590_v10 }
 0x996   : > { %v5477_v21 = vpop.f32.mrf.mxu1 }
 0x997   : > { %v3879_v5 = vadd.f32 %v5476_v30, %v8816_v32  ;;  %4011 = vadd.xlane.f32.xlu1 %v8835_v17 }
 0x998   : > { %v5478_v15 = vpop.f32.mrf.mxu1 }
 0x999   : > { %v5479_v11 = vadd.f32 %v5478_v15, %v5477_v21  ;;  %v8840_v39 = vadd.f32 %v3879_v5, %v8601_v55 }
 0x99a   : > { %v5480_v36 = vpop.f32.mrf.mxu1 }
 0x99b   : > { %9737 = vst [vmem:[#allocation82_spill] sm:$0xff] %v8840_v39  ;;  %v3882_v60 = vadd.f32 %v5479_v11, %v8816_v32  ;;  %4013 = vadd.xlane.f32.xlu0 %v8840_v39 }
 0x99c   : > { %v5481_v23 = vpop.f32.mrf.mxu1 }
 0x99d   : > { %v5482_v51 = vadd.f32 %v5481_v23, %v5480_v36  ;;  %v8845_v10 = vadd.f32 %v3882_v60, %v8604_v24 }
 0x99e   : > { %v5483_v2 = vpop.f32.mrf.mxu1 }
 0x99f   : > { %9738 = vst [vmem:[#allocation84_spill] sm:$0xff] %v8845_v10  ;;  %v3887_v52 = vadd.f32 %v5482_v51, %v8816_v32  ;;  %4015 = vadd.xlane.f32.xlu1 %v8845_v10 }
 0x9a0   : > { %v5484_v43 = vpop.f32.mrf.mxu1 }
 0x9a1   : > { %v5485_v62 = vadd.f32 %v5484_v43, %v5483_v2  ;;  %v8850_v55 = vadd.f32 %v3887_v52, %v8616_v16 }
 0x9a2   : > { %v5486_v28 = vpop.f32.mrf.mxu1 }
 0x9a3   : > { %9739 = vst [vmem:[#allocation83_spill] sm:$0xff] %v8850_v55  ;;  %v3890_v44 = vadd.f32 %v5485_v62, %v8816_v32  ;;  %4017 = vadd.xlane.f32.xlu0 %v8850_v55 }
 0x9a4   : > { %v5487_v45 = vpop.f32.mrf.mxu1 }
 0x9a5   : > { %v8854_v31 = vadd.f32 %v5487_v45, %v5486_v28  ;;  %v8857_v24 = vadd.f32 %v3890_v44, %v8613_v4 }
 0x9a6   : > { %v5489_v9 = vpop.f32.mrf.mxu1 }
 0x9a7   : > { %9740 = vst [vmem:[#allocation81_spill] sm:$0xff] %v8857_v24  ;;  %4019 = vadd.xlane.f32.xlu1 %v8857_v24 }
 0x9a8   : > { %v5490_v8 = vpop.f32.mrf.mxu1 }
 0x9a9   : > { %v8860_v30 = vadd.f32 %v5490_v8, %v5489_v9 }
 0x9aa   : > { %v5492_v21 = vpop.f32.mrf.mxu1 }
 0x9ac   : > { %v5493_v16 = vpop.f32.mrf.mxu1 }
 0x9ad   : > { %v8862_v5 = vadd.f32 %v5493_v16, %v5492_v21 }
 0x9ae   : > { %v8864_v15 = vpop.f32.mrf.mxu1 }
 0x9b0   : > { %v8866_v11 = vpop.f32.mrf.mxu1 }
 0x9f5   : > { %v5498_v36 = vpop.f32.mrf.mxu1 }
 0x9f7   : > { %v5499_v60 = vpop.f32.mrf.mxu1 }
 0x9f9   : > { %v8868_v23 = vpop.f32.mrf.mxu1 }
 0x9fb   : > { %v8870_v4 = vpop.f32.mrf.mxu1 }
 0x9fd   : > { %v5504_v51 = vpop.f32.mrf.mxu1 }
 0x9ff   : > { %v5505_v2 = vpop.f32.mrf.mxu1 }
 0xa01   : > { %v5507_v52 = vpop.f32.mrf.mxu1 }
 0xa03   : > { %v5508_v43 = vpop.f32.mrf.mxu1 }
 0xa06   : > { %v5510_v62 = vpop.f32.mrf.mxu1 }
 0xa08   : > { %v5511_v28 = vpop.f32.mrf.mxu1 }
 0xa09   : > { %v5512_v44 = vadd.f32 %v5511_v28, %v5510_v62 }
 0xa0a   : > { %v5513_v45 = vpop.f32.mrf.mxu1 }
 0xa0b   : > { %v3927_v9 = vadd.f32 %v5512_v44, %v8816_v32 }
 0xa0c   : > { %v5514_v8 = vpop.f32.mrf.mxu1 }
 0xa0d   : > { %v5515_v21 = vadd.f32 %v5514_v8, %v5513_v45  ;;  %v8874_v16 = vadd.f32 %v3927_v9, %v8679_v57 }
 0xa0e   : > { %v5516_v34 = vpop.f32.mrf.mxu1 }
 0xa0f   : > { %v3930_v14 = vadd.f32 %v5515_v21, %v8816_v32  ;;  %4037 = vadd.xlane.f32.xlu0 %v8874_v16 }
 0xa10   : > { %v5517_v24 = vpop.f32.mrf.mxu1 }
 0xa11   : > { %v5518_v55 = vadd.f32 %v5517_v24, %v5516_v34  ;;  %v8879_v10 = vadd.f32 %v3930_v14, %v8682_v49 }
 0xa12   : > { %v5519_v39 = vpop.f32.mrf.mxu1 }
 0xa13   : > { %v3935_v62 = vadd.f32 %v5518_v55, %v8816_v32  ;;  %4039 = vadd.xlane.f32.xlu1 %v8879_v10 }
 0xa14   : > { %v5520_v28 = vpop.f32.mrf.mxu1 }
 0xa15   : > { %v5521_v44 = vadd.f32 %v5520_v28, %v5519_v39  ;;  %v8884_v57 = vadd.f32 %v3935_v62, %v8691_v26 }
 0xa16   : > { %v5522_v45 = vpop.f32.mrf.mxu1 }
 0xa17   : > { %v3938_v9 = vadd.f32 %v5521_v44, %v8816_v32  ;;  %4041 = vadd.xlane.f32.xlu0 %v8884_v57  ;;  %v5506_v44 = vadd.f32 %v5505_v2, %v5504_v51  ;;  %v5500_v51 = vadd.f32 %v5499_v60, %v5498_v36  ;;  %v5503_v36 = vadd.f32 %v8870_v4, %v8868_v23 }
 0xa18   : > { %v5523_v8 = vpop.f32.mrf.mxu1  ;;  %v3850_v23 = vadd.f32 %v8807_v41, %v8816_v32 }
 0xa19   : > { %v5524_v34 = vadd.f32 %v5523_v8, %v5522_v45  ;;  %v8889_v49 = vadd.f32 %v3938_v9, %v8694_v48 }
 0xa1a   : > { %v5525_v14 = vpop.f32.mrf.mxu1  ;;  %v8962_v41 = vadd.f32 %v3850_v23, %v8539_v42  ;;  %v4006_v42 = vpop.xlane.xlu0 %4005 }
 0xa1b   : > { %v3943_v55 = vadd.f32 %v5524_v34, %v8816_v32  ;;  %4043 = vadd.xlane.f32.xlu1 %v8889_v49 }
 0xa1c   : > { %v5526_v24 = vpop.f32.mrf.mxu1 }
 0xa1d   : > { %v5527_v39 = vadd.f32 %v5526_v24, %v5525_v14  ;;  %v8894_v26 = vadd.f32 %v3943_v55, %v8704_v6  ;;  %v3919_v6 = vadd.f32 %v5506_v44, %v8816_v32  ;;  %v5509_v14 = vadd.f32 %v5508_v43, %v5507_v52 }
 0xa1e   : > { %v5528_v21 = vpop.f32.mrf.mxu1  ;;  %v3858_v52 = vadd.f32 %v8811_v38, %v8816_v32  ;;  %v4061_v43 = vmul.f32 0.0078125, %v4006_v42 }
 0xa1f   : > { %v3946_v62 = vadd.f32 %v5527_v39, %v8816_v32  ;;  %4045 = vadd.xlane.f32.xlu0 %v8894_v26  ;;  %v3922_v2 = vadd.f32 %v5509_v14, %v8816_v32 }
 0xa20   : > { %v5529_v28 = vpop.f32.mrf.mxu1  ;;  %v8937_v60 = vadd.f32 %v3858_v52, %v8563_v18  ;;  %v5497_v18 = vadd.f32 %v8866_v11, %v8864_v15  ;;  %v3895_v15 = vadd.f32 %v8854_v31, %v8816_v32 }
 0xa21   : > { %v5530_v45 = vadd.f32 %v5529_v28, %v5528_v21  ;;  %v8899_v48 = vadd.f32 %v3946_v62, %v8707_v22  ;;  %v3855_v22 = vadd.f32 %v8809_v47, %v8816_v32  ;;  %v8916_v62 = vadd.f32 %v3919_v6, %v8665_v3  ;;  %v4008_v28 = vpop.xlane.xlu1 %4007 }
 0xa22   : > { %v5531_v9 = vpop.f32.mrf.mxu1  ;;  %v3911_v47 = vadd.f32 %v5500_v51, %v8816_v32  ;;  %v3847_v3 = vadd.f32 %v8805_v0, %v8816_v32  ;;  %v3903_v0 = vadd.f32 %v8862_v5, %v8816_v32  ;;  %v4062_v44 = vmul.f32 0.0078125, %v4008_v28 }
 0xa23   : > { %v3951_v8 = vadd.f32 %v5530_v45, %v8816_v32  ;;  %4047 = vadd.xlane.f32.xlu1 %v8899_v48 }
 0xa24   : > { %v5532_v34 = vpop.f32.mrf.mxu1  ;;  %v8940_v38 = vadd.f32 %v3911_v47, %v8652_v35  ;;  %v3906_v35 = vadd.f32 %v5497_v18, %v8816_v32  ;;  %v8965_v5 = vadd.f32 %v3903_v0, %v8642_v27  ;;  %v3831_v27 = vadd.f32 %v8797_v33, %v8816_v32  ;;  %v9742_v47 = vld [vmem:[#allocation84_spill] sm:$0xff]  ;;  %v9744_v0 = vld [vmem:[#allocation81_spill] sm:$0xff] }
 0xa25   : > { %v5533_v55 = vadd.f32 %v5532_v34, %v5531_v9  ;;  %v8905_v24 = vadd.f32 %v3951_v8, %v8717_v37  ;;  %v8921_v37 = vadd.f32 %v3855_v22, %v8560_v25  ;;  %v3914_v25 = vadd.f32 %v5503_v36, %v8816_v32  ;;  %v4012_v9 = vpop.xlane.xlu1 %4011  ;;  %v9743_v36 = vld [vmem:[#allocation83_spill] sm:$0xff] }
 0xa26   : > { %v8994_v45 = vadd.f32 %v3831_v27, %v8490_v7  ;;  %v3834_v33 = vadd.f32 %v8799_v50, %v8816_v32  ;;  %v9007_v34 = vsub.f32 %v8825_v1, %v4062_v44  ;;  %v4064_v7 = vmul.f32 0.0078125, %v4012_v9 }
 0xa27   : > { %v3954_v39 = vadd.f32 %v5533_v55, %v8816_v32  ;;  %4049 = vadd.xlane.f32.xlu0 %v8905_v24  ;;  %v8954_v4 = vadd.f32 %v3914_v25, %v8655_v19  ;;  %v3842_v19 = vadd.f32 %v8803_v29, %v8816_v32  ;;  %v3898_v29 = vadd.f32 %v8860_v30, %v8816_v32 }
 0xa28   : > { %v8999_v30 = vsub.f32 %v8820_v46, %v4061_v43  ;;  %v9019_v55 = vsub.f32 %v8835_v17, %v4064_v7  ;;  %v4126_v1 = vmul.f32 %v9007_v34, %v9007_v34 }
 0xa29   : > { %v8913_v21 = vadd.f32 %v3954_v39, %v8720_v59  ;;  %v8929_v59 = vadd.f32 %v3922_v2, %v8668_v53  ;;  %v8945_v53 = vadd.f32 %v3847_v3, %v8536_v12  ;;  %v3839_v12 = vadd.f32 %v8801_v56, %v8816_v32  ;;  %v4016_v46 = vpop.xlane.xlu1 %4015 }
 0xa2a   : > { %v8974_v56 = vadd.f32 %v3906_v35, %v8639_v13  ;;  %v8986_v31 = vadd.f32 %v3842_v19, %v8516_v20  ;;  %v8989_v13 = vadd.f32 %v3895_v15, %v8627_v58  ;;  %v9002_v58 = vadd.f32 %v3898_v29, %v8630_v54 }
 0xa2b   : > { %4051 = vadd.xlane.f32.xlu1 %v8913_v21  ;;  %4033 = vadd.xlane.f32.xlu0 %v8916_v62  ;;  %v8977_v11 = vadd.f32 %v3839_v12, %v8513_v61  ;;  %v4010_v61 = vpop.xlane.xlu0 %4009  ;;  %v9013_v32 = vadd.f32 %v3834_v33, %v8493_v40  ;;  %v4125_v54 = vmul.f32 %v8999_v30, %v8999_v30  ;;  %v4066_v22 = vmul.f32 0.0078125, %v4016_v46 }
 0xa2c   : > { %v4063_v20 = vmul.f32 0.0078125, %v4010_v61  ;;  %v4128_v52 = vmul.f32 %v9019_v55, %v9019_v55 }
 0xa2d   : > { %v9031_v17 = vsub.f32 %v9742_v47, %v4066_v22 }
 0xa2e   : > { %v9010_v6 = vsub.f32 %v8830_v63, %v4063_v20  ;;  %v9741_v63 = vld [vmem:[#allocation82_spill] sm:$0xff] }
 0xa2f   : > { %4035 = vadd.xlane.f32.xlu1 %v8929_v59  ;;  %4001 = vadd.xlane.f32.xlu0 %v8921_v37  ;;  %v4014_v8 = vpop.xlane.xlu0 %4013  ;;  %v4130_v35 = vmul.f32 %v9031_v17, %v9031_v17 }
 0xa30   : > { %v4065_v50 = vmul.f32 0.0078125, %v4014_v8  ;;  %v4127_v51 = vmul.f32 %v9010_v6, %v9010_v6  ;;  %v4020_v2 = vpop.xlane.xlu1 %4019 }
 0xa31   : > { %v4068_v25 = vmul.f32 0.0078125, %v4020_v2 }
 0xa32   : > { %v9024_v39 = vsub.f32 %v9741_v63, %v4065_v50 }
 0xa33   : > { %4003 = vadd.xlane.f32.xlu1 %v8937_v60  ;;  %4029 = vadd.xlane.f32.xlu0 %v8940_v38  ;;  %v4018_v14 = vpop.xlane.xlu0 %4017  ;;  %v9039_v18 = vsub.f32 %v9744_v0, %v4068_v25 }
 0xa34   : > { %v4067_v40 = vmul.f32 0.0078125, %v4018_v14  ;;  %v4129_v23 = vmul.f32 %v9024_v39, %v9024_v39 }
 0xa35   : > { %v4132_v19 = vmul.f32 %v9039_v18, %v9039_v18 }
 0xa36   : > { %v9034_v3 = vsub.f32 %v9743_v36, %v4067_v40 }
 0xa37   : > { %4031 = vadd.xlane.f32.xlu1 %v8954_v4  ;;  %3997 = vadd.xlane.f32.xlu0 %v8945_v53 }
 0xa38   : > { %v4131_v12 = vmul.f32 %v9034_v3, %v9034_v3 }
 0xa3b   : > { %3999 = vadd.xlane.f32.xlu1 %v8962_v41  ;;  %4025 = vadd.xlane.f32.xlu0 %v8965_v5 }
 0xa3f   : > { %4027 = vadd.xlane.f32.xlu1 %v8974_v56  ;;  %3993 = vadd.xlane.f32.xlu0 %v8977_v11 }
 0xa43   : > { %3995 = vadd.xlane.f32.xlu1 %v8986_v31  ;;  %4021 = vadd.xlane.f32.xlu0 %v8989_v13 }
 0xa47   : > { %4023 = vadd.xlane.f32.xlu1 %v9002_v58  ;;  %3989 = vadd.xlane.f32.xlu0 %v8994_v45 }
 0xa4b   : > { %3991 = vadd.xlane.f32.xlu1 %v9013_v32  ;;  %4165 = vadd.xlane.f32.xlu0 %v4125_v54 }
 0xa4f   : > { %4169 = vadd.xlane.f32.xlu0 %v4127_v51  ;;  %4167 = vadd.xlane.f32.xlu1 %v4126_v1 }
 0xa53   : > { %4173 = vadd.xlane.f32.xlu0 %v4129_v23  ;;  %4171 = vadd.xlane.f32.xlu1 %v4128_v52 }
 0xa57   : > { %4177 = vadd.xlane.f32.xlu0 %v4131_v12  ;;  %4175 = vadd.xlane.f32.xlu1 %v4130_v35 }
 0xa5b   : > { %4179 = vadd.xlane.f32.xlu1 %v4132_v19 }
 0xa98   : > { %v4038_v15 = vpop.xlane.xlu0 %4037 }
 0xa99   : > { %v4077_v42 = vmul.f32 0.0078125, %v4038_v15 }
 0xa9b   : > { %v9048_v27 = vsub.f32 %v8874_v16, %v4077_v42 }
 0xa9c   : > { %v4040_v29 = vpop.xlane.xlu1 %4039 }
 0xa9d   : > { %v4078_v43 = vmul.f32 0.0078125, %v4040_v29  ;;  %v4141_v28 = vmul.f32 %v9048_v27, %v9048_v27 }
 0xa9f   : > { %v9053_v61 = vsub.f32 %v8879_v10, %v4078_v43  ;;  %4197 = vadd.xlane.f32.xlu0 %v4141_v28 }
 0xaa0   : > { %v4042_v44 = vpop.xlane.xlu0 %4041 }
 0xaa1   : > { %v4079_v33 = vmul.f32 0.0078125, %v4042_v44  ;;  %v4142_v20 = vmul.f32 %v9053_v61, %v9053_v61 }
 0xaa3   : > { %v9058_v9 = vsub.f32 %v8884_v57, %v4079_v33  ;;  %4199 = vadd.xlane.f32.xlu1 %v4142_v20 }
 0xaa4   : > { %v4044_v16 = vpop.xlane.xlu1 %4043 }
 0xaa5   : > { %v4080_v8 = vmul.f32 0.0078125, %v4044_v16  ;;  %v4143_v7 = vmul.f32 %v9058_v9, %v9058_v9 }
 0xaa7   : > { %v9063_v50 = vsub.f32 %v8889_v49, %v4080_v8  ;;  %4201 = vadd.xlane.f32.xlu0 %v4143_v7 }
 0xaa8   : > { %v4046_v10 = vpop.xlane.xlu0 %4045 }
 0xaa9   : > { %v4081_v54 = vmul.f32 0.0078125, %v4046_v10  ;;  %v4144_v46 = vmul.f32 %v9063_v50, %v9063_v50 }
 0xaab   : > { %v9068_v14 = vsub.f32 %v8894_v26, %v4081_v54  ;;  %4203 = vadd.xlane.f32.xlu1 %v4144_v46 }
 0xaac   : > { %v4048_v57 = vpop.xlane.xlu1 %4047 }
 0xaad   : > { %v4082_v1 = vmul.f32 0.0078125, %v4048_v57  ;;  %v4145_v63 = vmul.f32 %v9068_v14, %v9068_v14 }
 0xaaf   : > { %v9073_v22 = vsub.f32 %v8899_v48, %v4082_v1  ;;  %4205 = vadd.xlane.f32.xlu0 %v4145_v63 }
 0xab0   : > { %v4050_v49 = vpop.xlane.xlu0 %4049 }
 0xab1   : > { %v4083_v40 = vmul.f32 0.0078125, %v4050_v49  ;;  %v4146_v51 = vmul.f32 %v9073_v22, %v9073_v22 }
 0xab3   : > { %v9078_v2 = vsub.f32 %v8905_v24, %v4083_v40  ;;  %4207 = vadd.xlane.f32.xlu1 %v4146_v51 }
 0xab4   : > { %v4034_v26 = vpop.xlane.xlu0 %4033  ;;  %v4052_v52 = vpop.xlane.xlu1 %4051 }
 0xab5   : > { %v4075_v47 = vmul.f32 0.0078125, %v4034_v26  ;;  %v4084_v36 = vmul.f32 0.0078125, %v4052_v52  ;;  %v4147_v25 = vmul.f32 %v9078_v2, %v9078_v2 }
 0xab7   : > { %v9083_v48 = vsub.f32 %v8916_v62, %v4075_v47  ;;  %v9086_v23 = vsub.f32 %v8913_v21, %v4084_v36  ;;  %4209 = vadd.xlane.f32.xlu0 %v4147_v25 }
 0xab8   : > { %v4002_v0 = vpop.xlane.xlu0 %4001  ;;  %v4036_v12 = vpop.xlane.xlu1 %4035 }
 0xab9   : > { %v4059_v35 = vmul.f32 0.0078125, %v4002_v0  ;;  %v4076_v24 = vmul.f32 0.0078125, %v4036_v12  ;;  %v4139_v19 = vmul.f32 %v9083_v48, %v9083_v48  ;;  %v4148_v15 = vmul.f32 %v9086_v23, %v9086_v23 }
 0xabb   : > { %v9093_v42 = vsub.f32 %v8921_v37, %v4059_v35  ;;  %v9096_v62 = vsub.f32 %v8929_v59, %v4076_v24  ;;  %4193 = vadd.xlane.f32.xlu0 %v4139_v19  ;;  %4211 = vadd.xlane.f32.xlu1 %v4148_v15 }
 0xabc   : > { %v4030_v21 = vpop.xlane.xlu0 %4029  ;;  %v4004_v29 = vpop.xlane.xlu1 %4003 }
 0xabd   : > { %v4073_v43 = vmul.f32 0.0078125, %v4030_v21  ;;  %v4060_v28 = vmul.f32 0.0078125, %v4004_v29  ;;  %v4123_v44 = vmul.f32 %v9093_v42, %v9093_v42  ;;  %v4140_v33 = vmul.f32 %v9096_v62, %v9096_v62 }
 0xabf   : > { %v9103_v20 = vsub.f32 %v8940_v38, %v4073_v43  ;;  %v9106_v37 = vsub.f32 %v8937_v60, %v4060_v28  ;;  %4161 = vadd.xlane.f32.xlu0 %v4123_v44  ;;  %4195 = vadd.xlane.f32.xlu1 %v4140_v33 }
 0xac0   : > { %v3998_v59 = vpop.xlane.xlu0 %3997  ;;  %v4032_v16 = vpop.xlane.xlu1 %4031 }
 0xac1   : > { %v4057_v8 = vmul.f32 0.0078125, %v3998_v59  ;;  %v4074_v7 = vmul.f32 0.0078125, %v4032_v16  ;;  %v4137_v10 = vmul.f32 %v9103_v20, %v9103_v20  ;;  %v4124_v54 = vmul.f32 %v9106_v37, %v9106_v37 }
 0xac3   : > { %v9113_v46 = vsub.f32 %v8945_v53, %v4057_v8  ;;  %v9116_v38 = vsub.f32 %v8954_v4, %v4074_v7  ;;  %4189 = vadd.xlane.f32.xlu0 %v4137_v10  ;;  %4163 = vadd.xlane.f32.xlu1 %v4124_v54 }
 0xac4   : > { %v4026_v60 = vpop.xlane.xlu0 %4025  ;;  %v4000_v57 = vpop.xlane.xlu1 %3999 }
 0xac5   : > { %v4071_v1 = vmul.f32 0.0078125, %v4026_v60  ;;  %v4058_v63 = vmul.f32 0.0078125, %v4000_v57  ;;  %v4121_v49 = vmul.f32 %v9113_v46, %v9113_v46  ;;  %v4138_v40 = vmul.f32 %v9116_v38, %v9116_v38 }
 0xac7   : > { %v9123_v51 = vsub.f32 %v8965_v5, %v4071_v1  ;;  %v9126_v53 = vsub.f32 %v8962_v41, %v4058_v63  ;;  %4157 = vadd.xlane.f32.xlu0 %v4121_v49  ;;  %4191 = vadd.xlane.f32.xlu1 %v4138_v40 }
 0xac8   : > { %v3994_v4 = vpop.xlane.xlu0 %3993  ;;  %v4028_v26 = vpop.xlane.xlu1 %4027 }
 0xac9   : > { %v4055_v52 = vmul.f32 0.0078125, %v3994_v4  ;;  %v4072_v47 = vmul.f32 0.0078125, %v4028_v26  ;;  %v4135_v36 = vmul.f32 %v9123_v51, %v9123_v51  ;;  %v4122_v25 = vmul.f32 %v9126_v53, %v9126_v53 }
 0xacb   : > { %v9133_v0 = vsub.f32 %v8977_v11, %v4055_v52  ;;  %v9136_v5 = vsub.f32 %v8974_v56, %v4072_v47  ;;  %4185 = vadd.xlane.f32.xlu0 %v4135_v36  ;;  %4159 = vadd.xlane.f32.xlu1 %v4122_v25 }
 0xacc   : > { %v4022_v41 = vpop.xlane.xlu0 %4021  ;;  %v3996_v12 = vpop.xlane.xlu1 %3995 }
 0xacd   : > { %v4069_v35 = vmul.f32 0.0078125, %v4022_v41  ;;  %v4056_v24 = vmul.f32 0.0078125, %v3996_v12  ;;  %v4119_v19 = vmul.f32 %v9133_v0, %v9133_v0  ;;  %v4136_v15 = vmul.f32 %v9136_v5, %v9136_v5 }
 0xacf   : > { %v9143_v21 = vsub.f32 %v8989_v13, %v4069_v35  ;;  %v9146_v11 = vsub.f32 %v8986_v31, %v4056_v24  ;;  %4153 = vadd.xlane.f32.xlu0 %v4119_v19  ;;  %4187 = vadd.xlane.f32.xlu1 %v4136_v15 }
 0xad0   : > { %v3990_v56 = vpop.xlane.xlu0 %3989  ;;  %v4024_v29 = vpop.xlane.xlu1 %4023 }
 0xad1   : > { %v4053_v43 = vmul.f32 0.0078125, %v3990_v56  ;;  %v4070_v28 = vmul.f32 0.0078125, %v4024_v29  ;;  %v4133_v44 = vmul.f32 %v9143_v21, %v9143_v21  ;;  %v4120_v33 = vmul.f32 %v9146_v11, %v9146_v11 }
 0xad3   : > { %v9153_v59 = vsub.f32 %v8994_v45, %v4053_v43  ;;  %v9156_v13 = vsub.f32 %v9002_v58, %v4070_v28  ;;  %4181 = vadd.xlane.f32.xlu0 %v4133_v44  ;;  %4155 = vadd.xlane.f32.xlu1 %v4120_v33  ;;  %v9171_v33 = vld [vmem:[%s9745_s25] ss:$0 sm:$0xff] }
 0xad4   : > { %v4166_v31 = vpop.xlane.xlu0 %4165  ;;  %v3992_v16 = vpop.xlane.xlu1 %3991 }
 0xad5   : > { %v4221_v8 = vmul.f32 0.0078125, %v4166_v31  ;;  %v4054_v7 = vmul.f32 0.0078125, %v3992_v16  ;;  %v4117_v10 = vmul.f32 %v9153_v59, %v9153_v59  ;;  %v4134_v54 = vmul.f32 %v9156_v13, %v9156_v13 }
 0xad7   : > { %v4253_v60 = vadd.f32 1e-05, %v4221_v8  ;;  %v9163_v57 = vsub.f32 %v9013_v32, %v4054_v7  ;;  %4149 = vadd.xlane.f32.xlu0 %v4117_v10  ;;  %4183 = vadd.xlane.f32.xlu1 %v4134_v54  ;;  %v9177_v7 = vld [vmem:[%s9746_s21] ss:$0 sm:$0xff] }
 0xad8   : > { %v4170_v45 = vpop.xlane.xlu0 %4169  ;;  %v4168_v58 = vpop.xlane.xlu1 %4167 }
 0xad9   : > { %6109 = vrsqrt.f32 %v4253_v60  ;;  %v4223_v1 = vmul.f32 0.0078125, %v4170_v45  ;;  %v4222_v63 = vmul.f32 0.0078125, %v4168_v58  ;;  %v4118_v49 = vmul.f32 %v9163_v57, %v9163_v57 }
 0xadb   : > { %v4255_v40 = vadd.f32 1e-05, %v4223_v1  ;;  %v4254_v4 = vadd.f32 1e-05, %v4222_v63  ;;  %4151 = vadd.xlane.f32.xlu1 %v4118_v49 }
 0xadc   : > { %v4174_v26 = vpop.xlane.xlu0 %4173  ;;  %v4172_v52 = vpop.xlane.xlu1 %4171 }
 0xadd   : > { %6111 = vrsqrt.f32 %v4255_v40  ;;  %v4225_v47 = vmul.f32 0.0078125, %v4174_v26  ;;  %v4224_v36 = vmul.f32 0.0078125, %v4172_v52 }
 0xade   : > { %6113 = vrsqrt.f32 %v4254_v4 }
 0xadf   : > { %v4257_v32 = vadd.f32 1e-05, %v4225_v47  ;;  %v4256_v25 = vadd.f32 1e-05, %v4224_v36 }
 0xae0   : > { %v4178_v41 = vpop.xlane.xlu0 %4177  ;;  %v4176_v12 = vpop.xlane.xlu1 %4175 }
 0xae1   : > { %6115 = vrsqrt.f32 %v4257_v32  ;;  %v4227_v35 = vmul.f32 0.0078125, %v4178_v41  ;;  %v4226_v24 = vmul.f32 0.0078125, %v4176_v12 }
 0xae2   : > { %6117 = vrsqrt.f32 %v4256_v25 }
 0xae3   : > { %v4259_v19 = vadd.f32 1e-05, %v4227_v35  ;;  %v4258_v15 = vadd.f32 1e-05, %v4226_v24 }
 0xae4   : > { %v4180_v56 = vpop.xlane.xlu1 %4179 }
 0xae5   : > { %6119 = vrsqrt.f32 %v4259_v19  ;;  %v4228_v29 = vmul.f32 0.0078125, %v4180_v56 }
 0xae6   : > { %v6110_v43 = vpop.eup %6109  ;;  %6121 = vrsqrt.f32 %v4258_v15 }
 0xae7   : > { %v4260_v28 = vadd.f32 1e-05, %v4228_v29  ;;  %v4317_v44 = vmul.f32 %v6110_v43, %v8999_v30  ;;  %v4579_v29 = vld [vmem:[%s6844_s3] sm:$0x3]  ;;  %s5039_s3 = sshll.u32 %s6636_s1, 11 }
 0xae8   : > { %s9329_s22 = scalar_lea.hbm %s9750_s0, %s5039_s3 }
 0xae9   : > { %6123 = vrsqrt.f32 %v4260_v28  ;;  %v4356_v8 = vmul.f32 %v9171_v33, %v4317_v44  ;;  %v9747_v28 = vld [vmem:[#allocation33_spill] sm:$0xff] }
 0xaea   : > { %v6112_v31 = vpop.eup %6111 }
 0xaeb   : > { %v6114_v16 = vpop.eup %6113  ;;  %v4319_v10 = vmul.f32 %v6112_v31, %v9010_v6  ;;  %v4395_v58 = vadd.f32 %v9177_v7, %v4356_v8 }
 0xaec   : > { %v4318_v54 = vmul.f32 %v6114_v16, %v9007_v34  ;;  %v9748_v16 = vld [vmem:[#allocation32_spill] sm:$0xff] }
 0xaed   : > { %v4358_v49 = vmul.f32 %v9171_v33, %v4319_v10 }
 0xaee   : > { %v6116_v30 = vpop.eup %6115  ;;  %v4357_v60 = vmul.f32 %v9171_v33, %v4318_v54 }
 0xaef   : > { %v6118_v45 = vpop.eup %6117  ;;  %v4321_v1 = vmul.f32 %v6116_v30, %v9024_v39  ;;  %v4397_v39 = vadd.f32 %v9177_v7, %v4358_v49 }
 0xaf0   : > { %v4320_v63 = vmul.f32 %v6118_v45, %v9019_v55  ;;  %v4396_v40 = vadd.f32 %v9177_v7, %v4357_v60 }
 0xaf1   : > { %v4360_v36 = vmul.f32 %v9171_v33, %v4321_v1 }
 0xaf2   : > { %v6120_v4 = vpop.eup %6119  ;;  %v4359_v6 = vmul.f32 %v9171_v33, %v4320_v63  ;;  %v9188_v26 = vpack.c.bf16 %v4396_v40, %v4395_v58 }
 0xaf3   : > { %v6122_v34 = vpop.eup %6121  ;;  %v4323_v52 = vmul.f32 %v6120_v4, %v9034_v3  ;;  %v4399_v12 = vadd.f32 %v9177_v7, %v4360_v36 }
 0xaf4   : > { %v4322_v47 = vmul.f32 %v6122_v34, %v9031_v17  ;;  %v4398_v55 = vadd.f32 %v9177_v7, %v4359_v6  ;;  %5202 = vst [vmem:[%s9197_s24 + $0x20] sm:$0xff] %v9188_v26  }
 0xaf5   : > { %v4362_v41 = vmul.f32 %v9171_v33, %v4323_v52 }
 0xaf6   : > { %v6124_v32 = vpop.eup %6123  ;;  %v4361_v3 = vmul.f32 %v9171_v33, %v4322_v47  ;;  %v9202_v17 = vpack.c.bf16 %v4398_v55, %v4397_v39 }
 0xaf7   : > { %v4324_v25 = vmul.f32 %v6124_v32, %v9039_v18  ;;  %v4401_v15 = vadd.f32 %v9177_v7, %v4362_v41  ;;  %v4580_v18 = vsub.f32 1.0, %v4579_v29 }
 0xaf8   : > { %v4400_v35 = vadd.f32 %v9177_v7, %v4361_v3  ;;  %5203 = vst [vmem:[%s9197_s24 + $0x28] sm:$0xff] %v9202_v17  }
 0xaf9   : > { %v4363_v24 = vmul.f32 %v9171_v33, %v4324_v25  ;;  %v4589_v44 = vrot.slane %v4580_v18, %v9747_v28  ;;  %v9224_v8 = vrot.slane %v4580_v18, %v9748_v16 }
 0xafa   : > { %v9211_v19 = vpack.c.bf16 %v4400_v35, %v4399_v12 }
 0xafb   : > { %v4402_v56 = vadd.f32 %v9177_v7, %v4363_v24  ;;  %v4600_v31 = vpack.c.bf16 %v4589_v44, %v4589_v44  ;;  %v4593_v10 = vsel %vm4592_vm3, %v9224_v8, 0.0  ;;  %v4594_v54 = vsel %vm4592_vm3, %v4589_v44, 0.0 }
 0xafc   : > { %5204 = vst [vmem:[%s9197_s24 + $0x30] sm:$0xff] %v9211_v19   ;;  %v4595_v30 = vadd.f32 %v4594_v54, %v4593_v10 }
 0xafd   : > { %v9218_v43 = vpack.c.bf16 %v4402_v56, %v4401_v15  ;;  %4633 = vmatprep.mubr.bf16.mxu0 %v4600_v31 }
 0xafe   : > { %4596 = vadd.xlane.f32.xlu0 %v4595_v30 }
 0xaff   : > { %5205 = vst [vmem:[%s9197_s24 + $0x38] sm:$0xff] %v9218_v43  }
 0xb28   : > { %v4198_v60 = vpop.xlane.xlu0 %4197 }
 0xb29   : > { %v4237_v45 = vmul.f32 0.0078125, %v4198_v60 }
 0xb2b   : > { %v4269_v58 = vadd.f32 1e-05, %v4237_v45 }
 0xb2c   : > { %v4200_v1 = vpop.xlane.xlu1 %4199 }
 0xb2d   : > { %6125 = vrsqrt.f32 %v4269_v58  ;;  %v4238_v63 = vmul.f32 0.0078125, %v4200_v1 }
 0xb2f   : > { %v4270_v49 = vadd.f32 1e-05, %v4238_v63 }
 0xb30   : > { %v4202_v40 = vpop.xlane.xlu0 %4201 }
 0xb31   : > { %6127 = vrsqrt.f32 %v4270_v49  ;;  %v4239_v4 = vmul.f32 0.0078125, %v4202_v40 }
 0xb33   : > { %v4271_v6 = vadd.f32 1e-05, %v4239_v4 }
 0xb34   : > { %v4204_v34 = vpop.xlane.xlu1 %4203 }
 0xb35   : > { %6129 = vrsqrt.f32 %v4271_v6  ;;  %v4240_v52 = vmul.f32 0.0078125, %v4204_v34 }
 0xb37   : > { %v4272_v47 = vadd.f32 1e-05, %v4240_v52 }
 0xb38   : > { %v4206_v36 = vpop.xlane.xlu0 %4205 }
 0xb39   : > { %6131 = vrsqrt.f32 %v4272_v47  ;;  %v4241_v39 = vmul.f32 0.0078125, %v4206_v36 }
 0xb3a   : > { %v6126_v55 = vpop.eup %6125 }
 0xb3b   : > { %v4273_v32 = vadd.f32 1e-05, %v4241_v39  ;;  %v4333_v25 = vmul.f32 %v6126_v55, %v9048_v27 }
 0xb3c   : > { %v4208_v3 = vpop.xlane.xlu1 %4207 }
 0xb3d   : > { %6133 = vrsqrt.f32 %v4273_v32  ;;  %v4242_v41 = vmul.f32 0.0078125, %v4208_v3  ;;  %v4372_v56 = vmul.f32 %v9171_v33, %v4333_v25 }
 0xb3e   : > { %v6128_v12 = vpop.eup %6127 }
 0xb3f   : > { %v4274_v35 = vadd.f32 1e-05, %v4242_v41  ;;  %v4334_v24 = vmul.f32 %v6128_v12, %v9053_v61  ;;  %v4411_v54 = vadd.f32 %v9177_v7, %v4372_v56 }
 0xb40   : > { %v4210_v15 = vpop.xlane.xlu0 %4209 }
 0xb41   : > { %6135 = vrsqrt.f32 %v4274_v35  ;;  %v4243_v29 = vmul.f32 0.0078125, %v4210_v15  ;;  %v4373_v18 = vmul.f32 %v9171_v33, %v4334_v24 }
 0xb42   : > { %v6130_v28 = vpop.eup %6129 }
 0xb43   : > { %v4275_v44 = vadd.f32 1e-05, %v4243_v29  ;;  %v4412_v31 = vadd.f32 %v9177_v7, %v4373_v18  ;;  %v4335_v10 = vmul.f32 %v6130_v28, %v9058_v9 }
 0xb44   : > { %v4194_v16 = vpop.xlane.xlu0 %4193  ;;  %v4212_v27 = vpop.xlane.xlu1 %4211 }
 0xb45   : > { %6137 = vrsqrt.f32 %v4275_v44  ;;  %v4235_v61 = vmul.f32 0.0078125, %v4194_v16  ;;  %v4244_v30 = vmul.f32 0.0078125, %v4212_v27  ;;  %v9234_v45 = vpack.c.bf16 %v4412_v31, %v4411_v54 }
 0xb46   : > { %v6132_v60 = vpop.eup %6131  ;;  %v4374_v4 = vmul.f32 %v9171_v33, %v4335_v10 }
 0xb47   : > { %v4267_v58 = vadd.f32 1e-05, %v4235_v61  ;;  %v4276_v1 = vadd.f32 1e-05, %v4244_v30  ;;  %v4336_v63 = vmul.f32 %v6132_v60, %v9063_v50  ;;  %5210 = vst [vmem:[%s9197_s24 + $0x60] sm:$0xff] %v9234_v45  }
 0xb48   : > { %v4162_v49 = vpop.xlane.xlu0 %4161  ;;  %v4196_v40 = vpop.xlane.xlu1 %4195  ;;  %v4413_v3 = vadd.f32 %v9177_v7, %v4374_v4 }
 0xb49   : > { %6139 = vrsqrt.f32 %v4267_v58  ;;  %v4219_v9 = vmul.f32 0.0078125, %v4162_v49  ;;  %v4236_v6 = vmul.f32 0.0078125, %v4196_v40  ;;  %v4375_v34 = vmul.f32 %v9171_v33, %v4336_v63 }
 0xb4a   : > { %v6134_v52 = vpop.eup %6133  ;;  %6141 = vrsqrt.f32 %v4276_v1 }
 0xb4b   : > { %v4251_v47 = vadd.f32 1e-05, %v4219_v9  ;;  %v4268_v36 = vadd.f32 1e-05, %v4236_v6  ;;  %v4414_v39 = vadd.f32 %v9177_v7, %v4375_v34  ;;  %v4337_v32 = vmul.f32 %v6134_v52, %v9068_v14 }
 0xb4c   : > { %v4190_v55 = vpop.xlane.xlu0 %4189  ;;  %v4164_v50 = vpop.xlane.xlu1 %4163 }
 0xb4d   : > { %6143 = vrsqrt.f32 %v4251_v47  ;;  %v4233_v25 = vmul.f32 0.0078125, %v4190_v55  ;;  %v4220_v41 = vmul.f32 0.0078125, %v4164_v50  ;;  %v9244_v35 = vpack.c.bf16 %v4414_v39, %v4413_v3 }
 0xb4e   : > { %v6136_v12 = vpop.eup %6135  ;;  %6145 = vrsqrt.f32 %v4268_v36  ;;  %v4376_v28 = vmul.f32 %v9171_v33, %v4337_v32 }
 0xb4f   : > { %v4265_v24 = vadd.f32 1e-05, %v4233_v25  ;;  %v4252_v15 = vadd.f32 1e-05, %v4220_v41  ;;  %v4338_v56 = vmul.f32 %v6136_v12, %v9073_v22  ;;  %5211 = vst [vmem:[%s9197_s24 + $0x68] sm:$0xff] %v9244_v35  }
 0xb50   : > { %v4158_v29 = vpop.xlane.xlu0 %4157  ;;  %v4192_v18 = vpop.xlane.xlu1 %4191  ;;  %v4415_v60 = vadd.f32 %v9177_v7, %v4376_v28 }
 0xb51   : > { %6147 = vrsqrt.f32 %v4265_v24  ;;  %v4217_v14 = vmul.f32 0.0078125, %v4158_v29  ;;  %v4234_v44 = vmul.f32 0.0078125, %v4192_v18  ;;  %v4377_v31 = vmul.f32 %v9171_v33, %v4338_v56 }
 0xb52   : > { %v6138_v16 = vpop.eup %6137  ;;  %6149 = vrsqrt.f32 %v4252_v15 }
 0xb53   : > { %v4249_v27 = vadd.f32 1e-05, %v4217_v14  ;;  %v4266_v10 = vadd.f32 1e-05, %v4234_v44  ;;  %v4416_v54 = vadd.f32 %v9177_v7, %v4377_v31  ;;  %v4339_v22 = vmul.f32 %v6138_v16, %v9078_v2 }
 0xb54   : > { %v4186_v61 = vpop.xlane.xlu0 %4185  ;;  %v4160_v30 = vpop.xlane.xlu1 %4159 }
 0xb55   : > { %6151 = vrsqrt.f32 %v4249_v27  ;;  %v4231_v58 = vmul.f32 0.0078125, %v4186_v61  ;;  %v4218_v1 = vmul.f32 0.0078125, %v4160_v30  ;;  %v4433_v49 = vpack.c.bf16 %v4416_v54, %v4415_v60 }
 0xb56   : > { %v6140_v63 = vpop.eup %6139  ;;  %6153 = vrsqrt.f32 %v4266_v10  ;;  %v4378_v47 = vmul.f32 %v9171_v33, %v4339_v22 }
 0xb57   : > { %v6142_v40 = vpop.eup %6141  ;;  %v4263_v4 = vadd.f32 1e-05, %v4231_v58  ;;  %v4250_v9 = vadd.f32 1e-05, %v4218_v1  ;;  %5212 = vst [vmem:[%s9197_s24 + $0x70] sm:$0xff] %v4433_v49   ;;  %v4331_v2 = vmul.f32 %v6140_v63, %v9083_v48 }
 0xb58   : > { %v4154_v6 = vpop.xlane.xlu0 %4153  ;;  %v4188_v34 = vpop.xlane.xlu1 %4187  ;;  %v4340_v52 = vmul.f32 %v6142_v40, %v9086_v23  ;;  %v4417_v23 = vadd.f32 %v9177_v7, %v4378_v47 }
 0xb59   : > { %6155 = vrsqrt.f32 %v4263_v4  ;;  %v4215_v36 = vmul.f32 0.0078125, %v4154_v6  ;;  %v4232_v39 = vmul.f32 0.0078125, %v4188_v34  ;;  %v4370_v56 = vmul.f32 %v9171_v33, %v4331_v2 }
 0xb5a   : > { %v6144_v55 = vpop.eup %6143  ;;  %6157 = vrsqrt.f32 %v4250_v9  ;;  %v4379_v50 = vmul.f32 %v9171_v33, %v4340_v52 }
 0xb5b   : > { %v6146_v32 = vpop.eup %6145  ;;  %v4247_v3 = vadd.f32 1e-05, %v4215_v36  ;;  %v4264_v25 = vadd.f32 1e-05, %v4232_v39  ;;  %v4315_v41 = vmul.f32 %v6144_v55, %v9093_v42 }
 0xb5c   : > { %v4182_v12 = vpop.xlane.xlu0 %4181  ;;  %v4156_v24 = vpop.xlane.xlu1 %4155  ;;  %v4418_v15 = vadd.f32 %v9177_v7, %v4379_v50  ;;  %v4332_v48 = vmul.f32 %v6146_v32, %v9096_v62  ;;  %v4409_v62 = vadd.f32 %v9177_v7, %v4370_v56 }
 0xb5d   : > { %6159 = vrsqrt.f32 %v4247_v3  ;;  %v4229_v29 = vmul.f32 0.0078125, %v4182_v12  ;;  %v4216_v18 = vmul.f32 0.0078125, %v4156_v24  ;;  %v4354_v27 = vmul.f32 %v9171_v33, %v4315_v41 }
 0xb5e   : > { %v6148_v28 = vpop.eup %6147  ;;  %6161 = vrsqrt.f32 %v4264_v25  ;;  %v4434_v14 = vpack.c.bf16 %v4418_v15, %v4417_v23  ;;  %v4371_v44 = vmul.f32 %v9171_v33, %v4332_v48 }
 0xb5f   : > { %v6150_v42 = vpop.eup %6149  ;;  %v4261_v31 = vadd.f32 1e-05, %v4229_v29  ;;  %v4248_v16 = vadd.f32 1e-05, %v4216_v18  ;;  %v4329_v22 = vmul.f32 %v6148_v28, %v9103_v20  ;;  %v4393_v34 = vadd.f32 %v9177_v7, %v4354_v27 }
 0xb60   : > { %5213 = vst [vmem:[%s9197_s24 + $0x78] sm:$0xff] %v4434_v14   ;;  %5534 = vmatprep.subr.bf16.mxu0 %v4434_v14  ;;  %v4150_v10 = vpop.xlane.xlu0 %4149  ;;  %v4184_v54 = vpop.xlane.xlu1 %4183  ;;  %v4410_v61 = vadd.f32 %v9177_v7, %v4371_v44  ;;  %v4316_v30 = vmul.f32 %v6150_v42, %v9106_v37 }
 0xb61   : > { %6163 = vrsqrt.f32 %v4261_v31  ;;  %v4213_v60 = vmul.f32 0.0078125, %v4150_v10  ;;  %5535 = vmatpush3.bf16.msra.mxu0 %v9218_v43  ;;  %v4230_v58 = vmul.f32 0.0078125, %v4184_v54  ;;  %v4368_v43 = vmul.f32 %v9171_v33, %v4329_v22 }
 0xb62   : > { %v6152_v1 = vpop.eup %6151  ;;  %6165 = vrsqrt.f32 %v4248_v16  ;;  %5536 = vmatprep.subr.bf16.mxu0 %v4433_v49  ;;  %v4430_v63 = vpack.c.bf16 %v4410_v61, %v4409_v62  ;;  %v4355_v40 = vmul.f32 %v9171_v33, %v4316_v30 }
 0xb63   : > { %v6154_v4 = vpop.eup %6153  ;;  %v4245_v9 = vadd.f32 1e-05, %v4213_v60  ;;  %v4262_v6 = vadd.f32 1e-05, %v4230_v58  ;;  %v4313_v47 = vmul.f32 %v6152_v1, %v9113_v46  ;;  %v4407_v32 = vadd.f32 %v9177_v7, %v4368_v43 }
 0xb64   : > { %v4152_v37 = vpop.xlane.xlu1 %4151  ;;  %5209 = vst [vmem:[%s9197_s24 + $0x58] sm:$0xff] %v4430_v63   ;;  %v4394_v20 = vadd.f32 %v9177_v7, %v4355_v40  ;;  %v4330_v52 = vmul.f32 %v6154_v4, %v9116_v38 }
 0xb65   : > { %6167 = vrsqrt.f32 %v4245_v9  ;;  %5537 = vmatpush3.bf16.msra.mxu0 %v9211_v19  ;;  %v4214_v49 = vmul.f32 0.0078125, %v4152_v37  ;;  %v4352_v3 = vmul.f32 %v9171_v33, %v4313_v47 }
 0xb66   : > { %v6156_v2 = vpop.eup %6155  ;;  %6169 = vrsqrt.f32 %v4262_v6  ;;  %5538 = vmatprep.subr.bf16.mxu0 %v9244_v35  ;;  %v4422_v36 = vpack.c.bf16 %v4394_v20, %v4393_v34  ;;  %v4369_v39 = vmul.f32 %v9171_v33, %v4330_v52 }
 0xb67   : > { %v6158_v55 = vpop.eup %6157  ;;  %v4246_v50 = vadd.f32 1e-05, %v4214_v49  ;;  %v4327_v38 = vmul.f32 %v6156_v2, %v9123_v51  ;;  %v4391_v24 = vadd.f32 %v9177_v7, %v4352_v3 }
 0xb68   : > { %5201 = vst [vmem:[%s9197_s24 + $0x18] sm:$0xff] %v4422_v36   ;;  %v4408_v46 = vadd.f32 %v9177_v7, %v4369_v39  ;;  %v4314_v19 = vmul.f32 %v6158_v55, %v9126_v53 }
 0xb69   : > { %6171 = vrsqrt.f32 %v4246_v50  ;;  %5539 = vmatpush3.bf16.msra.mxu0 %v9202_v17  ;;  %v4366_v12 = vmul.f32 %v9171_v33, %v4327_v38 }
 0xb6a   : > { %v6160_v35 = vpop.eup %6159  ;;  %5540 = vmatprep.subr.bf16.mxu0 %v9234_v45  ;;  %v4429_v25 = vpack.c.bf16 %v4408_v46, %v4407_v32  ;;  %v4353_v41 = vmul.f32 %v9171_v33, %v4314_v19 }
 0xb6b   : > { %v6162_v51 = vpop.eup %6161  ;;  %v4311_v15 = vmul.f32 %v6160_v35, %v9133_v0  ;;  %v4405_v29 = vadd.f32 %v9177_v7, %v4366_v12 }
 0xb6c   : > { %5208 = vst [vmem:[%s9197_s24 + $0x50] sm:$0xff] %v4429_v25   ;;  %v4392_v53 = vadd.f32 %v9177_v7, %v4353_v41  ;;  %v4328_v23 = vmul.f32 %v6162_v51, %v9136_v5 }
 0xb6d   : > { %5541 = vmatpush3.bf16.msra.mxu0 %v9188_v26  ;;  %v4350_v5 = vmul.f32 %v9171_v33, %v4311_v15 }
 0xb6e   : > { %v6164_v17 = vpop.eup %6163  ;;  %5542 = vmatprep.subr.bf16.mxu0 %v4430_v63  ;;  %v4421_v45 = vpack.c.bf16 %v4392_v53, %v4391_v24  ;;  %v4367_v48 = vmul.f32 %v9171_v33, %v4328_v23  ;;  %v4599_v63 = vpack.c.bf16 %v9224_v8, %v9224_v8 }
 0xb6f   : > { %v6166_v56 = vpop.eup %6165  ;;  %v4325_v0 = vmul.f32 %v6164_v17, %v9143_v21  ;;  %v4389_v16 = vadd.f32 %v9177_v7, %v4350_v5 }
 0xb70   : > { %5200 = vst [vmem:[%s9197_s24 + $0x10] sm:$0xff] %v4421_v45   ;;  %v4406_v18 = vadd.f32 %v9177_v7, %v4367_v48  ;;  %v4312_v28 = vmul.f32 %v6166_v56, %v9146_v11 }
 0xb71   : > { %5543 = vmatpush3.bf16.msra.mxu0 %v4422_v36  ;;  %v4364_v10 = vmul.f32 %v9171_v33, %v4325_v0 }
 0xb72   : > { %v6168_v26 = vpop.eup %6167  ;;  %5544 = vmatprep.subr.bf16.mxu0 %v4429_v25  ;;  %v4428_v14 = vpack.c.bf16 %v4406_v18, %v4405_v29  ;;  %v4351_v44 = vmul.f32 %v9171_v33, %v4312_v28 }
 0xb73   : > { %v6170_v42 = vpop.eup %6169  ;;  %v4309_v31 = vmul.f32 %v6168_v26, %v9153_v59  ;;  %v4403_v30 = vadd.f32 %v9177_v7, %v4364_v10 }
 0xb74   : > { %5207 = vst [vmem:[%s9197_s24 + $0x48] sm:$0xff] %v4428_v14   ;;  %v4390_v27 = vadd.f32 %v9177_v7, %v4351_v44  ;;  %v4326_v11 = vmul.f32 %v6170_v42, %v9156_v13 }
 0xb75   : > { %5545 = vmatpush3.bf16.msra.mxu0 %v4421_v45  ;;  %v4348_v59 = vmul.f32 %v9171_v33, %v4309_v31 }
 0xb76   : > { %v6172_v21 = vpop.eup %6171  ;;  %5546 = vmatprep.subr.bf16.mxu0 %v4428_v14  ;;  %v4420_v54 = vpack.c.bf16 %v4390_v27, %v4389_v16  ;;  %v4365_v62 = vmul.f32 %v9171_v33, %v4326_v11 }
 0xb77   : > { %v4310_v61 = vmul.f32 %v6172_v21, %v9163_v57  ;;  %v4387_v58 = vadd.f32 %v9177_v7, %v4348_v59 }
 0xb78   : > { %5199 = vst [vmem:[%s9197_s24 + $0x8] sm:$0xff] %v4420_v54   ;;  %v4404_v13 = vadd.f32 %v9177_v7, %v4365_v62 }
 0xb79   : > { %5547 = vmatpush3.bf16.msra.mxu0 %v4420_v54  ;;  %v4349_v22 = vmul.f32 %v9171_v33, %v4310_v61 }
 0xb7a   : > { %v4427_v60 = vpack.c.bf16 %v4404_v13, %v4403_v30 }
 0xb7b   : > { %v4388_v1 = vadd.f32 %v9177_v7, %v4349_v22 }
 0xb7c   : > { %5206 = vst [vmem:[%s9197_s24 + $0x40] sm:$0xff] %v4427_v60   ;;  %5548 = vmatprep.subr.bf16.mxu0 %v4427_v60 }
 0xb7d   : > { %v4419_v57 = vpack.c.bf16 %v4388_v1, %v4387_v58 }
 0xb7f   : > { %5108 = vst [vmem:[%s9197_s24] sm:$0xff] %v4419_v57   ;;  %5549 = vmatpush3.bf16.msra.mxu0 %v4419_v57 }
 0xb82   : > { %4634 = vmatmul.mubr.bf16.vlgmr.msra.gmra.mxu0 %v4599_v63 }
 0xb83   : > { %6402 = shalt.err (!%p6399_p4)
}
 0xb84   : > { %s6403_s20 = scalar_lea.hbm %s9329_s22, 2048  ;;  %s6407_s25 = scalar_lea.hbm %s9750_s0, 4096 }
 0xb85   : > { %p6404_p1 = scmp.ne.s32.totalorder %s9329_s22, %s6403_s20  ;;  %p6408_p0 = scmp.lt.s32.totalorder %s9329_s22, %s9750_s0 }
 0xb86   : > { %p6409_p5 = scmp.lt.s32.totalorder %s6407_s25, %s6403_s20 }
 0xb87   : > { %p6405_p7 = pnand %p6404_p1, %p9751_p9 }
 0xb88   : > { %p6410_p3 = por %p6409_p5, %p6408_p0 }
 0xb89   : > { %p6406_p8 = pneg %p6405_p7 }
 0xb8b   : > { %p6411_p10 = pnand %p6410_p3, %p6406_p8 }
 0xb8d   : > { %6414 = shalt.err (!%p6411_p10)
}
 0xb8e   : > { %s6517_s21 = smov 64   ;;  %s6518_s24 = smov 4   ;;  %v4597_v33 = vpop.xlane.xlu0 %4596 }
 0xb8f   : > { %5678 = dma.vmem_to_hbm [thread:$0]  (%p9751_p9), %s9332_s23, 2048, %s9329_s22, %s4645_s7, %s6517_s21, %s6517_s21, %s6518_s24   ;;  %v4598_v7 = vmax.f32 %v4597_v33, 1.0 }
 0xb90   : > { %s5001_s3 = sshll.u32 %s6636_s1, 4  ;;  %s747_s15 = scalar_lea.vmem [#allocation17], %s6826_s11 }
 0xb91   : > { %6173 = vrcp.f32 %v4598_v7  ;;  %s4678_s19 = sshll.u32 %s747_s15, 4  ;;  %s9752_s2 = sld [smem:[#allocation97_spill]]  ;;  %s4679_s19 = int_to_ptr.vmem [resolvable:$true] %s4678_s19 }
 0xb92   : > { %s4650_s22 = scalar_lea.sflag [#allocation18], %s6826_s11  ;;  %s6415_s23 = scalar_lea.vmem %s4679_s19, 16 }
 0xb93   : > { %p6416_p11 = scmp.ne.s32.totalorder %s4679_s19, %s6415_s23  ;;  %s6519_s1 = smov [#allocation17]  }
 0xb94   : > { %s6419_s7 = sshll.u32 %s6519_s1, 4  ;;  %s6420_s7 = int_to_ptr.vmem [resolvable:$false] %s6419_s7 }
 0xb95   : > { %p6417_p12 = pnand %p6416_p11, %p9751_p9  ;;  %s6421_s20 = scalar_lea.vmem %s6420_s7, 32 }
 0xb96   : > { %p6422_p2 = scmp.lt.s32.totalorder %s4679_s19, %s6420_s7  ;;  %p6423_p6 = scmp.lt.s32.totalorder %s6421_s20, %s6415_s23 }
 0xb97   : > { %s9362_s5 = scalar_lea.hbm %s9752_s2, %s5001_s3  ;;  %p6418_p13 = pneg %p6417_p12 }
 0xb98   : > { %p6424_p4 = por %p6423_p6, %p6422_p2 }
 0xb9a   : > { %p6425_p1 = pnand %p6424_p4, %p6418_p13 }
 0xb9e   : > { %v6174_v40 = vpop.eup %6173 }
 0xc42   : > { %v5550_v8 = vpop.f32.mrf.mxu0 }
 0xc44   : > { %v5551_v4 = vpop.f32.mrf.mxu0 }
 0xc45   : > { %v5552_v9 = vadd.f32 %v5551_v4, %v5550_v8 }
 0xc46   : > { %v5553_v6 = vpop.f32.mrf.mxu0 }
 0xc47   : > { %v4642_v34 = vmul.f32 %v6174_v40, %v5552_v9 }
 0xc48   : > { %v5554_v37 = vpop.f32.mrf.mxu0 }
 0xc49   : > { %4643 = vst [vmem:[%s747_s15] sm:$0x1] %v4642_v34 }
 0xc4a   : > { %6428 = shalt.err (!%p6425_p1)
}
 0xc4b   : > { %s6429_s18 = scalar_lea.hbm %s9362_s5, 16  ;;  %s6433_s25 = scalar_lea.hbm %s9752_s2, 32 }
 0xc4c   : > { %p6430_p7 = scmp.ne.s32.totalorder %s9362_s5, %s6429_s18  ;;  %p6434_p5 = scmp.lt.s32.totalorder %s9362_s5, %s9752_s2 }
 0xc4d   : > { %p6435_p3 = scmp.lt.s32.totalorder %s6433_s25, %s6429_s18 }
 0xc4e   : > { %p6431_p8 = pnand %p6430_p7, %p9751_p9 }
 0xc4f   : > { %p6436_p10 = por %p6435_p3, %p6434_p5 }
 0xc50   : > { %p6432_p0 = pneg %p6431_p8 }
 0xc52   : > { %p6437_p11 = pnand %p6436_p10, %p6432_p0 }
 0xc54   : > { %6440 = shalt.err (!%p6437_p11)
}
 0xc55   : > { %5679 = dma.vmem_to_hbm [thread:$0]  (%p9751_p9), %s4679_s19, 16, %s9362_s5, %s4650_s22  }
 0xc56 PF: > { %s9753_s21 = sld [smem:[#allocation26_spill]]  ;;  %p9756_p13 = scmp.ge.s32.totalorder %s6499_s30, 2 }
 0xc57   : > { %s9754_s24 = sld [smem:[#allocation31_spill]] }
 0xc5c   : > { %s4690_s3 = sand.u32 1, %s9753_s21  }
 0xc5d   : > { %p9755_p12 = scmp.ne.s32.totalorder %s9754_s24, 0  ;;  %s4691_s15 = scalar_lea.sflag [#allocation4], %s4690_s3 }
 0xc5f   : > { %p5709_p2 = pnand %p9756_p13, %p9755_p12 }
 0xc61   : > { %p5710_p6 = pneg %p5709_p2 }
 0xc63   : > { %6478 = dma.done.wait (%p5710_p6), %s4691_s15, 2048  }
 0xc64   : > { %6480 = vsyncadd (%p5710_p6), %s4691_s15, 4294965248  ;;  %s4700_s17 = scalar_lea.sflag [#allocation18], %s4690_s3 }
 0xc65   : > { %6482 = dma.done.wait (%p5710_p6), %s4700_s17, 16  }
 0xc66   : > { %6484 = vsyncadd (%p5710_p6), %s4700_s17, 4294967280  ;;  %s9757_s30 = sld [smem:[#allocation28_spill]]  ;;  %s9760_s27 = smov %s6491_s28 }
 0xc67   : > { %s9758_s26 = sld [smem:[#allocation27_spill]] }
 0xc68   : > { %s9759_s29 = sld [smem:[#allocation29_spill]] }
 0xc6c   : > { %p41_p9 = scmp.ge.s32.totalorder %s9757_s30, 4  }
 0xc6d   : > { %s9761_s28 = smov %s9758_s26 }
 0xc6e   :  { %43 = sbr.rel (!%p41_p9) target bundleno = 26 (0x1a), region = 194 }
 0xc73   :  { %4704 = vsyncpa [#allocation3], 1 }
 0xc74   :  { %4706 = vsyncpa [#allocation3 + $0x1], 1 }
 0xc75   :  { %4707 = vsyncpa [#allocation6], 1 }
 0xc76   :  { %4709 = vsyncpa [#allocation6 + $0x1], 1 }
 0xc77   :  { %4710 = vsyncpa [#allocation9], 1 }
 0xc78   :  { %4711 = vsyncpa [#allocation12], 1 }
 0xc79   :  { %4712 = vsyncpa [#allocation15], 1 }
 0xc7a   :  { %4713 = vsyncpa [#allocation4], 1 }
 0xc7b   :  { %4715 = vsyncpa [#allocation4 + $0x1], 1 }
 0xc7c   :  { %4716 = vsyncpa [#allocation18], 1 }
 0xc7d   :  { %4718 = vsyncpa [#allocation18 + $0x1], 1 }

</bundles_post_ra>
